<compile_context>
chip_gen: v5e
topology: v5e:2x2
jax: 0.10.0
libtpu: 0.0.40
codegen_flags: <defaults>
</compile_context>

<pallas_src>
import functools

import jax
import jax.numpy as jnp
from jax import lax
from jax.experimental import pallas as pl
from jax.experimental.pallas import tpu as pltpu

# ----------------------------------------------------------------------------
# ResNet-50 backbone (plain JAX, NHWC/HWIO, BN folded into conv, bf16 weights)
# ----------------------------------------------------------------------------

_LAYER_CFG = [(64, 3, 1), (128, 4, 2), (256, 6, 2), (512, 3, 2)]  # (planes, blocks, stride)
NUM_FEATURES = 512 * 4  # resnet.fc.in_features == 2048
_STRIDES = [[stride if b == 0 else 1 for b in range(n)] for _, n, stride in _LAYER_CFG]


def _init_conv(key, out_c, in_c, kh, kw):
    fan_in = in_c * kh * kw
    std = (2.0 / fan_in) ** 0.5
    return jax.random.normal(key, (out_c, in_c, kh, kw), jnp.float32) * std  # OIHW


def _init_bn(c):
    return (jnp.ones((c,), jnp.float32), jnp.zeros((c,), jnp.float32),
            jnp.zeros((c,), jnp.float32), jnp.ones((c,), jnp.float32))


def _init_bottleneck(key, in_c, planes, stride):
    k = jax.random.split(key, 4)
    p = {
        "conv1": _init_conv(k[0], planes, in_c, 1, 1), "bn1": _init_bn(planes),
        "conv2": _init_conv(k[1], planes, planes, 3, 3), "bn2": _init_bn(planes),
        "conv3": _init_conv(k[2], planes * 4, planes, 1, 1), "bn3": _init_bn(planes * 4),
    }
    if stride != 1 or in_c != planes * 4:
        p["down_conv"] = _init_conv(k[3], planes * 4, in_c, 1, 1)
        p["down_bn"] = _init_bn(planes * 4)
    return p


def init_resnet50(key):
    keys = iter(jax.random.split(key, 32))
    params = {"conv1": _init_conv(next(keys), 64, 3, 7, 7), "bn1": _init_bn(64)}
    in_c = 64
    layers = []
    for planes, n, stride in _LAYER_CFG:
        blocks = []
        for b in range(n):
            s = stride if b == 0 else 1
            blocks.append(_init_bottleneck(next(keys), in_c, planes, s))
            in_c = planes * 4
        layers.append(blocks)
    params["layers"] = layers
    return params


def _fold_conv_bn(w_oihw, bn, eps=1e-5):
    """Fold inference-mode BN into the preceding conv.

    Returns (bf16 HWIO weight, f32 bias).  bf16 weights halve the backbone
    weight DMA (the dominant end-to-end cost at batch 2); accumulation and the
    bias add stay f32.
    """
    gamma, beta, mean, var = bn
    inv = gamma / jnp.sqrt(var + eps)
    w = w_oihw * inv[:, None, None, None]
    b = beta - mean * inv
    return jnp.transpose(w, (2, 3, 1, 0)).astype(jnp.bfloat16), b.astype(jnp.float32)


def fold_backbone_params(params):
    folded = {"stem": _fold_conv_bn(params["conv1"], params["bn1"])}
    layers = []
    for blocks in params["layers"]:
        fblocks = []
        for p in blocks:
            fp = {
                "c1": _fold_conv_bn(p["conv1"], p["bn1"]),
                "c2": _fold_conv_bn(p["conv2"], p["bn2"]),
                "c3": _fold_conv_bn(p["conv3"], p["bn3"]),
            }
            if "down_conv" in p:
                fp["down"] = _fold_conv_bn(p["down_conv"], p["down_bn"])
            fblocks.append(fp)
        layers.append(fblocks)
    folded["layers"] = layers
    return folded


def _conv_bias(x, wb, stride, padding):
    w, b = wb
    y = lax.conv_general_dilated(
        x.astype(jnp.bfloat16), w,
        window_strides=(stride, stride),
        padding=((padding, padding), (padding, padding)),
        dimension_numbers=("NHWC", "HWIO", "NHWC"),
        preferred_element_type=jnp.float32)
    return y + b


def _maxpool_3x3_s2(x):  # NHWC
    return lax.reduce_window(
        x, -jnp.inf, lax.max,
        window_dimensions=(1, 3, 3, 1),
        window_strides=(1, 2, 2, 1),
        padding=((0, 0), (1, 1), (1, 1), (0, 0)))


def _bottleneck(x, fp, stride):
    identity = x
    out = jax.nn.relu(_conv_bias(x, fp["c1"], 1, 0))
    out = jax.nn.relu(_conv_bias(out, fp["c2"], stride, 1))
    out = _conv_bias(out, fp["c3"], 1, 0)
    if "down" in fp:
        identity = _conv_bias(x, fp["down"], stride, 0)
    return jax.nn.relu(out + identity)


def resnet50_backbone(folded, x_nchw):
    x = jnp.transpose(x_nchw, (0, 2, 3, 1))  # module interface is NCHW; run NHWC on TPU
    x = jax.nn.relu(_conv_bias(x, folded["stem"], 2, 3))
    x = _maxpool_3x3_s2(x)
    for blocks, strides in zip(folded["layers"], _STRIDES):
        for fp, s in zip(blocks, strides):
            x = _bottleneck(x, fp, s)
    # AdaptiveAvgPool2d((1,1)) + flatten
    return jnp.mean(x, axis=(1, 2))  # (B, 2048) f32


# ----------------------------------------------------------------------------
# ASN head: fused Pallas kernel
# ----------------------------------------------------------------------------

_LANE = 128          # lane-dense padding width for logits / biases
_NEG = -1e30         # bias pad value so softmax ignores lanes a head does not own


def make_asn_head_kernel(cs, csub, off_super, off_sub):
    """Build the fused ASN-head kernel for static class counts / lane offsets."""

    def kernel(f_ref, ws_ref, wsub_ref, wT_ref, bs_ref, bsub_ref, bt_ref, out_ref):
        f = f_ref[...]                       # (B, F) f32
        wT = wT_ref[...]                     # (F, 128) bf16, all three heads packed

        def logits(x_f32, b_ref):
            # bf16 MXU operands, f32 accumulate; wT is the shared packed weight.
            y = jnp.dot(x_f32.astype(jnp.bfloat16), wT,
                        preferred_element_type=jnp.float32)
            return y + b_ref[...]            # (B, 128); non-owned lanes carry _NEG bias

        def softmax(z, approx):              # softmax over dim=1 (pad lanes -> exp == 0)
            z = z - jnp.max(z, axis=1, keepdims=True)
            e = jnp.exp(z)
            s = jnp.sum(e, axis=1, keepdims=True)
            if approx:
                return e * pl.reciprocal(s, approx=True)   # EUP slot
            return e / s                                    # exact (super branch)

        def prob_weight(probs, w_rows, off, n):
            # probs (*, 128) with its head's classes at lanes [off, off+n);
            # w_rows (n, F) row-major f32.  Unrolled VPU broadcast-FMA over
            # n <= 8 classes — keeps the MXU off the serial chain.
            acc = probs[:, off:off + 1] * w_rows[0:1, :]
            for c in range(1, n):
                acc = acc + probs[:, off + c:off + c + 1] * w_rows[c:c + 1, :]
            return acc                       # (*, F) f32

        # ---- superclass branch -------------------------------------------
        super_logits = logits(f, bs_ref)                          # (B, 128)
        super_probs = softmax(super_logits, approx=False)
        super_pw = prob_weight(super_probs, ws_ref[...], off_super, cs)   # (B, F)
        fused_super = f * super_pw                                 # (B, F) f32

        # ---- subclass branch ---------------------------------------------
        sub_logits = logits(fused_super, bsub_ref)                 # (B, 128)
        sub_probs = softmax(sub_logits, approx=True)
        # sum over batch BEFORE the prob-weighting (algebraically identical
        # to torch.sum(sub_probability_weights, dim=0)).
        sub_probs_sum = jnp.sum(sub_probs, axis=0, keepdims=True)  # (1, 128)
        w_sub = prob_weight(sub_probs_sum, wsub_ref[...], off_sub, csub)  # (1, F)
        sub_fused = f * w_sub                                      # (B, F) f32

        # ---- target branch -------------------------------------------------
        target_logits = logits(sub_fused, bt_ref)                  # (B, 128)

        # single lane-dense packed output (3, B, 128)
        out_ref[0, :, :] = target_logits
        out_ref[1, :, :] = sub_logits
        out_ref[2, :, :] = super_logits

    return kernel


def prepare_asn_head_params(head_params):
    """One-time parameter prep (run OUTSIDE the jitted forward).

    Packs the three transposed logits weights into a single (F, 128) bf16
    buffer at disjoint lane offsets and builds per-head padded biases.
    Returns (prepped pytree, (Cs, Csub, Ct) static class counts).
    """
    (w_super, b_super), (w_sub, b_sub), (w_t, b_t) = head_params
    F = w_super.shape[1]
    cs, csub, ct = int(w_super.shape[0]), int(w_sub.shape[0]), int(w_t.shape[0])
    off_super, off_sub, off_t = 0, cs, cs + csub
    assert off_t + ct <= _LANE, "total class count must fit in 128 lanes"

    wT_packed = jnp.zeros((F, _LANE), jnp.bfloat16)
    wT_packed = wT_packed.at[:, off_super:off_super + cs].set(w_super.T.astype(jnp.bfloat16))
    wT_packed = wT_packed.at[:, off_sub:off_sub + csub].set(w_sub.T.astype(jnp.bfloat16))
    wT_packed = wT_packed.at[:, off_t:off_t + ct].set(w_t.T.astype(jnp.bfloat16))

    def pad_bias(b, off, n, pad_val):
        out = jnp.full((1, _LANE), pad_val, jnp.float32)
        return out.at[0, off:off + n].set(b.astype(jnp.float32))

    prepped = {
        "w_super_rows": w_super.astype(jnp.float32),   # (Cs, F) row-major for VPU FMA
        "w_sub_rows": w_sub.astype(jnp.float32),       # (Csub, F)
        "wT_packed": wT_packed,                        # (F, 128) bf16, shared by 3 heads
        "b_super": pad_bias(b_super, off_super, cs, _NEG),
        "b_sub": pad_bias(b_sub, off_sub, csub, _NEG),
        "b_t": pad_bias(b_t, off_t, ct, 0.0),
    }
    return prepped, (cs, csub, ct)


def asn_head(features, prepped, class_counts):
    B, F = features.shape
    cs, csub, ct = class_counts
    off_super, off_sub, off_t = 0, cs, cs + csub

    args = (
        features.astype(jnp.float32),
        prepped["w_super_rows"],
        prepped["w_sub_rows"],
        prepped["wT_packed"],
        prepped["b_super"],
        prepped["b_sub"],
        prepped["b_t"],
    )

    in_specs = [pl.BlockSpec(a.shape, lambda i, n=a.ndim: (0,) * n) for a in args]
    out_shape = jax.ShapeDtypeStruct((3, B, _LANE), jnp.float32)
    out_spec = pl.BlockSpec((3, B, _LANE), lambda i: (0, 0, 0))

    cost = pl.CostEstimate(
        flops=3 * 2 * B * F * _LANE + 2 * (cs + csub + 2) * B * F,
        transcendentals=2 * B * _LANE,
        bytes_accessed=(B * F * 4            # features
                        + F * _LANE * 2      # packed bf16 weight
                        + (cs + csub) * F * 4  # row-major prob-weight weights
                        + 3 * _LANE * 4      # biases
                        + 3 * B * _LANE * 4),  # packed logits out
    )

    packed = pl.pallas_call(
        make_asn_head_kernel(cs, csub, off_super, off_sub),
        out_shape=out_shape,
        grid=(1,),
        in_specs=in_specs,
        out_specs=out_spec,
        compiler_params=pltpu.CompilerParams(dimension_semantics=("arbitrary",)),
        cost_estimate=cost,
    )(*args)

    target_logits = packed[0, :, off_t:off_t + ct]
    sub_logits = packed[1, :, off_sub:off_sub + csub]
    super_logits = packed[2, :, off_super:off_super + cs]
    return target_logits, sub_logits, super_logits


# ----------------------------------------------------------------------------
# Full model
# ----------------------------------------------------------------------------

def _init_linear(key, out_f, in_f):
    kw, kb = jax.random.split(key)
    bound = 1.0 / (in_f ** 0.5)
    w = jax.random.uniform(kw, (out_f, in_f), jnp.float32, -bound, bound)
    b = jax.random.uniform(kb, (out_f,), jnp.float32, -bound, bound)
    return w, b


@functools.partial(jax.jit, static_argnums=(3,))
def asn_ts_forward(folded_backbone_params, head_prepped, x, class_counts):
    # One XLA program: features feed the pallas_call without an extra
    # dispatch/materialization boundary.
    features = resnet50_backbone(folded_backbone_params, x)       # (B, 2048)
    return asn_head(features, head_prepped, class_counts)


if __name__ == "__main__":
    num_superclasses, num_subclasses, num_targetclasses = 4, 8, 6

    key = jax.random.PRNGKey(0)
    k_bb, k_x, k1, k2, k3 = jax.random.split(key, 5)

    x = jax.random.normal(k_x, (2, 3, 32, 32), jnp.float32)  # NCHW, small spatial

    backbone_params = init_resnet50(k_bb)
    folded_backbone_params = fold_backbone_params(backbone_params)
    head_params = (
        _init_linear(k1, num_superclasses, NUM_FEATURES),
        _init_linear(k2, num_subclasses, NUM_FEATURES),
        _init_linear(k3, num_targetclasses, NUM_FEATURES),
    )
    head_prepped, class_counts = prepare_asn_head_params(head_params)

    target_logits, sub_logits, super_logits = asn_ts_forward(
        folded_backbone_params, head_prepped, x, class_counts)
    jax.block_until_ready((target_logits, sub_logits, super_logits))

    assert target_logits.shape == (2, num_targetclasses)
    assert sub_logits.shape == (2, num_subclasses)
    assert super_logits.shape == (2, num_superclasses)
    assert jnp.all(jnp.isfinite(target_logits))
    assert jnp.all(jnp.isfinite(sub_logits))
    assert jnp.all(jnp.isfinite(super_logits))
    print("KERNEL_OK")
</pallas_src>

<mosaic_0001>
module attributes {stable_mosaic.version = 11 : i64} {
  func.func @kernel(%arg0: i32, %arg1: memref<2x2048xf32, #tpu.memory_space<vmem>>, %arg2: memref<4x2048xf32, #tpu.memory_space<vmem>>, %arg3: memref<8x2048xf32, #tpu.memory_space<vmem>>, %arg4: memref<2048x128xbf16, #tpu.memory_space<vmem>>, %arg5: memref<1x128xf32, #tpu.memory_space<vmem>>, %arg6: memref<1x128xf32, #tpu.memory_space<vmem>>, %arg7: memref<1x128xf32, #tpu.memory_space<vmem>>, %arg8: memref<3x2x128xf32, #tpu.memory_space<vmem>>) attributes {dimension_semantics = [#tpu.dimension_semantics<arbitrary>], iteration_bounds = array<i64: 1>, scalar_prefetch = 0 : i64, scratch_operands = 0 : i64, tpu.core_type = #tpu.core_type<tc>, window_params = [{pipeline_mode = #tpu.pipeline_mode<synchronous>, transform_indices = @transform_0, window_bounds = array<i64: 2, 2048>}, {pipeline_mode = #tpu.pipeline_mode<synchronous>, transform_indices = @transform_1, window_bounds = array<i64: 4, 2048>}, {pipeline_mode = #tpu.pipeline_mode<synchronous>, transform_indices = @transform_2, window_bounds = array<i64: 8, 2048>}, {pipeline_mode = #tpu.pipeline_mode<synchronous>, transform_indices = @transform_3, window_bounds = array<i64: 2048, 128>}, {pipeline_mode = #tpu.pipeline_mode<synchronous>, transform_indices = @transform_4, window_bounds = array<i64: 1, 128>}, {pipeline_mode = #tpu.pipeline_mode<synchronous>, transform_indices = @transform_5, window_bounds = array<i64: 1, 128>}, {pipeline_mode = #tpu.pipeline_mode<synchronous>, transform_indices = @transform_6, window_bounds = array<i64: 1, 128>}, {pipeline_mode = #tpu.pipeline_mode<synchronous>, transform_indices = @transform_7, window_bounds = array<i64: 3, 2, 128>}]} {
    %c0 = arith.constant 0 : index
    %c0_0 = arith.constant 0 : index
    %0 = vector.load %arg1[%c0, %c0_0] : memref<2x2048xf32, #tpu.memory_space<vmem>>, vector<2x2048xf32>
    %c0_1 = arith.constant 0 : index
    %c0_2 = arith.constant 0 : index
    %1 = vector.load %arg4[%c0_1, %c0_2] : memref<2048x128xbf16, #tpu.memory_space<vmem>>, vector<2048x128xbf16>
    %2 = arith.truncf %0 : vector<2x2048xf32> to vector<2x2048xbf16>
    %cst = arith.constant dense<0.000000e+00> : vector<2x128xf32>
    %3 = tpu.matmul %2, %1, %cst {dimension_numbers = #tpu.dot_dimension_numbers<[1], [0], [0], [1], [0, 0, 1, 1], [], []>} : vector<2x2048xbf16>, vector<2048x128xbf16>, vector<2x128xf32> -> vector<2x128xf32>
    %c0_3 = arith.constant 0 : index
    %c0_4 = arith.constant 0 : index
    %4 = vector.load %arg5[%c0_3, %c0_4] : memref<1x128xf32, #tpu.memory_space<vmem>>, vector<1x128xf32>
    %5 = vector.broadcast %4 : vector<1x128xf32> to vector<2x128xf32>
    %6 = arith.addf %3, %5 : vector<2x128xf32>
    %cst_5 = arith.constant dense<0xFF800000> : vector<2xf32>
    %7 = vector.multi_reduction <maximumf>, %6, %cst_5 [1] : vector<2x128xf32> to vector<2xf32>
    %8 = vector.shape_cast %7 : vector<2xf32> to vector<2x1xf32>
    %9 = vector.broadcast %8 : vector<2x1xf32> to vector<2x128xf32>
    %10 = arith.subf %6, %9 : vector<2x128xf32>
    %11 = math.exp %10 : vector<2x128xf32>
    %cst_6 = arith.constant dense<0.000000e+00> : vector<2xf32>
    %12 = vector.multi_reduction <add>, %11, %cst_6 [1] : vector<2x128xf32> to vector<2xf32>
    %13 = vector.shape_cast %12 : vector<2xf32> to vector<2x1xf32>
    %14 = vector.broadcast %13 : vector<2x1xf32> to vector<2x128xf32>
    %15 = arith.divf %11, %14 : vector<2x128xf32>
    %c0_7 = arith.constant 0 : index
    %c0_8 = arith.constant 0 : index
    %16 = vector.load %arg2[%c0_7, %c0_8] : memref<4x2048xf32, #tpu.memory_space<vmem>>, vector<4x2048xf32>
    %17 = vector.extract_strided_slice %15 {offsets = [0, 0], sizes = [2, 1], strides = [1, 1]} : vector<2x128xf32> to vector<2x1xf32>
    %18 = vector.extract_strided_slice %16 {offsets = [0, 0], sizes = [1, 2048], strides = [1, 1]} : vector<4x2048xf32> to vector<1x2048xf32>
    %19 = vector.broadcast %17 : vector<2x1xf32> to vector<2x2048xf32>
    %20 = vector.broadcast %18 : vector<1x2048xf32> to vector<2x2048xf32>
    %21 = arith.mulf %19, %20 : vector<2x2048xf32>
    %22 = vector.extract_strided_slice %15 {offsets = [0, 1], sizes = [2, 1], strides = [1, 1]} : vector<2x128xf32> to vector<2x1xf32>
    %23 = vector.extract_strided_slice %16 {offsets = [1, 0], sizes = [1, 2048], strides = [1, 1]} : vector<4x2048xf32> to vector<1x2048xf32>
    %24 = vector.broadcast %22 : vector<2x1xf32> to vector<2x2048xf32>
    %25 = vector.broadcast %23 : vector<1x2048xf32> to vector<2x2048xf32>
    %26 = arith.mulf %24, %25 : vector<2x2048xf32>
    %27 = arith.addf %21, %26 : vector<2x2048xf32>
    %28 = vector.extract_strided_slice %15 {offsets = [0, 2], sizes = [2, 1], strides = [1, 1]} : vector<2x128xf32> to vector<2x1xf32>
    %29 = vector.extract_strided_slice %16 {offsets = [2, 0], sizes = [1, 2048], strides = [1, 1]} : vector<4x2048xf32> to vector<1x2048xf32>
    %30 = vector.broadcast %28 : vector<2x1xf32> to vector<2x2048xf32>
    %31 = vector.broadcast %29 : vector<1x2048xf32> to vector<2x2048xf32>
    %32 = arith.mulf %30, %31 : vector<2x2048xf32>
    %33 = arith.addf %27, %32 : vector<2x2048xf32>
    %34 = vector.extract_strided_slice %15 {offsets = [0, 3], sizes = [2, 1], strides = [1, 1]} : vector<2x128xf32> to vector<2x1xf32>
    %35 = vector.extract_strided_slice %16 {offsets = [3, 0], sizes = [1, 2048], strides = [1, 1]} : vector<4x2048xf32> to vector<1x2048xf32>
    %36 = vector.broadcast %34 : vector<2x1xf32> to vector<2x2048xf32>
    %37 = vector.broadcast %35 : vector<1x2048xf32> to vector<2x2048xf32>
    %38 = arith.mulf %36, %37 : vector<2x2048xf32>
    %39 = arith.addf %33, %38 : vector<2x2048xf32>
    %40 = arith.mulf %0, %39 : vector<2x2048xf32>
    %41 = arith.truncf %40 : vector<2x2048xf32> to vector<2x2048xbf16>
    %cst_9 = arith.constant dense<0.000000e+00> : vector<2x128xf32>
    %42 = tpu.matmul %41, %1, %cst_9 {dimension_numbers = #tpu.dot_dimension_numbers<[1], [0], [0], [1], [0, 0, 1, 1], [], []>} : vector<2x2048xbf16>, vector<2048x128xbf16>, vector<2x128xf32> -> vector<2x128xf32>
    %c0_10 = arith.constant 0 : index
    %c0_11 = arith.constant 0 : index
    %43 = vector.load %arg6[%c0_10, %c0_11] : memref<1x128xf32, #tpu.memory_space<vmem>>, vector<1x128xf32>
    %44 = vector.broadcast %43 : vector<1x128xf32> to vector<2x128xf32>
    %45 = arith.addf %42, %44 : vector<2x128xf32>
    %cst_12 = arith.constant dense<0xFF800000> : vector<2xf32>
    %46 = vector.multi_reduction <maximumf>, %45, %cst_12 [1] : vector<2x128xf32> to vector<2xf32>
    %47 = vector.shape_cast %46 : vector<2xf32> to vector<2x1xf32>
    %48 = vector.broadcast %47 : vector<2x1xf32> to vector<2x128xf32>
    %49 = arith.subf %45, %48 : vector<2x128xf32>
    %50 = math.exp %49 : vector<2x128xf32>
    %cst_13 = arith.constant dense<0.000000e+00> : vector<2xf32>
    %51 = vector.multi_reduction <add>, %50, %cst_13 [1] : vector<2x128xf32> to vector<2xf32>
    %52 = vector.shape_cast %51 : vector<2xf32> to vector<2x1xf32>
    %53 = tpu.reciprocal %52 {approx = true} : vector<2x1xf32> -> vector<2x1xf32>
    %54 = vector.broadcast %53 : vector<2x1xf32> to vector<2x128xf32>
    %55 = arith.mulf %50, %54 : vector<2x128xf32>
    %cst_14 = arith.constant dense<0.000000e+00> : vector<128xf32>
    %56 = vector.multi_reduction <add>, %55, %cst_14 [0] : vector<2x128xf32> to vector<128xf32>
    %57 = vector.shape_cast %56 : vector<128xf32> to vector<1x128xf32>
    %c0_15 = arith.constant 0 : index
    %c0_16 = arith.constant 0 : index
    %58 = vector.load %arg3[%c0_15, %c0_16] : memref<8x2048xf32, #tpu.memory_space<vmem>>, vector<8x2048xf32>
    %59 = vector.extract_strided_slice %57 {offsets = [0, 4], sizes = [1, 1], strides = [1, 1]} : vector<1x128xf32> to vector<1x1xf32>
    %60 = vector.extract_strided_slice %58 {offsets = [0, 0], sizes = [1, 2048], strides = [1, 1]} : vector<8x2048xf32> to vector<1x2048xf32>
    %61 = vector.broadcast %59 : vector<1x1xf32> to vector<1x2048xf32>
    %62 = arith.mulf %61, %60 : vector<1x2048xf32>
    %63 = vector.extract_strided_slice %57 {offsets = [0, 5], sizes = [1, 1], strides = [1, 1]} : vector<1x128xf32> to vector<1x1xf32>
    %64 = vector.extract_strided_slice %58 {offsets = [1, 0], sizes = [1, 2048], strides = [1, 1]} : vector<8x2048xf32> to vector<1x2048xf32>
    %65 = vector.broadcast %63 : vector<1x1xf32> to vector<1x2048xf32>
    %66 = arith.mulf %65, %64 : vector<1x2048xf32>
    %67 = arith.addf %62, %66 : vector<1x2048xf32>
    %68 = vector.extract_strided_slice %57 {offsets = [0, 6], sizes = [1, 1], strides = [1, 1]} : vector<1x128xf32> to vector<1x1xf32>
    %69 = vector.extract_strided_slice %58 {offsets = [2, 0], sizes = [1, 2048], strides = [1, 1]} : vector<8x2048xf32> to vector<1x2048xf32>
    %70 = vector.broadcast %68 : vector<1x1xf32> to vector<1x2048xf32>
    %71 = arith.mulf %70, %69 : vector<1x2048xf32>
    %72 = arith.addf %67, %71 : vector<1x2048xf32>
    %73 = vector.extract_strided_slice %57 {offsets = [0, 7], sizes = [1, 1], strides = [1, 1]} : vector<1x128xf32> to vector<1x1xf32>
    %74 = vector.extract_strided_slice %58 {offsets = [3, 0], sizes = [1, 2048], strides = [1, 1]} : vector<8x2048xf32> to vector<1x2048xf32>
    %75 = vector.broadcast %73 : vector<1x1xf32> to vector<1x2048xf32>
    %76 = arith.mulf %75, %74 : vector<1x2048xf32>
    %77 = arith.addf %72, %76 : vector<1x2048xf32>
    %78 = vector.extract_strided_slice %57 {offsets = [0, 8], sizes = [1, 1], strides = [1, 1]} : vector<1x128xf32> to vector<1x1xf32>
    %79 = vector.extract_strided_slice %58 {offsets = [4, 0], sizes = [1, 2048], strides = [1, 1]} : vector<8x2048xf32> to vector<1x2048xf32>
    %80 = vector.broadcast %78 : vector<1x1xf32> to vector<1x2048xf32>
    %81 = arith.mulf %80, %79 : vector<1x2048xf32>
    %82 = arith.addf %77, %81 : vector<1x2048xf32>
    %83 = vector.extract_strided_slice %57 {offsets = [0, 9], sizes = [1, 1], strides = [1, 1]} : vector<1x128xf32> to vector<1x1xf32>
    %84 = vector.extract_strided_slice %58 {offsets = [5, 0], sizes = [1, 2048], strides = [1, 1]} : vector<8x2048xf32> to vector<1x2048xf32>
    %85 = vector.broadcast %83 : vector<1x1xf32> to vector<1x2048xf32>
    %86 = arith.mulf %85, %84 : vector<1x2048xf32>
    %87 = arith.addf %82, %86 : vector<1x2048xf32>
    %88 = vector.extract_strided_slice %57 {offsets = [0, 10], sizes = [1, 1], strides = [1, 1]} : vector<1x128xf32> to vector<1x1xf32>
    %89 = vector.extract_strided_slice %58 {offsets = [6, 0], sizes = [1, 2048], strides = [1, 1]} : vector<8x2048xf32> to vector<1x2048xf32>
    %90 = vector.broadcast %88 : vector<1x1xf32> to vector<1x2048xf32>
    %91 = arith.mulf %90, %89 : vector<1x2048xf32>
    %92 = arith.addf %87, %91 : vector<1x2048xf32>
    %93 = vector.extract_strided_slice %57 {offsets = [0, 11], sizes = [1, 1], strides = [1, 1]} : vector<1x128xf32> to vector<1x1xf32>
    %94 = vector.extract_strided_slice %58 {offsets = [7, 0], sizes = [1, 2048], strides = [1, 1]} : vector<8x2048xf32> to vector<1x2048xf32>
    %95 = vector.broadcast %93 : vector<1x1xf32> to vector<1x2048xf32>
    %96 = arith.mulf %95, %94 : vector<1x2048xf32>
    %97 = arith.addf %92, %96 : vector<1x2048xf32>
    %98 = vector.broadcast %97 : vector<1x2048xf32> to vector<2x2048xf32>
    %99 = arith.mulf %0, %98 : vector<2x2048xf32>
    %100 = arith.truncf %99 : vector<2x2048xf32> to vector<2x2048xbf16>
    %cst_17 = arith.constant dense<0.000000e+00> : vector<2x128xf32>
    %101 = tpu.matmul %100, %1, %cst_17 {dimension_numbers = #tpu.dot_dimension_numbers<[1], [0], [0], [1], [0, 0, 1, 1], [], []>} : vector<2x2048xbf16>, vector<2048x128xbf16>, vector<2x128xf32> -> vector<2x128xf32>
    %c0_18 = arith.constant 0 : index
    %c0_19 = arith.constant 0 : index
    %102 = vector.load %arg7[%c0_18, %c0_19] : memref<1x128xf32, #tpu.memory_space<vmem>>, vector<1x128xf32>
    %103 = vector.broadcast %102 : vector<1x128xf32> to vector<2x128xf32>
    %104 = arith.addf %101, %103 : vector<2x128xf32>
    %c0_20 = arith.constant 0 : index
    %c0_21 = arith.constant 0 : index
    %c0_22 = arith.constant 0 : index
    %105 = vector.load %arg8[%c0_20, %c0_21, %c0_22] : memref<3x2x128xf32, #tpu.memory_space<vmem>>, vector<1x2x128xf32>
    %106 = vector.shape_cast %105 : vector<1x2x128xf32> to vector<2x128xf32>
    %107 = vector.shape_cast %104 : vector<2x128xf32> to vector<1x2x128xf32>
    tpu.vector_store %arg8[%c0_20, %c0_21, %c0_22], %107 {strides = array<i32>} : memref<3x2x128xf32, #tpu.memory_space<vmem>>, vector<1x2x128xf32>,
    %c1 = arith.constant 1 : index
    %c0_23 = arith.constant 0 : index
    %c0_24 = arith.constant 0 : index
    %108 = vector.load %arg8[%c1, %c0_23, %c0_24] : memref<3x2x128xf32, #tpu.memory_space<vmem>>, vector<1x2x128xf32>
    %109 = vector.shape_cast %108 : vector<1x2x128xf32> to vector<2x128xf32>
    %110 = vector.shape_cast %45 : vector<2x128xf32> to vector<1x2x128xf32>
    tpu.vector_store %arg8[%c1, %c0_23, %c0_24], %110 {strides = array<i32>} : memref<3x2x128xf32, #tpu.memory_space<vmem>>, vector<1x2x128xf32>,
    %c2 = arith.constant 2 : index
    %c0_25 = arith.constant 0 : index
    %c0_26 = arith.constant 0 : index
    %111 = vector.load %arg8[%c2, %c0_25, %c0_26] : memref<3x2x128xf32, #tpu.memory_space<vmem>>, vector<1x2x128xf32>
    %112 = vector.shape_cast %111 : vector<1x2x128xf32> to vector<2x128xf32>
    %113 = vector.shape_cast %6 : vector<2x128xf32> to vector<1x2x128xf32>
    tpu.vector_store %arg8[%c2, %c0_25, %c0_26], %113 {strides = array<i32>} : memref<3x2x128xf32, #tpu.memory_space<vmem>>, vector<1x2x128xf32>,
    return
  }
  func.func @transform_0(%arg0: i32) -> (i32, i32) {
    %c0_i32 = arith.constant 0 : i32
    %c0_i32_0 = arith.constant 0 : i32
    %c0_i32_1 = arith.constant 0 : i32
    return %c0_i32, %c0_i32_0 : i32, i32
  }
  func.func @transform_1(%arg0: i32) -> (i32, i32) {
    %c0_i32 = arith.constant 0 : i32
    %c0_i32_0 = arith.constant 0 : i32
    %c0_i32_1 = arith.constant 0 : i32
    return %c0_i32, %c0_i32_0 : i32, i32
  }
  func.func @transform_2(%arg0: i32) -> (i32, i32) {
    %c0_i32 = arith.constant 0 : i32
    %c0_i32_0 = arith.constant 0 : i32
    %c0_i32_1 = arith.constant 0 : i32
    return %c0_i32, %c0_i32_0 : i32, i32
  }
  func.func @transform_3(%arg0: i32) -> (i32, i32) {
    %c0_i32 = arith.constant 0 : i32
    %c0_i32_0 = arith.constant 0 : i32
    %c0_i32_1 = arith.constant 0 : i32
    return %c0_i32, %c0_i32_0 : i32, i32
  }
  func.func @transform_4(%arg0: i32) -> (i32, i32) {
    %c0_i32 = arith.constant 0 : i32
    %c0_i32_0 = arith.constant 0 : i32
    %c0_i32_1 = arith.constant 0 : i32
    return %c0_i32, %c0_i32_0 : i32, i32
  }
  func.func @transform_5(%arg0: i32) -> (i32, i32) {
    %c0_i32 = arith.constant 0 : i32
    %c0_i32_0 = arith.constant 0 : i32
    %c0_i32_1 = arith.constant 0 : i32
    return %c0_i32, %c0_i32_0 : i32, i32
  }
  func.func @transform_6(%arg0: i32) -> (i32, i32) {
    %c0_i32 = arith.constant 0 : i32
    %c0_i32_0 = arith.constant 0 : i32
    %c0_i32_1 = arith.constant 0 : i32
    return %c0_i32, %c0_i32_0 : i32, i32
  }
  func.func @transform_7(%arg0: i32) -> (i32, i32, i32) {
    %c0_i32 = arith.constant 0 : i32
    %c0_i32_0 = arith.constant 0 : i32
    %c0_i32_1 = arith.constant 0 : i32
    %c0_i32_2 = arith.constant 0 : i32
    return %c0_i32, %c0_i32_0, %c0_i32_1 : i32, i32, i32
  }
}

</mosaic_0001>

<bundles_post_ra>
// kernel: reverse
= control target key start
LH: loop header
LB: loop body
LE: loop exit
PB: predicated region body
PF: predicated region fallthrough
CT: control target
= control target key end

     0   :  { %s8073_s0 = inlined_call_operand.vmem [shape: bf16[3,3,256,256], index: 0, kind: input, shape index: {}]   ;;  %s8074_s1 = inlined_call_operand.vmem [shape: bf16[3,3,256,256], index: 1, kind: output, shape index: {}]  }
   0x1   :  { %v6047_v0 = vld [vmem:[%s8073_s0 + $0x800] sm:$0xff]  ;;  %v6056_v9 = vld [vmem:[%s8073_s0 + $0x808] sm:$0xff]  ;;  %v6065_v18 = vld [vmem:[%s8073_s0 + $0x810] sm:$0xff] }
   0x2   :  { %v6048_v1 = vld [vmem:[%s8073_s0 + $0x500] sm:$0xff]  ;;  %4324 = vst [vmem:[%s8074_s1] sm:$0xff] %v6047_v0  ;;  %v6057_v10 = vld [vmem:[%s8073_s0 + $0x508] sm:$0xff]  ;;  %v6066_v19 = vld [vmem:[%s8073_s0 + $0x510] sm:$0xff] }
   0x3   :  { %v6049_v2 = vld [vmem:[%s8073_s0 + $0x200] sm:$0xff]  ;;  %4330 = vst [vmem:[%s8074_s1 + $0x300] sm:$0xff] %v6048_v1  ;;  %v6058_v11 = vld [vmem:[%s8073_s0 + $0x208] sm:$0xff]  ;;  %v6067_v20 = vld [vmem:[%s8073_s0 + $0x210] sm:$0xff] }
   0x4   :  { %v6050_v3 = vld [vmem:[%s8073_s0 + $0x700] sm:$0xff]  ;;  %4336 = vst [vmem:[%s8074_s1 + $0x600] sm:$0xff] %v6049_v2  ;;  %v6059_v12 = vld [vmem:[%s8073_s0 + $0x708] sm:$0xff]  ;;  %v6068_v21 = vld [vmem:[%s8073_s0 + $0x710] sm:$0xff] }
   0x5   :  { %v6051_v4 = vld [vmem:[%s8073_s0 + $0x400] sm:$0xff]  ;;  %4342 = vst [vmem:[%s8074_s1 + $0x100] sm:$0xff] %v6050_v3  ;;  %v6060_v13 = vld [vmem:[%s8073_s0 + $0x408] sm:$0xff]  ;;  %v6069_v22 = vld [vmem:[%s8073_s0 + $0x410] sm:$0xff] }
   0x6   :  { %v6052_v5 = vld [vmem:[%s8073_s0 + $0x100] sm:$0xff]  ;;  %4348 = vst [vmem:[%s8074_s1 + $0x400] sm:$0xff] %v6051_v4  ;;  %v6061_v14 = vld [vmem:[%s8073_s0 + $0x108] sm:$0xff]  ;;  %v6070_v23 = vld [vmem:[%s8073_s0 + $0x110] sm:$0xff] }
   0x7   :  { %v6053_v6 = vld [vmem:[%s8073_s0 + $0x600] sm:$0xff]  ;;  %4354 = vst [vmem:[%s8074_s1 + $0x700] sm:$0xff] %v6052_v5  ;;  %v6062_v15 = vld [vmem:[%s8073_s0 + $0x608] sm:$0xff]  ;;  %v6071_v24 = vld [vmem:[%s8073_s0 + $0x610] sm:$0xff] }
   0x8   :  { %v6054_v7 = vld [vmem:[%s8073_s0 + $0x300] sm:$0xff]  ;;  %4360 = vst [vmem:[%s8074_s1 + $0x200] sm:$0xff] %v6053_v6  ;;  %v6063_v16 = vld [vmem:[%s8073_s0 + $0x308] sm:$0xff]  ;;  %v6072_v25 = vld [vmem:[%s8073_s0 + $0x310] sm:$0xff] }
   0x9   :  { %v6055_v8 = vld [vmem:[%s8073_s0] sm:$0xff]  ;;  %4366 = vst [vmem:[%s8074_s1 + $0x500] sm:$0xff] %v6054_v7  ;;  %v6064_v17 = vld [vmem:[%s8073_s0 + $0x8] sm:$0xff]  ;;  %v6073_v26 = vld [vmem:[%s8073_s0 + $0x10] sm:$0xff] }
   0xa   :  { %4372 = vst [vmem:[%s8074_s1 + $0x800] sm:$0xff] %v6055_v8  ;;  %v6074_v27 = vld [vmem:[%s8073_s0 + $0x818] sm:$0xff]  ;;  %v6083_v36 = vld [vmem:[%s8073_s0 + $0x820] sm:$0xff]  ;;  %v6092_v45 = vld [vmem:[%s8073_s0 + $0x828] sm:$0xff] }
   0xb   :  { %4378 = vst [vmem:[%s8074_s1 + $0x8] sm:$0xff] %v6056_v9  ;;  %v6075_v28 = vld [vmem:[%s8073_s0 + $0x518] sm:$0xff]  ;;  %v6084_v37 = vld [vmem:[%s8073_s0 + $0x520] sm:$0xff]  ;;  %v6093_v46 = vld [vmem:[%s8073_s0 + $0x528] sm:$0xff] }
   0xc   :  { %4384 = vst [vmem:[%s8074_s1 + $0x308] sm:$0xff] %v6057_v10  ;;  %v6076_v29 = vld [vmem:[%s8073_s0 + $0x218] sm:$0xff]  ;;  %v6085_v38 = vld [vmem:[%s8073_s0 + $0x220] sm:$0xff]  ;;  %v6094_v47 = vld [vmem:[%s8073_s0 + $0x228] sm:$0xff] }
   0xd   :  { %4390 = vst [vmem:[%s8074_s1 + $0x608] sm:$0xff] %v6058_v11  ;;  %v6077_v30 = vld [vmem:[%s8073_s0 + $0x718] sm:$0xff]  ;;  %v6086_v39 = vld [vmem:[%s8073_s0 + $0x720] sm:$0xff]  ;;  %v6095_v48 = vld [vmem:[%s8073_s0 + $0x728] sm:$0xff] }
   0xe   :  { %4396 = vst [vmem:[%s8074_s1 + $0x108] sm:$0xff] %v6059_v12  ;;  %v6078_v31 = vld [vmem:[%s8073_s0 + $0x418] sm:$0xff]  ;;  %v6087_v40 = vld [vmem:[%s8073_s0 + $0x420] sm:$0xff]  ;;  %v6096_v49 = vld [vmem:[%s8073_s0 + $0x428] sm:$0xff] }
   0xf   :  { %4402 = vst [vmem:[%s8074_s1 + $0x408] sm:$0xff] %v6060_v13  ;;  %v6079_v32 = vld [vmem:[%s8073_s0 + $0x118] sm:$0xff]  ;;  %v6088_v41 = vld [vmem:[%s8073_s0 + $0x120] sm:$0xff]  ;;  %v6097_v50 = vld [vmem:[%s8073_s0 + $0x128] sm:$0xff] }
  0x10   :  { %4408 = vst [vmem:[%s8074_s1 + $0x708] sm:$0xff] %v6061_v14  ;;  %v6080_v33 = vld [vmem:[%s8073_s0 + $0x618] sm:$0xff]  ;;  %v6089_v42 = vld [vmem:[%s8073_s0 + $0x620] sm:$0xff]  ;;  %v6098_v51 = vld [vmem:[%s8073_s0 + $0x628] sm:$0xff] }
  0x11   :  { %4414 = vst [vmem:[%s8074_s1 + $0x208] sm:$0xff] %v6062_v15  ;;  %v6081_v34 = vld [vmem:[%s8073_s0 + $0x318] sm:$0xff]  ;;  %v6090_v43 = vld [vmem:[%s8073_s0 + $0x320] sm:$0xff]  ;;  %v6099_v52 = vld [vmem:[%s8073_s0 + $0x328] sm:$0xff] }
  0x12   :  { %4420 = vst [vmem:[%s8074_s1 + $0x508] sm:$0xff] %v6063_v16  ;;  %v6082_v35 = vld [vmem:[%s8073_s0 + $0x18] sm:$0xff]  ;;  %v6091_v44 = vld [vmem:[%s8073_s0 + $0x20] sm:$0xff]  ;;  %v6100_v53 = vld [vmem:[%s8073_s0 + $0x28] sm:$0xff] }
  0x13   :  { %4426 = vst [vmem:[%s8074_s1 + $0x808] sm:$0xff] %v6064_v17  ;;  %v6101_v54 = vld [vmem:[%s8073_s0 + $0x830] sm:$0xff]  ;;  %v6110_v63 = vld [vmem:[%s8073_s0 + $0x838] sm:$0xff]  ;;  %v6119_v8 = vld [vmem:[%s8073_s0 + $0x840] sm:$0xff] }
  0x14   :  { %4432 = vst [vmem:[%s8074_s1 + $0x10] sm:$0xff] %v6065_v18  ;;  %v6102_v55 = vld [vmem:[%s8073_s0 + $0x530] sm:$0xff]  ;;  %v6111_v0 = vld [vmem:[%s8073_s0 + $0x538] sm:$0xff]  ;;  %v6120_v9 = vld [vmem:[%s8073_s0 + $0x540] sm:$0xff] }
  0x15   :  { %4438 = vst [vmem:[%s8074_s1 + $0x310] sm:$0xff] %v6066_v19  ;;  %v6103_v56 = vld [vmem:[%s8073_s0 + $0x230] sm:$0xff]  ;;  %v6112_v1 = vld [vmem:[%s8073_s0 + $0x238] sm:$0xff]  ;;  %v6121_v10 = vld [vmem:[%s8073_s0 + $0x240] sm:$0xff] }
  0x16   :  { %4444 = vst [vmem:[%s8074_s1 + $0x610] sm:$0xff] %v6067_v20  ;;  %v6104_v57 = vld [vmem:[%s8073_s0 + $0x730] sm:$0xff]  ;;  %v6113_v2 = vld [vmem:[%s8073_s0 + $0x738] sm:$0xff]  ;;  %v6122_v11 = vld [vmem:[%s8073_s0 + $0x740] sm:$0xff] }
  0x17   :  { %4450 = vst [vmem:[%s8074_s1 + $0x110] sm:$0xff] %v6068_v21  ;;  %v6105_v58 = vld [vmem:[%s8073_s0 + $0x430] sm:$0xff]  ;;  %v6114_v3 = vld [vmem:[%s8073_s0 + $0x438] sm:$0xff]  ;;  %v6123_v12 = vld [vmem:[%s8073_s0 + $0x440] sm:$0xff] }
  0x18   :  { %4456 = vst [vmem:[%s8074_s1 + $0x410] sm:$0xff] %v6069_v22  ;;  %v6106_v59 = vld [vmem:[%s8073_s0 + $0x130] sm:$0xff]  ;;  %v6115_v4 = vld [vmem:[%s8073_s0 + $0x138] sm:$0xff]  ;;  %v6124_v13 = vld [vmem:[%s8073_s0 + $0x140] sm:$0xff] }
  0x19   :  { %4462 = vst [vmem:[%s8074_s1 + $0x710] sm:$0xff] %v6070_v23  ;;  %v6107_v60 = vld [vmem:[%s8073_s0 + $0x630] sm:$0xff]  ;;  %v6116_v5 = vld [vmem:[%s8073_s0 + $0x638] sm:$0xff]  ;;  %v6125_v14 = vld [vmem:[%s8073_s0 + $0x640] sm:$0xff] }
  0x1a   :  { %4468 = vst [vmem:[%s8074_s1 + $0x210] sm:$0xff] %v6071_v24  ;;  %v6108_v61 = vld [vmem:[%s8073_s0 + $0x330] sm:$0xff]  ;;  %v6117_v6 = vld [vmem:[%s8073_s0 + $0x338] sm:$0xff]  ;;  %v6126_v15 = vld [vmem:[%s8073_s0 + $0x340] sm:$0xff] }
  0x1b   :  { %4474 = vst [vmem:[%s8074_s1 + $0x510] sm:$0xff] %v6072_v25  ;;  %v6109_v62 = vld [vmem:[%s8073_s0 + $0x30] sm:$0xff]  ;;  %v6118_v7 = vld [vmem:[%s8073_s0 + $0x38] sm:$0xff]  ;;  %v6127_v16 = vld [vmem:[%s8073_s0 + $0x40] sm:$0xff] }
  0x1c   :  { %4480 = vst [vmem:[%s8074_s1 + $0x810] sm:$0xff] %v6073_v26  ;;  %v6128_v17 = vld [vmem:[%s8073_s0 + $0x848] sm:$0xff]  ;;  %v6137_v26 = vld [vmem:[%s8073_s0 + $0x850] sm:$0xff] }
  0x1d   :  { %4486 = vst [vmem:[%s8074_s1 + $0x18] sm:$0xff] %v6074_v27  ;;  %v6129_v18 = vld [vmem:[%s8073_s0 + $0x548] sm:$0xff]  ;;  %v6138_v27 = vld [vmem:[%s8073_s0 + $0x550] sm:$0xff] }
  0x1e   :  { %4492 = vst [vmem:[%s8074_s1 + $0x318] sm:$0xff] %v6075_v28  ;;  %v6130_v19 = vld [vmem:[%s8073_s0 + $0x248] sm:$0xff]  ;;  %v6139_v28 = vld [vmem:[%s8073_s0 + $0x250] sm:$0xff] }
  0x1f   :  { %4498 = vst [vmem:[%s8074_s1 + $0x618] sm:$0xff] %v6076_v29  ;;  %v6131_v20 = vld [vmem:[%s8073_s0 + $0x748] sm:$0xff]  ;;  %v6140_v29 = vld [vmem:[%s8073_s0 + $0x750] sm:$0xff] }
  0x20   :  { %4504 = vst [vmem:[%s8074_s1 + $0x118] sm:$0xff] %v6077_v30  ;;  %v6132_v21 = vld [vmem:[%s8073_s0 + $0x448] sm:$0xff]  ;;  %v6141_v30 = vld [vmem:[%s8073_s0 + $0x450] sm:$0xff] }
  0x21   :  { %4510 = vst [vmem:[%s8074_s1 + $0x418] sm:$0xff] %v6078_v31  ;;  %v6133_v22 = vld [vmem:[%s8073_s0 + $0x148] sm:$0xff]  ;;  %v6142_v31 = vld [vmem:[%s8073_s0 + $0x150] sm:$0xff] }
  0x22   :  { %4516 = vst [vmem:[%s8074_s1 + $0x718] sm:$0xff] %v6079_v32  ;;  %v6134_v23 = vld [vmem:[%s8073_s0 + $0x648] sm:$0xff]  ;;  %v6143_v32 = vld [vmem:[%s8073_s0 + $0x650] sm:$0xff] }
  0x23   :  { %4522 = vst [vmem:[%s8074_s1 + $0x218] sm:$0xff] %v6080_v33  ;;  %v6135_v24 = vld [vmem:[%s8073_s0 + $0x348] sm:$0xff]  ;;  %v6144_v33 = vld [vmem:[%s8073_s0 + $0x350] sm:$0xff] }
  0x24   :  { %4528 = vst [vmem:[%s8074_s1 + $0x518] sm:$0xff] %v6081_v34  ;;  %v6136_v25 = vld [vmem:[%s8073_s0 + $0x48] sm:$0xff]  ;;  %v6145_v34 = vld [vmem:[%s8073_s0 + $0x50] sm:$0xff] }
  0x25   :  { %4534 = vst [vmem:[%s8074_s1 + $0x818] sm:$0xff] %v6082_v35  ;;  %v6146_v35 = vld [vmem:[%s8073_s0 + $0x858] sm:$0xff] }
  0x26   :  { %4540 = vst [vmem:[%s8074_s1 + $0x20] sm:$0xff] %v6083_v36  ;;  %v6147_v36 = vld [vmem:[%s8073_s0 + $0x558] sm:$0xff] }
  0x27   :  { %4546 = vst [vmem:[%s8074_s1 + $0x320] sm:$0xff] %v6084_v37  ;;  %v6148_v37 = vld [vmem:[%s8073_s0 + $0x258] sm:$0xff] }
  0x28   :  { %4552 = vst [vmem:[%s8074_s1 + $0x620] sm:$0xff] %v6085_v38  ;;  %v6149_v38 = vld [vmem:[%s8073_s0 + $0x758] sm:$0xff] }
  0x29   :  { %4558 = vst [vmem:[%s8074_s1 + $0x120] sm:$0xff] %v6086_v39  ;;  %v6150_v39 = vld [vmem:[%s8073_s0 + $0x458] sm:$0xff] }
  0x2a   :  { %4564 = vst [vmem:[%s8074_s1 + $0x420] sm:$0xff] %v6087_v40  ;;  %v6151_v40 = vld [vmem:[%s8073_s0 + $0x158] sm:$0xff] }
  0x2b   :  { %4570 = vst [vmem:[%s8074_s1 + $0x720] sm:$0xff] %v6088_v41  ;;  %v6152_v41 = vld [vmem:[%s8073_s0 + $0x658] sm:$0xff] }
  0x2c   :  { %4576 = vst [vmem:[%s8074_s1 + $0x220] sm:$0xff] %v6089_v42  ;;  %v6153_v42 = vld [vmem:[%s8073_s0 + $0x358] sm:$0xff] }
  0x2d   :  { %4582 = vst [vmem:[%s8074_s1 + $0x520] sm:$0xff] %v6090_v43  ;;  %v6154_v43 = vld [vmem:[%s8073_s0 + $0x58] sm:$0xff] }
  0x2e   :  { %4588 = vst [vmem:[%s8074_s1 + $0x820] sm:$0xff] %v6091_v44  ;;  %v6155_v44 = vld [vmem:[%s8073_s0 + $0x860] sm:$0xff] }
  0x2f   :  { %4594 = vst [vmem:[%s8074_s1 + $0x28] sm:$0xff] %v6092_v45  ;;  %v6156_v45 = vld [vmem:[%s8073_s0 + $0x560] sm:$0xff] }
  0x30   :  { %4600 = vst [vmem:[%s8074_s1 + $0x328] sm:$0xff] %v6093_v46  ;;  %v6157_v46 = vld [vmem:[%s8073_s0 + $0x260] sm:$0xff] }
  0x31   :  { %4606 = vst [vmem:[%s8074_s1 + $0x628] sm:$0xff] %v6094_v47  ;;  %v6158_v47 = vld [vmem:[%s8073_s0 + $0x760] sm:$0xff] }
  0x32   :  { %4612 = vst [vmem:[%s8074_s1 + $0x128] sm:$0xff] %v6095_v48  ;;  %v6159_v48 = vld [vmem:[%s8073_s0 + $0x460] sm:$0xff] }
  0x33   :  { %4618 = vst [vmem:[%s8074_s1 + $0x428] sm:$0xff] %v6096_v49  ;;  %v6160_v49 = vld [vmem:[%s8073_s0 + $0x160] sm:$0xff] }
  0x34   :  { %4624 = vst [vmem:[%s8074_s1 + $0x728] sm:$0xff] %v6097_v50  ;;  %v6161_v50 = vld [vmem:[%s8073_s0 + $0x660] sm:$0xff] }
  0x35   :  { %4630 = vst [vmem:[%s8074_s1 + $0x228] sm:$0xff] %v6098_v51  ;;  %v6162_v51 = vld [vmem:[%s8073_s0 + $0x360] sm:$0xff] }
  0x36   :  { %4636 = vst [vmem:[%s8074_s1 + $0x528] sm:$0xff] %v6099_v52  ;;  %v6163_v52 = vld [vmem:[%s8073_s0 + $0x60] sm:$0xff] }
  0x37   :  { %4642 = vst [vmem:[%s8074_s1 + $0x828] sm:$0xff] %v6100_v53  ;;  %v6164_v53 = vld [vmem:[%s8073_s0 + $0x868] sm:$0xff] }
  0x38   :  { %4648 = vst [vmem:[%s8074_s1 + $0x30] sm:$0xff] %v6101_v54  ;;  %v6165_v54 = vld [vmem:[%s8073_s0 + $0x568] sm:$0xff] }
  0x39   :  { %4654 = vst [vmem:[%s8074_s1 + $0x330] sm:$0xff] %v6102_v55  ;;  %v6166_v55 = vld [vmem:[%s8073_s0 + $0x268] sm:$0xff] }
  0x3a   :  { %4660 = vst [vmem:[%s8074_s1 + $0x630] sm:$0xff] %v6103_v56  ;;  %v6167_v56 = vld [vmem:[%s8073_s0 + $0x768] sm:$0xff] }
  0x3b   :  { %4666 = vst [vmem:[%s8074_s1 + $0x130] sm:$0xff] %v6104_v57  ;;  %v6168_v57 = vld [vmem:[%s8073_s0 + $0x468] sm:$0xff] }
  0x3c   :  { %4672 = vst [vmem:[%s8074_s1 + $0x430] sm:$0xff] %v6105_v58  ;;  %v6169_v58 = vld [vmem:[%s8073_s0 + $0x168] sm:$0xff] }
  0x3d   :  { %4678 = vst [vmem:[%s8074_s1 + $0x730] sm:$0xff] %v6106_v59  ;;  %v6170_v59 = vld [vmem:[%s8073_s0 + $0x668] sm:$0xff] }
  0x3e   :  { %4684 = vst [vmem:[%s8074_s1 + $0x230] sm:$0xff] %v6107_v60  ;;  %v6171_v60 = vld [vmem:[%s8073_s0 + $0x368] sm:$0xff] }
  0x3f   :  { %4690 = vst [vmem:[%s8074_s1 + $0x530] sm:$0xff] %v6108_v61  ;;  %v6172_v61 = vld [vmem:[%s8073_s0 + $0x68] sm:$0xff] }
  0x40   :  { %4696 = vst [vmem:[%s8074_s1 + $0x830] sm:$0xff] %v6109_v62  ;;  %v6173_v62 = vld [vmem:[%s8073_s0 + $0x870] sm:$0xff] }
  0x41   :  { %4702 = vst [vmem:[%s8074_s1 + $0x38] sm:$0xff] %v6110_v63  ;;  %v6174_v63 = vld [vmem:[%s8073_s0 + $0x570] sm:$0xff] }
  0x42   :  { %4708 = vst [vmem:[%s8074_s1 + $0x338] sm:$0xff] %v6111_v0  ;;  %v6175_v0 = vld [vmem:[%s8073_s0 + $0x270] sm:$0xff] }
  0x43   :  { %4714 = vst [vmem:[%s8074_s1 + $0x638] sm:$0xff] %v6112_v1  ;;  %v6176_v1 = vld [vmem:[%s8073_s0 + $0x770] sm:$0xff] }
  0x44   :  { %4720 = vst [vmem:[%s8074_s1 + $0x138] sm:$0xff] %v6113_v2  ;;  %v6177_v2 = vld [vmem:[%s8073_s0 + $0x470] sm:$0xff] }
  0x45   :  { %4726 = vst [vmem:[%s8074_s1 + $0x438] sm:$0xff] %v6114_v3  ;;  %v6178_v3 = vld [vmem:[%s8073_s0 + $0x170] sm:$0xff] }
  0x46   :  { %4732 = vst [vmem:[%s8074_s1 + $0x738] sm:$0xff] %v6115_v4  ;;  %v6179_v4 = vld [vmem:[%s8073_s0 + $0x670] sm:$0xff] }
  0x47   :  { %4738 = vst [vmem:[%s8074_s1 + $0x238] sm:$0xff] %v6116_v5  ;;  %v6180_v5 = vld [vmem:[%s8073_s0 + $0x370] sm:$0xff] }
  0x48   :  { %4744 = vst [vmem:[%s8074_s1 + $0x538] sm:$0xff] %v6117_v6  ;;  %v6181_v6 = vld [vmem:[%s8073_s0 + $0x70] sm:$0xff] }
  0x49   :  { %4750 = vst [vmem:[%s8074_s1 + $0x838] sm:$0xff] %v6118_v7  ;;  %v6182_v7 = vld [vmem:[%s8073_s0 + $0x878] sm:$0xff] }
  0x4a   :  { %4756 = vst [vmem:[%s8074_s1 + $0x40] sm:$0xff] %v6119_v8  ;;  %v6183_v8 = vld [vmem:[%s8073_s0 + $0x578] sm:$0xff] }
  0x4b   :  { %4762 = vst [vmem:[%s8074_s1 + $0x340] sm:$0xff] %v6120_v9  ;;  %v6184_v9 = vld [vmem:[%s8073_s0 + $0x278] sm:$0xff] }
  0x4c   :  { %4768 = vst [vmem:[%s8074_s1 + $0x640] sm:$0xff] %v6121_v10  ;;  %v6185_v10 = vld [vmem:[%s8073_s0 + $0x778] sm:$0xff] }
  0x4d   :  { %4774 = vst [vmem:[%s8074_s1 + $0x140] sm:$0xff] %v6122_v11  ;;  %v6186_v11 = vld [vmem:[%s8073_s0 + $0x478] sm:$0xff] }
  0x4e   :  { %4780 = vst [vmem:[%s8074_s1 + $0x440] sm:$0xff] %v6123_v12  ;;  %v6187_v12 = vld [vmem:[%s8073_s0 + $0x178] sm:$0xff] }
  0x4f   :  { %4786 = vst [vmem:[%s8074_s1 + $0x740] sm:$0xff] %v6124_v13  ;;  %v6188_v13 = vld [vmem:[%s8073_s0 + $0x678] sm:$0xff] }
  0x50   :  { %4792 = vst [vmem:[%s8074_s1 + $0x240] sm:$0xff] %v6125_v14  ;;  %v6189_v14 = vld [vmem:[%s8073_s0 + $0x378] sm:$0xff] }
  0x51   :  { %4798 = vst [vmem:[%s8074_s1 + $0x540] sm:$0xff] %v6126_v15  ;;  %v6190_v15 = vld [vmem:[%s8073_s0 + $0x78] sm:$0xff] }
  0x52   :  { %4804 = vst [vmem:[%s8074_s1 + $0x840] sm:$0xff] %v6127_v16  ;;  %v6191_v16 = vld [vmem:[%s8073_s0 + $0x880] sm:$0xff] }
  0x53   :  { %4810 = vst [vmem:[%s8074_s1 + $0x48] sm:$0xff] %v6128_v17  ;;  %v6192_v17 = vld [vmem:[%s8073_s0 + $0x580] sm:$0xff] }
  0x54   :  { %4816 = vst [vmem:[%s8074_s1 + $0x348] sm:$0xff] %v6129_v18  ;;  %v6193_v18 = vld [vmem:[%s8073_s0 + $0x280] sm:$0xff] }
  0x55   :  { %4822 = vst [vmem:[%s8074_s1 + $0x648] sm:$0xff] %v6130_v19  ;;  %v6194_v19 = vld [vmem:[%s8073_s0 + $0x780] sm:$0xff] }
  0x56   :  { %4828 = vst [vmem:[%s8074_s1 + $0x148] sm:$0xff] %v6131_v20  ;;  %v6195_v20 = vld [vmem:[%s8073_s0 + $0x480] sm:$0xff] }
  0x57   :  { %4834 = vst [vmem:[%s8074_s1 + $0x448] sm:$0xff] %v6132_v21  ;;  %v6196_v21 = vld [vmem:[%s8073_s0 + $0x180] sm:$0xff] }
  0x58   :  { %4840 = vst [vmem:[%s8074_s1 + $0x748] sm:$0xff] %v6133_v22  ;;  %v6197_v22 = vld [vmem:[%s8073_s0 + $0x680] sm:$0xff] }
  0x59   :  { %4846 = vst [vmem:[%s8074_s1 + $0x248] sm:$0xff] %v6134_v23  ;;  %v6198_v23 = vld [vmem:[%s8073_s0 + $0x380] sm:$0xff] }
  0x5a   :  { %4852 = vst [vmem:[%s8074_s1 + $0x548] sm:$0xff] %v6135_v24  ;;  %v6199_v24 = vld [vmem:[%s8073_s0 + $0x80] sm:$0xff] }
  0x5b   :  { %4858 = vst [vmem:[%s8074_s1 + $0x848] sm:$0xff] %v6136_v25  ;;  %v6200_v25 = vld [vmem:[%s8073_s0 + $0x888] sm:$0xff] }
  0x5c   :  { %4864 = vst [vmem:[%s8074_s1 + $0x50] sm:$0xff] %v6137_v26  ;;  %v6201_v26 = vld [vmem:[%s8073_s0 + $0x588] sm:$0xff] }
  0x5d   :  { %4870 = vst [vmem:[%s8074_s1 + $0x350] sm:$0xff] %v6138_v27  ;;  %v6202_v27 = vld [vmem:[%s8073_s0 + $0x288] sm:$0xff] }
  0x5e   :  { %4876 = vst [vmem:[%s8074_s1 + $0x650] sm:$0xff] %v6139_v28  ;;  %v6203_v28 = vld [vmem:[%s8073_s0 + $0x788] sm:$0xff] }
  0x5f   :  { %4882 = vst [vmem:[%s8074_s1 + $0x150] sm:$0xff] %v6140_v29  ;;  %v6204_v29 = vld [vmem:[%s8073_s0 + $0x488] sm:$0xff] }
  0x60   :  { %4888 = vst [vmem:[%s8074_s1 + $0x450] sm:$0xff] %v6141_v30  ;;  %v6205_v30 = vld [vmem:[%s8073_s0 + $0x188] sm:$0xff] }
  0x61   :  { %4894 = vst [vmem:[%s8074_s1 + $0x750] sm:$0xff] %v6142_v31  ;;  %v6206_v31 = vld [vmem:[%s8073_s0 + $0x688] sm:$0xff] }
  0x62   :  { %4900 = vst [vmem:[%s8074_s1 + $0x250] sm:$0xff] %v6143_v32  ;;  %v6207_v32 = vld [vmem:[%s8073_s0 + $0x388] sm:$0xff] }
  0x63   :  { %4906 = vst [vmem:[%s8074_s1 + $0x550] sm:$0xff] %v6144_v33  ;;  %v6208_v33 = vld [vmem:[%s8073_s0 + $0x88] sm:$0xff] }
  0x64   :  { %4912 = vst [vmem:[%s8074_s1 + $0x850] sm:$0xff] %v6145_v34  ;;  %v6209_v34 = vld [vmem:[%s8073_s0 + $0x890] sm:$0xff] }
  0x65   :  { %4918 = vst [vmem:[%s8074_s1 + $0x58] sm:$0xff] %v6146_v35  ;;  %v6210_v35 = vld [vmem:[%s8073_s0 + $0x590] sm:$0xff] }
  0x66   :  { %4924 = vst [vmem:[%s8074_s1 + $0x358] sm:$0xff] %v6147_v36  ;;  %v6211_v36 = vld [vmem:[%s8073_s0 + $0x290] sm:$0xff] }
  0x67   :  { %4930 = vst [vmem:[%s8074_s1 + $0x658] sm:$0xff] %v6148_v37  ;;  %v6212_v37 = vld [vmem:[%s8073_s0 + $0x790] sm:$0xff] }
  0x68   :  { %4936 = vst [vmem:[%s8074_s1 + $0x158] sm:$0xff] %v6149_v38  ;;  %v6213_v38 = vld [vmem:[%s8073_s0 + $0x490] sm:$0xff] }
  0x69   :  { %4942 = vst [vmem:[%s8074_s1 + $0x458] sm:$0xff] %v6150_v39  ;;  %v6214_v39 = vld [vmem:[%s8073_s0 + $0x190] sm:$0xff] }
  0x6a   :  { %4948 = vst [vmem:[%s8074_s1 + $0x758] sm:$0xff] %v6151_v40  ;;  %v6215_v40 = vld [vmem:[%s8073_s0 + $0x690] sm:$0xff] }
  0x6b   :  { %4954 = vst [vmem:[%s8074_s1 + $0x258] sm:$0xff] %v6152_v41  ;;  %v6216_v41 = vld [vmem:[%s8073_s0 + $0x390] sm:$0xff] }
  0x6c   :  { %4960 = vst [vmem:[%s8074_s1 + $0x558] sm:$0xff] %v6153_v42  ;;  %v6217_v42 = vld [vmem:[%s8073_s0 + $0x90] sm:$0xff] }
  0x6d   :  { %4966 = vst [vmem:[%s8074_s1 + $0x858] sm:$0xff] %v6154_v43  ;;  %v6218_v43 = vld [vmem:[%s8073_s0 + $0x898] sm:$0xff] }
  0x6e   :  { %4972 = vst [vmem:[%s8074_s1 + $0x60] sm:$0xff] %v6155_v44  ;;  %v6219_v44 = vld [vmem:[%s8073_s0 + $0x598] sm:$0xff] }
  0x6f   :  { %4978 = vst [vmem:[%s8074_s1 + $0x360] sm:$0xff] %v6156_v45  ;;  %v6220_v45 = vld [vmem:[%s8073_s0 + $0x298] sm:$0xff] }
  0x70   :  { %4984 = vst [vmem:[%s8074_s1 + $0x660] sm:$0xff] %v6157_v46  ;;  %v6221_v46 = vld [vmem:[%s8073_s0 + $0x798] sm:$0xff] }
  0x71   :  { %4990 = vst [vmem:[%s8074_s1 + $0x160] sm:$0xff] %v6158_v47  ;;  %v6222_v47 = vld [vmem:[%s8073_s0 + $0x498] sm:$0xff] }
  0x72   :  { %4996 = vst [vmem:[%s8074_s1 + $0x460] sm:$0xff] %v6159_v48  ;;  %v6223_v48 = vld [vmem:[%s8073_s0 + $0x198] sm:$0xff] }
  0x73   :  { %5002 = vst [vmem:[%s8074_s1 + $0x760] sm:$0xff] %v6160_v49  ;;  %v6224_v49 = vld [vmem:[%s8073_s0 + $0x698] sm:$0xff] }
  0x74   :  { %5008 = vst [vmem:[%s8074_s1 + $0x260] sm:$0xff] %v6161_v50  ;;  %v6225_v50 = vld [vmem:[%s8073_s0 + $0x398] sm:$0xff] }
  0x75   :  { %5014 = vst [vmem:[%s8074_s1 + $0x560] sm:$0xff] %v6162_v51  ;;  %v6226_v51 = vld [vmem:[%s8073_s0 + $0x98] sm:$0xff] }
  0x76   :  { %5020 = vst [vmem:[%s8074_s1 + $0x860] sm:$0xff] %v6163_v52  ;;  %v6227_v52 = vld [vmem:[%s8073_s0 + $0x8a0] sm:$0xff] }
  0x77   :  { %5026 = vst [vmem:[%s8074_s1 + $0x68] sm:$0xff] %v6164_v53  ;;  %v6228_v53 = vld [vmem:[%s8073_s0 + $0x5a0] sm:$0xff] }
  0x78   :  { %5032 = vst [vmem:[%s8074_s1 + $0x368] sm:$0xff] %v6165_v54  ;;  %v6229_v54 = vld [vmem:[%s8073_s0 + $0x2a0] sm:$0xff] }
  0x79   :  { %5038 = vst [vmem:[%s8074_s1 + $0x668] sm:$0xff] %v6166_v55  ;;  %v6230_v55 = vld [vmem:[%s8073_s0 + $0x7a0] sm:$0xff] }
  0x7a   :  { %5044 = vst [vmem:[%s8074_s1 + $0x168] sm:$0xff] %v6167_v56  ;;  %v6231_v56 = vld [vmem:[%s8073_s0 + $0x4a0] sm:$0xff] }
  0x7b   :  { %5050 = vst [vmem:[%s8074_s1 + $0x468] sm:$0xff] %v6168_v57  ;;  %v6232_v57 = vld [vmem:[%s8073_s0 + $0x1a0] sm:$0xff] }
  0x7c   :  { %5056 = vst [vmem:[%s8074_s1 + $0x768] sm:$0xff] %v6169_v58  ;;  %v6233_v58 = vld [vmem:[%s8073_s0 + $0x6a0] sm:$0xff] }
  0x7d   :  { %5062 = vst [vmem:[%s8074_s1 + $0x268] sm:$0xff] %v6170_v59  ;;  %v6234_v59 = vld [vmem:[%s8073_s0 + $0x3a0] sm:$0xff] }
  0x7e   :  { %5068 = vst [vmem:[%s8074_s1 + $0x568] sm:$0xff] %v6171_v60  ;;  %v6235_v60 = vld [vmem:[%s8073_s0 + $0xa0] sm:$0xff] }
  0x7f   :  { %5074 = vst [vmem:[%s8074_s1 + $0x868] sm:$0xff] %v6172_v61  ;;  %v6236_v61 = vld [vmem:[%s8073_s0 + $0x8a8] sm:$0xff] }
  0x80   :  { %5080 = vst [vmem:[%s8074_s1 + $0x70] sm:$0xff] %v6173_v62  ;;  %v6237_v62 = vld [vmem:[%s8073_s0 + $0x5a8] sm:$0xff] }
  0x81   :  { %5086 = vst [vmem:[%s8074_s1 + $0x370] sm:$0xff] %v6174_v63  ;;  %v6238_v63 = vld [vmem:[%s8073_s0 + $0x2a8] sm:$0xff] }
  0x82   :  { %5092 = vst [vmem:[%s8074_s1 + $0x670] sm:$0xff] %v6175_v0  ;;  %v6239_v0 = vld [vmem:[%s8073_s0 + $0x7a8] sm:$0xff] }
  0x83   :  { %5098 = vst [vmem:[%s8074_s1 + $0x170] sm:$0xff] %v6176_v1  ;;  %v6240_v1 = vld [vmem:[%s8073_s0 + $0x4a8] sm:$0xff] }
  0x84   :  { %5104 = vst [vmem:[%s8074_s1 + $0x470] sm:$0xff] %v6177_v2  ;;  %v6241_v2 = vld [vmem:[%s8073_s0 + $0x1a8] sm:$0xff] }
  0x85   :  { %5110 = vst [vmem:[%s8074_s1 + $0x770] sm:$0xff] %v6178_v3  ;;  %v6242_v3 = vld [vmem:[%s8073_s0 + $0x6a8] sm:$0xff] }
  0x86   :  { %5116 = vst [vmem:[%s8074_s1 + $0x270] sm:$0xff] %v6179_v4  ;;  %v6243_v4 = vld [vmem:[%s8073_s0 + $0x3a8] sm:$0xff] }
  0x87   :  { %5122 = vst [vmem:[%s8074_s1 + $0x570] sm:$0xff] %v6180_v5  ;;  %v6244_v5 = vld [vmem:[%s8073_s0 + $0xa8] sm:$0xff] }
  0x88   :  { %5128 = vst [vmem:[%s8074_s1 + $0x870] sm:$0xff] %v6181_v6  ;;  %v6245_v6 = vld [vmem:[%s8073_s0 + $0x8b0] sm:$0xff] }
  0x89   :  { %5134 = vst [vmem:[%s8074_s1 + $0x78] sm:$0xff] %v6182_v7  ;;  %v6246_v7 = vld [vmem:[%s8073_s0 + $0x5b0] sm:$0xff] }
  0x8a   :  { %5140 = vst [vmem:[%s8074_s1 + $0x378] sm:$0xff] %v6183_v8  ;;  %v6247_v8 = vld [vmem:[%s8073_s0 + $0x2b0] sm:$0xff] }
  0x8b   :  { %5146 = vst [vmem:[%s8074_s1 + $0x678] sm:$0xff] %v6184_v9  ;;  %v6248_v9 = vld [vmem:[%s8073_s0 + $0x7b0] sm:$0xff] }
  0x8c   :  { %5152 = vst [vmem:[%s8074_s1 + $0x178] sm:$0xff] %v6185_v10  ;;  %v6249_v10 = vld [vmem:[%s8073_s0 + $0x4b0] sm:$0xff] }
  0x8d   :  { %5158 = vst [vmem:[%s8074_s1 + $0x478] sm:$0xff] %v6186_v11  ;;  %v6250_v11 = vld [vmem:[%s8073_s0 + $0x1b0] sm:$0xff] }
  0x8e   :  { %5164 = vst [vmem:[%s8074_s1 + $0x778] sm:$0xff] %v6187_v12  ;;  %v6251_v12 = vld [vmem:[%s8073_s0 + $0x6b0] sm:$0xff] }
  0x8f   :  { %5170 = vst [vmem:[%s8074_s1 + $0x278] sm:$0xff] %v6188_v13  ;;  %v6252_v13 = vld [vmem:[%s8073_s0 + $0x3b0] sm:$0xff] }
  0x90   :  { %5176 = vst [vmem:[%s8074_s1 + $0x578] sm:$0xff] %v6189_v14  ;;  %v6253_v14 = vld [vmem:[%s8073_s0 + $0xb0] sm:$0xff] }
  0x91   :  { %5182 = vst [vmem:[%s8074_s1 + $0x878] sm:$0xff] %v6190_v15  ;;  %v6254_v15 = vld [vmem:[%s8073_s0 + $0x8b8] sm:$0xff] }
  0x92   :  { %5188 = vst [vmem:[%s8074_s1 + $0x80] sm:$0xff] %v6191_v16  ;;  %v6255_v16 = vld [vmem:[%s8073_s0 + $0x5b8] sm:$0xff] }
  0x93   :  { %5194 = vst [vmem:[%s8074_s1 + $0x380] sm:$0xff] %v6192_v17  ;;  %v6256_v17 = vld [vmem:[%s8073_s0 + $0x2b8] sm:$0xff] }
  0x94   :  { %5200 = vst [vmem:[%s8074_s1 + $0x680] sm:$0xff] %v6193_v18  ;;  %v6257_v18 = vld [vmem:[%s8073_s0 + $0x7b8] sm:$0xff] }
  0x95   :  { %5206 = vst [vmem:[%s8074_s1 + $0x180] sm:$0xff] %v6194_v19  ;;  %v6258_v19 = vld [vmem:[%s8073_s0 + $0x4b8] sm:$0xff] }
  0x96   :  { %5212 = vst [vmem:[%s8074_s1 + $0x480] sm:$0xff] %v6195_v20  ;;  %v6259_v20 = vld [vmem:[%s8073_s0 + $0x1b8] sm:$0xff] }
  0x97   :  { %5218 = vst [vmem:[%s8074_s1 + $0x780] sm:$0xff] %v6196_v21  ;;  %v6260_v21 = vld [vmem:[%s8073_s0 + $0x6b8] sm:$0xff] }
  0x98   :  { %5224 = vst [vmem:[%s8074_s1 + $0x280] sm:$0xff] %v6197_v22  ;;  %v6261_v22 = vld [vmem:[%s8073_s0 + $0x3b8] sm:$0xff] }
  0x99   :  { %5230 = vst [vmem:[%s8074_s1 + $0x580] sm:$0xff] %v6198_v23  ;;  %v6262_v23 = vld [vmem:[%s8073_s0 + $0xb8] sm:$0xff] }
  0x9a   :  { %5236 = vst [vmem:[%s8074_s1 + $0x880] sm:$0xff] %v6199_v24  ;;  %v6263_v24 = vld [vmem:[%s8073_s0 + $0x8c0] sm:$0xff] }
  0x9b   :  { %5242 = vst [vmem:[%s8074_s1 + $0x88] sm:$0xff] %v6200_v25  ;;  %v6264_v25 = vld [vmem:[%s8073_s0 + $0x5c0] sm:$0xff] }
  0x9c   :  { %5248 = vst [vmem:[%s8074_s1 + $0x388] sm:$0xff] %v6201_v26  ;;  %v6265_v26 = vld [vmem:[%s8073_s0 + $0x2c0] sm:$0xff] }
  0x9d   :  { %5254 = vst [vmem:[%s8074_s1 + $0x688] sm:$0xff] %v6202_v27  ;;  %v6266_v27 = vld [vmem:[%s8073_s0 + $0x7c0] sm:$0xff] }
  0x9e   :  { %5260 = vst [vmem:[%s8074_s1 + $0x188] sm:$0xff] %v6203_v28  ;;  %v6267_v28 = vld [vmem:[%s8073_s0 + $0x4c0] sm:$0xff] }
  0x9f   :  { %5266 = vst [vmem:[%s8074_s1 + $0x488] sm:$0xff] %v6204_v29  ;;  %v6268_v29 = vld [vmem:[%s8073_s0 + $0x1c0] sm:$0xff] }
  0xa0   :  { %5272 = vst [vmem:[%s8074_s1 + $0x788] sm:$0xff] %v6205_v30  ;;  %v6269_v30 = vld [vmem:[%s8073_s0 + $0x6c0] sm:$0xff] }
  0xa1   :  { %5278 = vst [vmem:[%s8074_s1 + $0x288] sm:$0xff] %v6206_v31  ;;  %v6270_v31 = vld [vmem:[%s8073_s0 + $0x3c0] sm:$0xff] }
  0xa2   :  { %5284 = vst [vmem:[%s8074_s1 + $0x588] sm:$0xff] %v6207_v32  ;;  %v6271_v32 = vld [vmem:[%s8073_s0 + $0xc0] sm:$0xff] }
  0xa3   :  { %5290 = vst [vmem:[%s8074_s1 + $0x888] sm:$0xff] %v6208_v33  ;;  %v6272_v33 = vld [vmem:[%s8073_s0 + $0x8c8] sm:$0xff] }
  0xa4   :  { %5296 = vst [vmem:[%s8074_s1 + $0x90] sm:$0xff] %v6209_v34  ;;  %v6273_v34 = vld [vmem:[%s8073_s0 + $0x5c8] sm:$0xff] }
  0xa5   :  { %5302 = vst [vmem:[%s8074_s1 + $0x390] sm:$0xff] %v6210_v35  ;;  %v6274_v35 = vld [vmem:[%s8073_s0 + $0x2c8] sm:$0xff] }
  0xa6   :  { %5308 = vst [vmem:[%s8074_s1 + $0x690] sm:$0xff] %v6211_v36  ;;  %v6275_v36 = vld [vmem:[%s8073_s0 + $0x7c8] sm:$0xff] }
  0xa7   :  { %5314 = vst [vmem:[%s8074_s1 + $0x190] sm:$0xff] %v6212_v37  ;;  %v6276_v37 = vld [vmem:[%s8073_s0 + $0x4c8] sm:$0xff] }
  0xa8   :  { %5320 = vst [vmem:[%s8074_s1 + $0x490] sm:$0xff] %v6213_v38  ;;  %v6277_v38 = vld [vmem:[%s8073_s0 + $0x1c8] sm:$0xff] }
  0xa9   :  { %5326 = vst [vmem:[%s8074_s1 + $0x790] sm:$0xff] %v6214_v39  ;;  %v6278_v39 = vld [vmem:[%s8073_s0 + $0x6c8] sm:$0xff] }
  0xaa   :  { %5332 = vst [vmem:[%s8074_s1 + $0x290] sm:$0xff] %v6215_v40  ;;  %v6279_v40 = vld [vmem:[%s8073_s0 + $0x3c8] sm:$0xff] }
  0xab   :  { %5338 = vst [vmem:[%s8074_s1 + $0x590] sm:$0xff] %v6216_v41  ;;  %v6280_v41 = vld [vmem:[%s8073_s0 + $0xc8] sm:$0xff] }
  0xac   :  { %5344 = vst [vmem:[%s8074_s1 + $0x890] sm:$0xff] %v6217_v42  ;;  %v6281_v42 = vld [vmem:[%s8073_s0 + $0x8d0] sm:$0xff] }
  0xad   :  { %5350 = vst [vmem:[%s8074_s1 + $0x98] sm:$0xff] %v6218_v43  ;;  %v6282_v43 = vld [vmem:[%s8073_s0 + $0x5d0] sm:$0xff] }
  0xae   :  { %5356 = vst [vmem:[%s8074_s1 + $0x398] sm:$0xff] %v6219_v44  ;;  %v6283_v44 = vld [vmem:[%s8073_s0 + $0x2d0] sm:$0xff] }
  0xaf   :  { %5362 = vst [vmem:[%s8074_s1 + $0x698] sm:$0xff] %v6220_v45  ;;  %v6284_v45 = vld [vmem:[%s8073_s0 + $0x7d0] sm:$0xff] }
  0xb0   :  { %5368 = vst [vmem:[%s8074_s1 + $0x198] sm:$0xff] %v6221_v46  ;;  %v6285_v46 = vld [vmem:[%s8073_s0 + $0x4d0] sm:$0xff] }
  0xb1   :  { %5374 = vst [vmem:[%s8074_s1 + $0x498] sm:$0xff] %v6222_v47  ;;  %v6286_v47 = vld [vmem:[%s8073_s0 + $0x1d0] sm:$0xff] }
  0xb2   :  { %5380 = vst [vmem:[%s8074_s1 + $0x798] sm:$0xff] %v6223_v48  ;;  %v6287_v48 = vld [vmem:[%s8073_s0 + $0x6d0] sm:$0xff] }
  0xb3   :  { %5386 = vst [vmem:[%s8074_s1 + $0x298] sm:$0xff] %v6224_v49  ;;  %v6288_v49 = vld [vmem:[%s8073_s0 + $0x3d0] sm:$0xff] }
  0xb4   :  { %5392 = vst [vmem:[%s8074_s1 + $0x598] sm:$0xff] %v6225_v50  ;;  %v6289_v50 = vld [vmem:[%s8073_s0 + $0xd0] sm:$0xff] }
  0xb5   :  { %5398 = vst [vmem:[%s8074_s1 + $0x898] sm:$0xff] %v6226_v51  ;;  %v6290_v51 = vld [vmem:[%s8073_s0 + $0x8d8] sm:$0xff] }
  0xb6   :  { %5404 = vst [vmem:[%s8074_s1 + $0xa0] sm:$0xff] %v6227_v52  ;;  %v6291_v52 = vld [vmem:[%s8073_s0 + $0x5d8] sm:$0xff] }
  0xb7   :  { %5410 = vst [vmem:[%s8074_s1 + $0x3a0] sm:$0xff] %v6228_v53  ;;  %v6292_v53 = vld [vmem:[%s8073_s0 + $0x2d8] sm:$0xff] }
  0xb8   :  { %5416 = vst [vmem:[%s8074_s1 + $0x6a0] sm:$0xff] %v6229_v54  ;;  %v6293_v54 = vld [vmem:[%s8073_s0 + $0x7d8] sm:$0xff] }
  0xb9   :  { %5422 = vst [vmem:[%s8074_s1 + $0x1a0] sm:$0xff] %v6230_v55  ;;  %v6294_v55 = vld [vmem:[%s8073_s0 + $0x4d8] sm:$0xff] }
  0xba   :  { %5428 = vst [vmem:[%s8074_s1 + $0x4a0] sm:$0xff] %v6231_v56  ;;  %v6295_v56 = vld [vmem:[%s8073_s0 + $0x1d8] sm:$0xff] }
  0xbb   :  { %5434 = vst [vmem:[%s8074_s1 + $0x7a0] sm:$0xff] %v6232_v57  ;;  %v6296_v57 = vld [vmem:[%s8073_s0 + $0x6d8] sm:$0xff] }
  0xbc   :  { %5440 = vst [vmem:[%s8074_s1 + $0x2a0] sm:$0xff] %v6233_v58  ;;  %v6297_v58 = vld [vmem:[%s8073_s0 + $0x3d8] sm:$0xff] }
  0xbd   :  { %5446 = vst [vmem:[%s8074_s1 + $0x5a0] sm:$0xff] %v6234_v59  ;;  %v6298_v59 = vld [vmem:[%s8073_s0 + $0xd8] sm:$0xff] }
  0xbe   :  { %5452 = vst [vmem:[%s8074_s1 + $0x8a0] sm:$0xff] %v6235_v60  ;;  %v6299_v60 = vld [vmem:[%s8073_s0 + $0x8e0] sm:$0xff] }
  0xbf   :  { %5458 = vst [vmem:[%s8074_s1 + $0xa8] sm:$0xff] %v6236_v61  ;;  %v6300_v61 = vld [vmem:[%s8073_s0 + $0x5e0] sm:$0xff] }
  0xc0   :  { %5464 = vst [vmem:[%s8074_s1 + $0x3a8] sm:$0xff] %v6237_v62  ;;  %v6301_v62 = vld [vmem:[%s8073_s0 + $0x2e0] sm:$0xff] }
  0xc1   :  { %5470 = vst [vmem:[%s8074_s1 + $0x6a8] sm:$0xff] %v6238_v63  ;;  %v6302_v63 = vld [vmem:[%s8073_s0 + $0x7e0] sm:$0xff] }
  0xc2   :  { %5476 = vst [vmem:[%s8074_s1 + $0x1a8] sm:$0xff] %v6239_v0  ;;  %v6303_v0 = vld [vmem:[%s8073_s0 + $0x4e0] sm:$0xff] }
  0xc3   :  { %5482 = vst [vmem:[%s8074_s1 + $0x4a8] sm:$0xff] %v6240_v1  ;;  %v6304_v1 = vld [vmem:[%s8073_s0 + $0x1e0] sm:$0xff] }
  0xc4   :  { %5488 = vst [vmem:[%s8074_s1 + $0x7a8] sm:$0xff] %v6241_v2  ;;  %v6305_v2 = vld [vmem:[%s8073_s0 + $0x6e0] sm:$0xff] }
  0xc5   :  { %5494 = vst [vmem:[%s8074_s1 + $0x2a8] sm:$0xff] %v6242_v3  ;;  %v6306_v3 = vld [vmem:[%s8073_s0 + $0x3e0] sm:$0xff] }
  0xc6   :  { %5500 = vst [vmem:[%s8074_s1 + $0x5a8] sm:$0xff] %v6243_v4  ;;  %v6307_v4 = vld [vmem:[%s8073_s0 + $0xe0] sm:$0xff] }
  0xc7   :  { %5506 = vst [vmem:[%s8074_s1 + $0x8a8] sm:$0xff] %v6244_v5  ;;  %v6308_v5 = vld [vmem:[%s8073_s0 + $0x8e8] sm:$0xff] }
  0xc8   :  { %5512 = vst [vmem:[%s8074_s1 + $0xb0] sm:$0xff] %v6245_v6  ;;  %v6309_v6 = vld [vmem:[%s8073_s0 + $0x5e8] sm:$0xff] }
  0xc9   :  { %5518 = vst [vmem:[%s8074_s1 + $0x3b0] sm:$0xff] %v6246_v7  ;;  %v6310_v7 = vld [vmem:[%s8073_s0 + $0x2e8] sm:$0xff] }
  0xca   :  { %5524 = vst [vmem:[%s8074_s1 + $0x6b0] sm:$0xff] %v6247_v8  ;;  %v6311_v8 = vld [vmem:[%s8073_s0 + $0x7e8] sm:$0xff] }
  0xcb   :  { %5530 = vst [vmem:[%s8074_s1 + $0x1b0] sm:$0xff] %v6248_v9  ;;  %v6312_v9 = vld [vmem:[%s8073_s0 + $0x4e8] sm:$0xff] }
  0xcc   :  { %5536 = vst [vmem:[%s8074_s1 + $0x4b0] sm:$0xff] %v6249_v10  ;;  %v6313_v10 = vld [vmem:[%s8073_s0 + $0x1e8] sm:$0xff] }
  0xcd   :  { %5542 = vst [vmem:[%s8074_s1 + $0x7b0] sm:$0xff] %v6250_v11  ;;  %v6314_v11 = vld [vmem:[%s8073_s0 + $0x6e8] sm:$0xff] }
  0xce   :  { %5548 = vst [vmem:[%s8074_s1 + $0x2b0] sm:$0xff] %v6251_v12  ;;  %v6315_v12 = vld [vmem:[%s8073_s0 + $0x3e8] sm:$0xff] }
  0xcf   :  { %5554 = vst [vmem:[%s8074_s1 + $0x5b0] sm:$0xff] %v6252_v13  ;;  %v6316_v13 = vld [vmem:[%s8073_s0 + $0xe8] sm:$0xff] }
  0xd0   :  { %5560 = vst [vmem:[%s8074_s1 + $0x8b0] sm:$0xff] %v6253_v14  ;;  %v6317_v14 = vld [vmem:[%s8073_s0 + $0x8f0] sm:$0xff] }
  0xd1   :  { %5566 = vst [vmem:[%s8074_s1 + $0xb8] sm:$0xff] %v6254_v15  ;;  %v6318_v15 = vld [vmem:[%s8073_s0 + $0x5f0] sm:$0xff] }
  0xd2   :  { %5572 = vst [vmem:[%s8074_s1 + $0x3b8] sm:$0xff] %v6255_v16  ;;  %v6319_v16 = vld [vmem:[%s8073_s0 + $0x2f0] sm:$0xff] }
  0xd3   :  { %5578 = vst [vmem:[%s8074_s1 + $0x6b8] sm:$0xff] %v6256_v17  ;;  %v6320_v17 = vld [vmem:[%s8073_s0 + $0x7f0] sm:$0xff] }
  0xd4   :  { %5584 = vst [vmem:[%s8074_s1 + $0x1b8] sm:$0xff] %v6257_v18  ;;  %v6321_v18 = vld [vmem:[%s8073_s0 + $0x4f0] sm:$0xff] }
  0xd5   :  { %5590 = vst [vmem:[%s8074_s1 + $0x4b8] sm:$0xff] %v6258_v19  ;;  %v6322_v19 = vld [vmem:[%s8073_s0 + $0x1f0] sm:$0xff] }
  0xd6   :  { %5596 = vst [vmem:[%s8074_s1 + $0x7b8] sm:$0xff] %v6259_v20  ;;  %v6323_v20 = vld [vmem:[%s8073_s0 + $0x6f0] sm:$0xff] }
  0xd7   :  { %5602 = vst [vmem:[%s8074_s1 + $0x2b8] sm:$0xff] %v6260_v21  ;;  %v6324_v21 = vld [vmem:[%s8073_s0 + $0x3f0] sm:$0xff] }
  0xd8   :  { %5608 = vst [vmem:[%s8074_s1 + $0x5b8] sm:$0xff] %v6261_v22  ;;  %v6325_v22 = vld [vmem:[%s8073_s0 + $0xf0] sm:$0xff] }
  0xd9   :  { %5614 = vst [vmem:[%s8074_s1 + $0x8b8] sm:$0xff] %v6262_v23  ;;  %v6326_v23 = vld [vmem:[%s8073_s0 + $0x8f8] sm:$0xff] }
  0xda   :  { %5620 = vst [vmem:[%s8074_s1 + $0xc0] sm:$0xff] %v6263_v24  ;;  %v6327_v24 = vld [vmem:[%s8073_s0 + $0x5f8] sm:$0xff] }
  0xdb   :  { %5626 = vst [vmem:[%s8074_s1 + $0x3c0] sm:$0xff] %v6264_v25  ;;  %v6328_v25 = vld [vmem:[%s8073_s0 + $0x2f8] sm:$0xff] }
  0xdc   :  { %5632 = vst [vmem:[%s8074_s1 + $0x6c0] sm:$0xff] %v6265_v26  ;;  %v6329_v26 = vld [vmem:[%s8073_s0 + $0x7f8] sm:$0xff] }
  0xdd   :  { %5638 = vst [vmem:[%s8074_s1 + $0x1c0] sm:$0xff] %v6266_v27  ;;  %v6330_v27 = vld [vmem:[%s8073_s0 + $0x4f8] sm:$0xff] }
  0xde   :  { %5644 = vst [vmem:[%s8074_s1 + $0x4c0] sm:$0xff] %v6267_v28  ;;  %v6331_v28 = vld [vmem:[%s8073_s0 + $0x1f8] sm:$0xff] }
  0xdf   :  { %5650 = vst [vmem:[%s8074_s1 + $0x7c0] sm:$0xff] %v6268_v29  ;;  %v6332_v29 = vld [vmem:[%s8073_s0 + $0x6f8] sm:$0xff] }
  0xe0   :  { %5656 = vst [vmem:[%s8074_s1 + $0x2c0] sm:$0xff] %v6269_v30  ;;  %v6333_v30 = vld [vmem:[%s8073_s0 + $0x3f8] sm:$0xff] }
  0xe1   :  { %5662 = vst [vmem:[%s8074_s1 + $0x5c0] sm:$0xff] %v6270_v31  ;;  %v6334_v31 = vld [vmem:[%s8073_s0 + $0xf8] sm:$0xff] }
  0xe2   :  { %5668 = vst [vmem:[%s8074_s1 + $0x8c0] sm:$0xff] %v6271_v32 }
  0xe3   :  { %5674 = vst [vmem:[%s8074_s1 + $0xc8] sm:$0xff] %v6272_v33 }
  0xe4   :  { %5680 = vst [vmem:[%s8074_s1 + $0x3c8] sm:$0xff] %v6273_v34 }
  0xe5   :  { %5686 = vst [vmem:[%s8074_s1 + $0x6c8] sm:$0xff] %v6274_v35 }
  0xe6   :  { %5692 = vst [vmem:[%s8074_s1 + $0x1c8] sm:$0xff] %v6275_v36 }
  0xe7   :  { %5698 = vst [vmem:[%s8074_s1 + $0x4c8] sm:$0xff] %v6276_v37 }
  0xe8   :  { %5704 = vst [vmem:[%s8074_s1 + $0x7c8] sm:$0xff] %v6277_v38 }
  0xe9   :  { %5710 = vst [vmem:[%s8074_s1 + $0x2c8] sm:$0xff] %v6278_v39 }
  0xea   :  { %5716 = vst [vmem:[%s8074_s1 + $0x5c8] sm:$0xff] %v6279_v40 }
  0xeb   :  { %5722 = vst [vmem:[%s8074_s1 + $0x8c8] sm:$0xff] %v6280_v41 }
  0xec   :  { %5728 = vst [vmem:[%s8074_s1 + $0xd0] sm:$0xff] %v6281_v42 }
  0xed   :  { %5734 = vst [vmem:[%s8074_s1 + $0x3d0] sm:$0xff] %v6282_v43 }
  0xee   :  { %5740 = vst [vmem:[%s8074_s1 + $0x6d0] sm:$0xff] %v6283_v44 }
  0xef   :  { %5746 = vst [vmem:[%s8074_s1 + $0x1d0] sm:$0xff] %v6284_v45 }
  0xf0   :  { %5752 = vst [vmem:[%s8074_s1 + $0x4d0] sm:$0xff] %v6285_v46 }
  0xf1   :  { %5758 = vst [vmem:[%s8074_s1 + $0x7d0] sm:$0xff] %v6286_v47 }
  0xf2   :  { %5764 = vst [vmem:[%s8074_s1 + $0x2d0] sm:$0xff] %v6287_v48 }
  0xf3   :  { %5770 = vst [vmem:[%s8074_s1 + $0x5d0] sm:$0xff] %v6288_v49 }
  0xf4   :  { %5776 = vst [vmem:[%s8074_s1 + $0x8d0] sm:$0xff] %v6289_v50 }
  0xf5   :  { %5782 = vst [vmem:[%s8074_s1 + $0xd8] sm:$0xff] %v6290_v51 }
  0xf6   :  { %5788 = vst [vmem:[%s8074_s1 + $0x3d8] sm:$0xff] %v6291_v52 }
  0xf7   :  { %5794 = vst [vmem:[%s8074_s1 + $0x6d8] sm:$0xff] %v6292_v53 }
  0xf8   :  { %5800 = vst [vmem:[%s8074_s1 + $0x1d8] sm:$0xff] %v6293_v54 }
  0xf9   :  { %5806 = vst [vmem:[%s8074_s1 + $0x4d8] sm:$0xff] %v6294_v55 }
  0xfa   :  { %5812 = vst [vmem:[%s8074_s1 + $0x7d8] sm:$0xff] %v6295_v56 }
  0xfb   :  { %5818 = vst [vmem:[%s8074_s1 + $0x2d8] sm:$0xff] %v6296_v57 }
  0xfc   :  { %5824 = vst [vmem:[%s8074_s1 + $0x5d8] sm:$0xff] %v6297_v58 }
  0xfd   :  { %5830 = vst [vmem:[%s8074_s1 + $0x8d8] sm:$0xff] %v6298_v59 }
  0xfe   :  { %5836 = vst [vmem:[%s8074_s1 + $0xe0] sm:$0xff] %v6299_v60 }
  0xff   :  { %5842 = vst [vmem:[%s8074_s1 + $0x3e0] sm:$0xff] %v6300_v61 }
 0x100   :  { %5848 = vst [vmem:[%s8074_s1 + $0x6e0] sm:$0xff] %v6301_v62 }
 0x101   :  { %5854 = vst [vmem:[%s8074_s1 + $0x1e0] sm:$0xff] %v6302_v63 }
 0x102   :  { %5860 = vst [vmem:[%s8074_s1 + $0x4e0] sm:$0xff] %v6303_v0 }
 0x103   :  { %5866 = vst [vmem:[%s8074_s1 + $0x7e0] sm:$0xff] %v6304_v1 }
 0x104   :  { %5872 = vst [vmem:[%s8074_s1 + $0x2e0] sm:$0xff] %v6305_v2 }
 0x105   :  { %5878 = vst [vmem:[%s8074_s1 + $0x5e0] sm:$0xff] %v6306_v3 }
 0x106   :  { %5884 = vst [vmem:[%s8074_s1 + $0x8e0] sm:$0xff] %v6307_v4 }
 0x107   :  { %5890 = vst [vmem:[%s8074_s1 + $0xe8] sm:$0xff] %v6308_v5 }
 0x108   :  { %5896 = vst [vmem:[%s8074_s1 + $0x3e8] sm:$0xff] %v6309_v6 }
 0x109   :  { %5902 = vst [vmem:[%s8074_s1 + $0x6e8] sm:$0xff] %v6310_v7 }
 0x10a   :  { %5908 = vst [vmem:[%s8074_s1 + $0x1e8] sm:$0xff] %v6311_v8 }
 0x10b   :  { %5914 = vst [vmem:[%s8074_s1 + $0x4e8] sm:$0xff] %v6312_v9 }
 0x10c   :  { %5920 = vst [vmem:[%s8074_s1 + $0x7e8] sm:$0xff] %v6313_v10 }
 0x10d   :  { %5926 = vst [vmem:[%s8074_s1 + $0x2e8] sm:$0xff] %v6314_v11 }
 0x10e   :  { %5932 = vst [vmem:[%s8074_s1 + $0x5e8] sm:$0xff] %v6315_v12 }
 0x10f   :  { %5938 = vst [vmem:[%s8074_s1 + $0x8e8] sm:$0xff] %v6316_v13 }
 0x110   :  { %5944 = vst [vmem:[%s8074_s1 + $0xf0] sm:$0xff] %v6317_v14 }
 0x111   :  { %5950 = vst [vmem:[%s8074_s1 + $0x3f0] sm:$0xff] %v6318_v15 }
 0x112   :  { %5956 = vst [vmem:[%s8074_s1 + $0x6f0] sm:$0xff] %v6319_v16 }
 0x113   :  { %5962 = vst [vmem:[%s8074_s1 + $0x1f0] sm:$0xff] %v6320_v17 }
 0x114   :  { %5968 = vst [vmem:[%s8074_s1 + $0x4f0] sm:$0xff] %v6321_v18 }
 0x115   :  { %5974 = vst [vmem:[%s8074_s1 + $0x7f0] sm:$0xff] %v6322_v19 }
 0x116   :  { %5980 = vst [vmem:[%s8074_s1 + $0x2f0] sm:$0xff] %v6323_v20 }
 0x117   :  { %5986 = vst [vmem:[%s8074_s1 + $0x5f0] sm:$0xff] %v6324_v21 }
 0x118   :  { %5992 = vst [vmem:[%s8074_s1 + $0x8f0] sm:$0xff] %v6325_v22 }
 0x119   :  { %5998 = vst [vmem:[%s8074_s1 + $0xf8] sm:$0xff] %v6326_v23 }
 0x11a   :  { %6004 = vst [vmem:[%s8074_s1 + $0x3f8] sm:$0xff] %v6327_v24 }
 0x11b   :  { %6010 = vst [vmem:[%s8074_s1 + $0x6f8] sm:$0xff] %v6328_v25 }
 0x11c   :  { %6016 = vst [vmem:[%s8074_s1 + $0x1f8] sm:$0xff] %v6329_v26 }
 0x11d   :  { %6022 = vst [vmem:[%s8074_s1 + $0x4f8] sm:$0xff] %v6330_v27 }
 0x11e   :  { %6028 = vst [vmem:[%s8074_s1 + $0x7f8] sm:$0xff] %v6331_v28 }
 0x11f   :  { %6034 = vst [vmem:[%s8074_s1 + $0x2f8] sm:$0xff] %v6332_v29 }
 0x120   :  { %6040 = vst [vmem:[%s8074_s1 + $0x5f8] sm:$0xff] %v6333_v30 }
 0x121   :  { %6046 = vst [vmem:[%s8074_s1 + $0x8f8] sm:$0xff] %v6334_v31 }

// kernel: reverse.5
= control target key start
LH: loop header
LB: loop body
LE: loop exit
PB: predicated region body
PF: predicated region fallthrough
CT: control target
= control target key end

     0   :  { %s2110_s6 = smov 0   ;;  %s2112_s7 = smov 0   ;;  %s2426_s0 = inlined_call_operand.vmem [shape: bf16[3,3,512,512], index: 0, kind: input, shape index: {}]   ;;  %s2427_s1 = inlined_call_operand.vmem [shape: bf16[3,3,512,512], index: 1, kind: output, shape index: {}]  }
   0x1   :  { %s2114_s8 = smov 0   ;;  %s2116_s9 = smov 0  }
   0x2   :  { %s2118_s10 = smov 0   ;;  %s2120_s11 = smov 0  }
   0x3   :  { %s2122_s12 = smov 0   ;;  %s2124_s13 = smov 0  }
   0x4   :  { %s2126_s14 = smov 0   ;;  %s2128_s15 = smov 0  }
   0x5   :  { %s2130_s16 = smov 0   ;;  %s2132_s17 = smov 0  }
   0x6   :  { %s2134_s18 = smov 0   ;;  %s2136_s19 = smov 0  }
   0x7   :  { %s2138_s20 = smov 0   ;;  %s2140_s21 = smov 0  }
   0x8   :  { %s2142_s22 = smov 0   ;;  %s2144_s23 = smov 0  }
   0x9   :  { %s2146_s24 = smov 0  }
   0xa LB: > { %s65_s25 = sadd.s32 1, %s2086_s21  ;;  %s69_s26 = sadd.s32 1, %s2090_s22  ;;  %s2098_s24 = sphi %s2146_s24, %s7_s24   ;;  %s2094_s23 = sphi %s2144_s23, %s2446_s23   ;;  %s2090_s22 = sphi %s2142_s22, %s2445_s22   ;;  %s2086_s21 = sphi %s2140_s21, %s2444_s21   ;;  %s2082_s20 = sphi %s2138_s20, %s2443_s20   ;;  %s2078_s19 = sphi %s2136_s19, %s2442_s19   ;;  %s2074_s18 = sphi %s2134_s18, %s2441_s18   ;;  %s2070_s17 = sphi %s2132_s17, %s2440_s17   ;;  %s2066_s16 = sphi %s2130_s16, %s2439_s16   ;;  %s2062_s15 = sphi %s2128_s15, %s2438_s15   ;;  %s2058_s14 = sphi %s2126_s14, %s2437_s14   ;;  %s2054_s13 = sphi %s2124_s13, %s2436_s13   ;;  %s2050_s12 = sphi %s2122_s12, %s2435_s12   ;;  %s2046_s11 = sphi %s2120_s11, %s2434_s11   ;;  %s2042_s10 = sphi %s2118_s10, %s2433_s10   ;;  %s2038_s9 = sphi %s2116_s9, %s2432_s9   ;;  %s2034_s8 = sphi %s2114_s8, %s2431_s8   ;;  %s2030_s7 = sphi %s2112_s7, %s2430_s7   ;;  %s2026_s6 = sphi %s2110_s6, %s2429_s6  }
   0xb   : > { %p67_p0 = scmp.ge.s32.totalorder %s65_s25, 2  ;;  %p1271_p1 = scmp.ge.s32.totalorder %s2098_s24, 5 }
   0xc   : > { %p113_p2 = scmp.lt.s32.totalorder %s2098_s24, 23  ;;  %s73_s27 = sadd.s32 1, %s2094_s23 }
   0xd   : > { %s2448_s25 = smov (%p67_p0, %s65_s25), 0  ;;  %s2450_s26 = smov (!%p67_p0, %s69_s26), %s2090_s22 }
   0xe   : > { %p114_p3 = pnand %p1271_p1, %p113_p2  ;;  %p71_p4 = scmp.ge.s32.totalorder %s2450_s26, 3 }
   0xf   : > { %s159_s28 = ssub.s32 (!%p114_p3), 2, %s2034_s8  ;;  %s160_s29 = ssub.s32 (!%p114_p3), 2, %s2030_s7 }
  0x10   : > { %s2452_s26 = smov (%p71_p4, %s2450_s26), 0  ;;  %s2454_s27 = smov (!%p71_p4, %s73_s27), %s2094_s23 }
  0x11   : > { %p75_p5 = scmp.ge.s32.totalorder %s2454_s27, 3  ;;  %117 = sbr.rel (%p114_p3) target bundleno = 97 (0x61), region = 20 }
  0x12   : > { %s1272_s30 = sshll.u32 (!%p114_p3), %s2026_s6, 5  ;;  %p163_p6 = scmp.lt.s32.totalorder (!%p114_p3), %s159_s28, 2 }
  0x13   : > { %s2456_s27 = smov (%p75_p5, %s2454_s27), 0  ;;  %p165_p7 = scmp.lt.s32.totalorder (!%p114_p3), %s160_s29, 2 }
  0x14   : > { %p167_p8 = scmp.lt.s32.totalorder (!%p114_p3), %s1272_s30, 63  ;;  %p185_p9 = scmp.lt.s32.totalorder (!%p114_p3), %s2034_s8, 2 }
  0x15   : > { %p187_p10 = scmp.lt.s32.totalorder (!%p114_p3), %s2030_s7, 2 }
  0x16   : > { %s2458_s28 = smov (!%p163_p6, %s159_s28), 2  ;;  %s2460_s29 = smov (!%p165_p7, %s160_s29), 2 }
  0x17   : > { %s2462_s30 = smov (!%p167_p8, %s1272_s30), 63  ;;  %s1274_s2 = sshll.u32 %s2460_s29, 8 }
  0x18   : > { %s1794_s3 = smul.u32 768, %s2458_s28  ;;  %s1273_s4 = sshll.u32 %s2462_s30, 2 }
  0x19   : > { %s174_s5 = sadd.s32 %s1274_s2, %s1273_s4  ;;  %s2464_s8 = smov (!%p185_p9, %s2034_s8), 2 }
  0x1a   : > { %s176_s6 = sadd.s32 %s1794_s3, %s174_s5  ;;  %s2466_s7 = smov (!%p187_p10, %s2030_s7), 2 }
  0x1b   : > { %s1275_s28 = sshll.u32 %s176_s6, 2  ;;  %s1795_s8 = smul.u32 768, %s2464_s8 }
  0x1c   : > { %s2226_s2 = scalar_lea.vmem %s2426_s0, %s1275_s28  ;;  %s1278_s7 = sshll.u32 %s2466_s7, 8 }
  0x1d   : > { %s196_s3 = sadd.s32 %s1278_s7, %s1273_s4  ;;  %v1730_v0 = vld [vmem:[%s2226_s2] sm:$0xff]  ;;  %v1731_v1 = vld [vmem:[%s2226_s2 + $0x10] sm:$0xff]  ;;  %v1762_v32 = vld [vmem:[%s2226_s2 + $0x8] sm:$0xff] }
  0x1e   : > { %s198_s4 = sadd.s32 %s1795_s8, %s196_s3  ;;  %v1732_v2 = vld [vmem:[%s2226_s2 + $0x20] sm:$0xff]  ;;  %v1733_v3 = vld [vmem:[%s2226_s2 + $0x30] sm:$0xff]  ;;  %v1763_v33 = vld [vmem:[%s2226_s2 + $0x18] sm:$0xff] }
  0x1f   : > { %s1279_s5 = sshll.u32 %s198_s4, 2  ;;  %v1734_v4 = vld [vmem:[%s2226_s2 + $0x40] sm:$0xff]  ;;  %v1735_v5 = vld [vmem:[%s2226_s2 + $0x50] sm:$0xff]  ;;  %v1764_v34 = vld [vmem:[%s2226_s2 + $0x28] sm:$0xff] }
  0x20   : > { %s2236_s29 = scalar_lea.vmem %s2427_s1, %s1279_s5  ;;  %v1736_v6 = vld [vmem:[%s2226_s2 + $0x60] sm:$0xff]  ;;  %v1737_v7 = vld [vmem:[%s2226_s2 + $0x70] sm:$0xff]  ;;  %v1765_v35 = vld [vmem:[%s2226_s2 + $0x38] sm:$0xff] }
  0x21   : > { %1317 = vst [vmem:[%s2236_s29] sm:$0xff] %v1730_v0  ;;  %v1738_v8 = vld [vmem:[%s2226_s2 + $0x80] sm:$0xff]  ;;  %v1739_v9 = vld [vmem:[%s2226_s2 + $0x90] sm:$0xff]  ;;  %v1766_v36 = vld [vmem:[%s2226_s2 + $0x48] sm:$0xff] }
  0x22   : > { %1323 = vst [vmem:[%s2236_s29 + $0x10] sm:$0xff] %v1731_v1  ;;  %v1740_v10 = vld [vmem:[%s2226_s2 + $0xa0] sm:$0xff]  ;;  %v1741_v11 = vld [vmem:[%s2226_s2 + $0xb0] sm:$0xff]  ;;  %v1767_v37 = vld [vmem:[%s2226_s2 + $0x58] sm:$0xff] }
  0x23   : > { %1329 = vst [vmem:[%s2236_s29 + $0x20] sm:$0xff] %v1732_v2  ;;  %v1742_v12 = vld [vmem:[%s2226_s2 + $0xc0] sm:$0xff]  ;;  %v1743_v13 = vld [vmem:[%s2226_s2 + $0xd0] sm:$0xff]  ;;  %v1768_v38 = vld [vmem:[%s2226_s2 + $0x68] sm:$0xff] }
  0x24   : > { %1335 = vst [vmem:[%s2236_s29 + $0x30] sm:$0xff] %v1733_v3  ;;  %v1744_v14 = vld [vmem:[%s2226_s2 + $0xe0] sm:$0xff]  ;;  %v1745_v15 = vld [vmem:[%s2226_s2 + $0xf0] sm:$0xff]  ;;  %v1769_v39 = vld [vmem:[%s2226_s2 + $0x78] sm:$0xff] }
  0x25   : > { %1341 = vst [vmem:[%s2236_s29 + $0x40] sm:$0xff] %v1734_v4  ;;  %v1746_v16 = vld [vmem:[%s2226_s2 + $0x100] sm:$0xff]  ;;  %v1747_v17 = vld [vmem:[%s2226_s2 + $0x110] sm:$0xff]  ;;  %v1770_v40 = vld [vmem:[%s2226_s2 + $0x88] sm:$0xff] }
  0x26   : > { %1347 = vst [vmem:[%s2236_s29 + $0x50] sm:$0xff] %v1735_v5  ;;  %v1748_v18 = vld [vmem:[%s2226_s2 + $0x120] sm:$0xff]  ;;  %v1749_v19 = vld [vmem:[%s2226_s2 + $0x130] sm:$0xff]  ;;  %v1771_v41 = vld [vmem:[%s2226_s2 + $0x98] sm:$0xff] }
  0x27   : > { %1353 = vst [vmem:[%s2236_s29 + $0x60] sm:$0xff] %v1736_v6  ;;  %v1750_v20 = vld [vmem:[%s2226_s2 + $0x140] sm:$0xff]  ;;  %v1751_v21 = vld [vmem:[%s2226_s2 + $0x150] sm:$0xff]  ;;  %v1772_v42 = vld [vmem:[%s2226_s2 + $0xa8] sm:$0xff] }
  0x28   : > { %1359 = vst [vmem:[%s2236_s29 + $0x70] sm:$0xff] %v1737_v7  ;;  %v1752_v22 = vld [vmem:[%s2226_s2 + $0x160] sm:$0xff]  ;;  %v1753_v23 = vld [vmem:[%s2226_s2 + $0x170] sm:$0xff]  ;;  %v1773_v43 = vld [vmem:[%s2226_s2 + $0xb8] sm:$0xff] }
  0x29   : > { %1365 = vst [vmem:[%s2236_s29 + $0x80] sm:$0xff] %v1738_v8  ;;  %v1754_v24 = vld [vmem:[%s2226_s2 + $0x180] sm:$0xff]  ;;  %v1755_v25 = vld [vmem:[%s2226_s2 + $0x190] sm:$0xff]  ;;  %v1774_v44 = vld [vmem:[%s2226_s2 + $0xc8] sm:$0xff] }
  0x2a   : > { %1371 = vst [vmem:[%s2236_s29 + $0x90] sm:$0xff] %v1739_v9  ;;  %v1756_v26 = vld [vmem:[%s2226_s2 + $0x1a0] sm:$0xff]  ;;  %v1757_v27 = vld [vmem:[%s2226_s2 + $0x1b0] sm:$0xff]  ;;  %v1775_v45 = vld [vmem:[%s2226_s2 + $0xd8] sm:$0xff] }
  0x2b   : > { %1377 = vst [vmem:[%s2236_s29 + $0xa0] sm:$0xff] %v1740_v10  ;;  %v1758_v28 = vld [vmem:[%s2226_s2 + $0x1c0] sm:$0xff]  ;;  %v1759_v29 = vld [vmem:[%s2226_s2 + $0x1d0] sm:$0xff]  ;;  %v1776_v46 = vld [vmem:[%s2226_s2 + $0xe8] sm:$0xff] }
  0x2c   : > { %1383 = vst [vmem:[%s2236_s29 + $0xb0] sm:$0xff] %v1741_v11  ;;  %v1760_v30 = vld [vmem:[%s2226_s2 + $0x1e0] sm:$0xff]  ;;  %v1761_v31 = vld [vmem:[%s2226_s2 + $0x1f0] sm:$0xff]  ;;  %v1777_v47 = vld [vmem:[%s2226_s2 + $0xf8] sm:$0xff] }
  0x2d   : > { %1389 = vst [vmem:[%s2236_s29 + $0xc0] sm:$0xff] %v1742_v12  ;;  %v1778_v48 = vld [vmem:[%s2226_s2 + $0x108] sm:$0xff]  ;;  %v1779_v49 = vld [vmem:[%s2226_s2 + $0x118] sm:$0xff] }
  0x2e   : > { %1395 = vst [vmem:[%s2236_s29 + $0xd0] sm:$0xff] %v1743_v13  ;;  %v1780_v50 = vld [vmem:[%s2226_s2 + $0x128] sm:$0xff]  ;;  %v1781_v51 = vld [vmem:[%s2226_s2 + $0x138] sm:$0xff] }
  0x2f   : > { %1401 = vst [vmem:[%s2236_s29 + $0xe0] sm:$0xff] %v1744_v14  ;;  %v1782_v52 = vld [vmem:[%s2226_s2 + $0x148] sm:$0xff]  ;;  %v1783_v53 = vld [vmem:[%s2226_s2 + $0x158] sm:$0xff] }
  0x30   : > { %1407 = vst [vmem:[%s2236_s29 + $0xf0] sm:$0xff] %v1745_v15  ;;  %v1784_v54 = vld [vmem:[%s2226_s2 + $0x168] sm:$0xff]  ;;  %v1785_v55 = vld [vmem:[%s2226_s2 + $0x178] sm:$0xff] }
  0x31   : > { %1413 = vst [vmem:[%s2236_s29 + $0x100] sm:$0xff] %v1746_v16  ;;  %v1786_v56 = vld [vmem:[%s2226_s2 + $0x188] sm:$0xff]  ;;  %v1787_v57 = vld [vmem:[%s2226_s2 + $0x198] sm:$0xff] }
  0x32   : > { %1419 = vst [vmem:[%s2236_s29 + $0x110] sm:$0xff] %v1747_v17  ;;  %v1788_v58 = vld [vmem:[%s2226_s2 + $0x1a8] sm:$0xff]  ;;  %v1789_v59 = vld [vmem:[%s2226_s2 + $0x1b8] sm:$0xff] }
  0x33   : > { %1425 = vst [vmem:[%s2236_s29 + $0x120] sm:$0xff] %v1748_v18  ;;  %v1790_v60 = vld [vmem:[%s2226_s2 + $0x1c8] sm:$0xff]  ;;  %v1791_v61 = vld [vmem:[%s2226_s2 + $0x1d8] sm:$0xff] }
  0x34   : > { %1431 = vst [vmem:[%s2236_s29 + $0x130] sm:$0xff] %v1749_v19  ;;  %v1792_v62 = vld [vmem:[%s2226_s2 + $0x1e8] sm:$0xff]  ;;  %v1793_v63 = vld [vmem:[%s2226_s2 + $0x1f8] sm:$0xff] }
  0x35   : > { %1437 = vst [vmem:[%s2236_s29 + $0x140] sm:$0xff] %v1750_v20 }
  0x36   : > { %1443 = vst [vmem:[%s2236_s29 + $0x150] sm:$0xff] %v1751_v21 }
  0x37   : > { %1449 = vst [vmem:[%s2236_s29 + $0x160] sm:$0xff] %v1752_v22 }
  0x38   : > { %1455 = vst [vmem:[%s2236_s29 + $0x170] sm:$0xff] %v1753_v23 }
  0x39   : > { %1461 = vst [vmem:[%s2236_s29 + $0x180] sm:$0xff] %v1754_v24 }
  0x3a   : > { %1467 = vst [vmem:[%s2236_s29 + $0x190] sm:$0xff] %v1755_v25 }
  0x3b   : > { %1473 = vst [vmem:[%s2236_s29 + $0x1a0] sm:$0xff] %v1756_v26 }
  0x3c   : > { %1479 = vst [vmem:[%s2236_s29 + $0x1b0] sm:$0xff] %v1757_v27 }
  0x3d   : > { %1485 = vst [vmem:[%s2236_s29 + $0x1c0] sm:$0xff] %v1758_v28 }
  0x3e   : > { %1491 = vst [vmem:[%s2236_s29 + $0x1d0] sm:$0xff] %v1759_v29 }
  0x3f   : > { %1497 = vst [vmem:[%s2236_s29 + $0x1e0] sm:$0xff] %v1760_v30 }
  0x40   : > { %1503 = vst [vmem:[%s2236_s29 + $0x1f0] sm:$0xff] %v1761_v31 }
  0x41   : > { %1541 = vst [vmem:[%s2236_s29 + $0x8] sm:$0xff] %v1762_v32 }
  0x42   : > { %1547 = vst [vmem:[%s2236_s29 + $0x18] sm:$0xff] %v1763_v33 }
  0x43   : > { %1553 = vst [vmem:[%s2236_s29 + $0x28] sm:$0xff] %v1764_v34 }
  0x44   : > { %1559 = vst [vmem:[%s2236_s29 + $0x38] sm:$0xff] %v1765_v35 }
  0x45   : > { %1565 = vst [vmem:[%s2236_s29 + $0x48] sm:$0xff] %v1766_v36 }
  0x46   : > { %1571 = vst [vmem:[%s2236_s29 + $0x58] sm:$0xff] %v1767_v37 }
  0x47   : > { %1577 = vst [vmem:[%s2236_s29 + $0x68] sm:$0xff] %v1768_v38 }
  0x48   : > { %1583 = vst [vmem:[%s2236_s29 + $0x78] sm:$0xff] %v1769_v39 }
  0x49   : > { %1589 = vst [vmem:[%s2236_s29 + $0x88] sm:$0xff] %v1770_v40 }
  0x4a   : > { %1595 = vst [vmem:[%s2236_s29 + $0x98] sm:$0xff] %v1771_v41 }
  0x4b   : > { %1601 = vst [vmem:[%s2236_s29 + $0xa8] sm:$0xff] %v1772_v42 }
  0x4c   : > { %1607 = vst [vmem:[%s2236_s29 + $0xb8] sm:$0xff] %v1773_v43 }
  0x4d   : > { %1613 = vst [vmem:[%s2236_s29 + $0xc8] sm:$0xff] %v1774_v44 }
  0x4e   : > { %1619 = vst [vmem:[%s2236_s29 + $0xd8] sm:$0xff] %v1775_v45 }
  0x4f   : > { %1625 = vst [vmem:[%s2236_s29 + $0xe8] sm:$0xff] %v1776_v46 }
  0x50   : > { %1631 = vst [vmem:[%s2236_s29 + $0xf8] sm:$0xff] %v1777_v47 }
  0x51   : > { %1637 = vst [vmem:[%s2236_s29 + $0x108] sm:$0xff] %v1778_v48 }
  0x52   : > { %1643 = vst [vmem:[%s2236_s29 + $0x118] sm:$0xff] %v1779_v49 }
  0x53   : > { %1649 = vst [vmem:[%s2236_s29 + $0x128] sm:$0xff] %v1780_v50 }
  0x54   : > { %1655 = vst [vmem:[%s2236_s29 + $0x138] sm:$0xff] %v1781_v51 }
  0x55   : > { %1661 = vst [vmem:[%s2236_s29 + $0x148] sm:$0xff] %v1782_v52 }
  0x56   : > { %1667 = vst [vmem:[%s2236_s29 + $0x158] sm:$0xff] %v1783_v53 }
  0x57   : > { %1673 = vst [vmem:[%s2236_s29 + $0x168] sm:$0xff] %v1784_v54 }
  0x58   : > { %1679 = vst [vmem:[%s2236_s29 + $0x178] sm:$0xff] %v1785_v55 }
  0x59   : > { %1685 = vst [vmem:[%s2236_s29 + $0x188] sm:$0xff] %v1786_v56 }
  0x5a   : > { %1691 = vst [vmem:[%s2236_s29 + $0x198] sm:$0xff] %v1787_v57 }
  0x5b   : > { %1697 = vst [vmem:[%s2236_s29 + $0x1a8] sm:$0xff] %v1788_v58 }
  0x5c   : > { %1703 = vst [vmem:[%s2236_s29 + $0x1b8] sm:$0xff] %v1789_v59 }
  0x5d   : > { %1709 = vst [vmem:[%s2236_s29 + $0x1c8] sm:$0xff] %v1790_v60 }
  0x5e   : > { %1715 = vst [vmem:[%s2236_s29 + $0x1d8] sm:$0xff] %v1791_v61 }
  0x5f   : > { %1721 = vst [vmem:[%s2236_s29 + $0x1e8] sm:$0xff] %v1792_v62 }
  0x60   : > { %1727 = vst [vmem:[%s2236_s29 + $0x1f8] sm:$0xff] %v1793_v63 }
  0x61 PF: > { %s7_s24 = sadd.s32 1, %s2098_s24   ;;  %s2429_s6 = smov %s2038_s9 }
  0x62   : > { %p2364_p11 = scmp.ge.s32.totalorder %s7_s24, 28   ;;  %s2430_s7 = smov %s2042_s10 }
  0x63   : > { %s2431_s8 = smov %s2046_s11  ;;  %s2432_s9 = smov %s2050_s12 }
  0x64   : > { %s2433_s10 = smov %s2054_s13  ;;  %s2434_s11 = smov %s2058_s14 }
  0x65   : > { %s2435_s12 = smov %s2062_s15  ;;  %s2436_s13 = smov %s2066_s16 }
  0x66   : > { %s2437_s14 = smov %s2070_s17  ;;  %s2438_s15 = smov %s2074_s18 }
  0x67   : > { %s2439_s16 = smov %s2078_s19  ;;  %s2440_s17 = smov %s2082_s20 }
  0x68   : > { %s2441_s18 = smov %s2086_s21  ;;  %s2442_s19 = smov %s2090_s22 }
  0x69   : > { %s2443_s20 = smov %s2094_s23  ;;  %s2444_s21 = smov %s2448_s25 }
  0x6a   : > { %s2445_s22 = smov %s2452_s26  ;;  %s2446_s23 = smov %s2456_s27 }
  0x6b   :  { %6 = sbr.rel (!%p2364_p11) target bundleno = 10 (0xa), region = 359 }

// kernel: asn_ts_forward.1
= control target key start
LH: loop header
LB: loop body
LE: loop exit
PB: predicated region body
PF: predicated region fallthrough
CT: control target
= control target key end

     0   :  { %vm1323_vm0 = vcmask 1041408   ;;  %vm1714_vm5 = vcmask 1045508   ;;  %vm1716_vm6 = vcmask 1043456   ;;  %s6107_s3 = inlined_call_operand.vmem [shape: bf16[2048,128], index: 3, kind: input, shape index: {}]   ;;  %s6108_s0 = inlined_call_operand.vmem [shape: f32[2,2048], index: 0, kind: input, shape index: {}]   ;;  %s6109_s4 = inlined_call_operand.vmem [shape: f32[1,128], index: 4, kind: input, shape index: {}]   ;;  %s6110_s7 = inlined_call_operand.vmem [shape: f32[3,2,128], index: 7, kind: output, shape index: {}]   ;;  %s6111_s1 = inlined_call_operand.vmem [shape: f32[4,2048], index: 1, kind: input, shape index: {}]   ;;  %s6112_s5 = inlined_call_operand.vmem [shape: f32[1,128], index: 5, kind: input, shape index: {}]   ;;  %s6113_s2 = inlined_call_operand.vmem [shape: f32[8,2048], index: 2, kind: input, shape index: {}]   ;;  %s6114_s6 = inlined_call_operand.vmem [shape: f32[1,128], index: 6, kind: input, shape index: {}]  }
   0x1   :  { %v3914_v0 = vld [vmem:[%s6107_s3 + $0x38] sm:$0xff]  ;;  %v3936_v4 = vld [vmem:[%s6107_s3 + $0x30] sm:$0xff]  ;;  %v3960_v8 = vld [vmem:[%s6107_s3 + $0x28] sm:$0xff] }
   0x2   :  { %v3919_v1 = vld [vmem:[%s6107_s3 + $0x78] sm:$0xff]  ;;  %1115 = vmatpush.bf16.msra.mxu0 %v3914_v0  ;;  %v3941_v5 = vld [vmem:[%s6107_s3 + $0x70] sm:$0xff]  ;;  %v3965_v9 = vld [vmem:[%s6107_s3 + $0x68] sm:$0xff] }
   0x3   :  { %v3924_v2 = vld [vmem:[%s6107_s3 + $0xb8] sm:$0xff]  ;;  %1128 = vmatpush.bf16.msra.mxu1 %v3919_v1  ;;  %v3948_v6 = vld [vmem:[%s6107_s3 + $0xb0] sm:$0xff]  ;;  %v3972_v10 = vld [vmem:[%s6107_s3 + $0xa8] sm:$0xff] }
   0x4   :  { %v3929_v3 = vld [vmem:[%s6107_s3 + $0xf8] sm:$0xff]  ;;  %1141 = vmatpush.bf16.msra.mxu2 %v3924_v2  ;;  %v3953_v7 = vld [vmem:[%s6107_s3 + $0xf0] sm:$0xff]  ;;  %v3977_v11 = vld [vmem:[%s6107_s3 + $0xe8] sm:$0xff] }
   0x5   :  { %1154 = vmatpush.bf16.msra.mxu3 %v3929_v3  ;;  %v3984_v12 = vld [vmem:[%s6107_s3 + $0x20] sm:$0xff]  ;;  %v4008_v16 = vld [vmem:[%s6107_s3 + $0x18] sm:$0xff]  ;;  %v4037_v21 = vld [vmem:[%s6107_s3 + $0x10] sm:$0xff] }
   0x6   :  { %1116 = vmatpush.bf16.msra.mxu0 %v3936_v4  ;;  %v3989_v13 = vld [vmem:[%s6107_s3 + $0x60] sm:$0xff]  ;;  %v4013_v17 = vld [vmem:[%s6107_s3 + $0x58] sm:$0xff]  ;;  %v4042_v22 = vld [vmem:[%s6107_s3 + $0x50] sm:$0xff] }
   0x7   :  { %1129 = vmatpush.bf16.msra.mxu1 %v3941_v5  ;;  %v3996_v14 = vld [vmem:[%s6107_s3 + $0xa0] sm:$0xff]  ;;  %v4020_v18 = vld [vmem:[%s6107_s3 + $0x98] sm:$0xff]  ;;  %v4050_v23 = vld [vmem:[%s6107_s3 + $0x90] sm:$0xff] }
   0x8   :  { %1142 = vmatpush.bf16.msra.mxu2 %v3948_v6  ;;  %v4001_v15 = vld [vmem:[%s6107_s3 + $0xe0] sm:$0xff]  ;;  %v4025_v19 = vld [vmem:[%s6107_s3 + $0xd8] sm:$0xff]  ;;  %v4055_v24 = vld [vmem:[%s6107_s3 + $0xd0] sm:$0xff] }
   0x9   :  { %1155 = vmatpush.bf16.msra.mxu3 %v3953_v7  ;;  %v4030_v20 = vld [vmem:[%s6108_s0] sm:$0xff]  ;;  %v4062_v25 = vld [vmem:[%s6107_s3 + $0x8] sm:$0xff]  ;;  %v4106_v35 = vld [vmem:[%s6108_s0 + $0x10] sm:$0xff] }
   0xa   :  { %1117 = vmatpush.bf16.msra.mxu0 %v3960_v8  ;;  %6184 = vst [vmem:[#allocation2_spill] sm:$0xff] %v4030_v20  ;;  %v4067_v26 = vld [vmem:[%s6107_s3 + $0x48] sm:$0xff]  ;;  %v4084_v29 = vld [vmem:[%s6107_s3] sm:$0xff]  ;;  %v4113_v38 = vld [vmem:[%s6107_s3 + $0x138] sm:$0xff] }
   0xb   :  { %1130 = vmatpush.bf16.msra.mxu1 %v3965_v9  ;;  %290 = vst [vmem:[#allocation1] ss:$4 sm:$0xff] %v4030_v20  ;;  %v4074_v27 = vld [vmem:[%s6107_s3 + $0x88] sm:$0xff]  ;;  %v4089_v30 = vld [vmem:[%s6107_s3 + $0x40] sm:$0xff]  ;;  %v4118_v39 = vld [vmem:[%s6107_s3 + $0x178] sm:$0xff] }
   0xc   :  { %1143 = vmatpush.bf16.msra.mxu2 %v3972_v10  ;;  %v4079_v28 = vld [vmem:[%s6107_s3 + $0xc8] sm:$0xff]  ;;  %v4094_v31 = vld [vmem:[%s6107_s3 + $0x80] sm:$0xff]  ;;  %6185 = vst [vmem:[#allocation3_spill] sm:$0xff] %v4106_v35  ;;  %v4124_v40 = vld [vmem:[%s6107_s3 + $0x1b8] sm:$0xff] }
   0xd   :  { %1156 = vmatpush.bf16.msra.mxu3 %v3977_v11  ;;  %v4101_v33 = vld [vmem:[%s6107_s3 + $0xc0] sm:$0xff]  ;;  %v4129_v41 = vld [vmem:[%s6107_s3 + $0x1f8] sm:$0xff]  ;;  %v4134_v42 = vld [vmem:[%s6108_s0 + $0x8] sm:$0xff] }
   0xe   :  { %1118 = vmatpush.bf16.msra.mxu0 %v3984_v12  ;;  %6186 = vst [vmem:[#allocation4_spill] sm:$0xff] %v4134_v42  ;;  %v4146_v47 = vld [vmem:[%s6107_s3 + $0x130] sm:$0xff]  ;;  %v4170_v51 = vld [vmem:[%s6107_s3 + $0x128] sm:$0xff]  ;;  %v4192_v55 = vld [vmem:[%s6107_s3 + $0x120] sm:$0xff] }
   0xf   :  { %1131 = vmatpush.bf16.msra.mxu1 %v3989_v13  ;;  %292 = vst [vmem:[#allocation1 + $0x20] ss:$4 sm:$0xff] %v4134_v42  ;;  %v4151_v48 = vld [vmem:[%s6107_s3 + $0x170] sm:$0xff]  ;;  %v4175_v52 = vld [vmem:[%s6107_s3 + $0x168] sm:$0xff]  ;;  %v4199_v57 = vld [vmem:[%s6107_s3 + $0x160] sm:$0xff] }
  0x10   :  { %1144 = vmatpush.bf16.msra.mxu2 %v3996_v14  ;;  %v4158_v49 = vld [vmem:[%s6107_s3 + $0x1b0] sm:$0xff]  ;;  %v4182_v53 = vld [vmem:[%s6107_s3 + $0x1a8] sm:$0xff]  ;;  %v4206_v59 = vld [vmem:[%s6108_s0 + $0x18] sm:$0xff] }
  0x11   :  { %1157 = vmatpush.bf16.msra.mxu3 %v4001_v15  ;;  %v4163_v50 = vld [vmem:[%s6107_s3 + $0x1f0] sm:$0xff]  ;;  %v4187_v54 = vld [vmem:[%s6107_s3 + $0x1e8] sm:$0xff]  ;;  %6187 = vst [vmem:[#allocation5_spill] sm:$0xff] %v4206_v59  ;;  %v4215_v62 = vld [vmem:[%s6107_s3 + $0x1a0] sm:$0xff] }
  0x12   :  { %1119 = vmatpush.bf16.msra.mxu0 %v4008_v16  ;;  %v295_v32 = vld.sshfl [vmem:[#allocation1 + $0x10] sm:$0xff pattern:$0x73625140]  ;;  %v293_v34 = vld.sshfl [vmem:[#allocation1] sm:$0xff pattern:$0x73625140] }
  0x13   :  { %1132 = vmatpush.bf16.msra.mxu1 %v4013_v17  ;;  %v296_v36 = vld.sshfl [vmem:[#allocation1 + $0x18] sm:$0xff pattern:$0x73625140]  ;;  %v294_v37 = vld.sshfl [vmem:[#allocation1 + $0x8] sm:$0xff pattern:$0x73625140]  ;;  %v329_v43 = vpack.c.bf16 %v295_v32, %v295_v32  ;;  %v327_v44 = vpack.c.bf16 %v293_v34, %v293_v34 }
  0x14   :  { %1145 = vmatpush.bf16.msra.mxu2 %v4020_v18  ;;  %301 = vst [vmem:[#allocation1] ss:$4 sm:$0xff] %v4106_v35  ;;  %v330_v45 = vpack.c.bf16 %v296_v36, %v296_v36  ;;  %v328_v46 = vpack.c.bf16 %v294_v37, %v294_v37  ;;  %v4220_v63 = vld [vmem:[%s6107_s3 + $0x1e0] sm:$0xff]  ;;  %v4228_v32 = vld [vmem:[%s6107_s3 + $0x118] sm:$0xff]  ;;  %v4281_v35 = vld [vmem:[%s6107_s3 + $0x148] sm:$0xff] }
  0x15   :  { %1158 = vmatpush.bf16.msra.mxu3 %v4025_v19  ;;  %6188 = vst [vmem:[#allocation6_spill] sm:$0xff] %v4215_v62  ;;  %v4233_v34 = vld [vmem:[%s6107_s3 + $0x158] sm:$0xff]  ;;  %v4288_v42 = vld [vmem:[%s6107_s3 + $0x188] sm:$0xff] }
  0x16   :  { %1120 = vmatpush.bf16.msra.mxu0 %v4037_v21  ;;  %v4194_v56 = vld.sshfl [vmem:[#allocation1 + $0x30] sm:$0xff pattern:$0x73625140]  ;;  %v4201_v58 = vld.sshfl [vmem:[#allocation1 + $0x20] sm:$0xff pattern:$0x73625140] }
  0x17   :  { %1133 = vmatpush.bf16.msra.mxu1 %v4042_v22  ;;  %v300_v60 = vld.sshfl [vmem:[#allocation1 + $0x38] sm:$0xff pattern:$0x73625140]  ;;  %v298_v61 = vld.sshfl [vmem:[#allocation1 + $0x28] sm:$0xff pattern:$0x73625140] }
  0x18   :  { %1146 = vmatpush.bf16.msra.mxu2 %v4050_v23  ;;  %6189 = vst [vmem:[#allocation7_spill] sm:$0xff] %v4220_v63  ;;  %v4240_v36 = vld [vmem:[%s6107_s3 + $0x198] sm:$0xff]  ;;  %v4293_v20 = vld [vmem:[%s6107_s3 + $0x1c8] sm:$0xff] }
  0x19   :  { %1159 = vmatpush.bf16.msra.mxu3 %v4055_v24  ;;  %302 = vst [vmem:[#allocation1 + $0x20] ss:$4 sm:$0xff] %v4206_v59  ;;  %v4245_v37 = vld [vmem:[%s6107_s3 + $0x1d8] sm:$0xff]  ;;  %v4276_v59 = vld [vmem:[%s6107_s3 + $0x108] sm:$0xff] }
  0x1a   :  { %1121 = vmatpush.bf16.msra.mxu0 %v4062_v25  ;;  %6190 = vst [vmem:[#allocation8_spill] sm:$0xff] %v4228_v32 }
  0x1b   :  { %1134 = vmatpush.bf16.msra.mxu1 %v4067_v26  ;;  %6191 = vst [vmem:[#allocation9_spill] sm:$0xff] %v4233_v34 }
  0x1c   :  { %1147 = vmatpush.bf16.msra.mxu2 %v4074_v27  ;;  %6192 = vst [vmem:[#allocation10_spill] sm:$0xff] %v4240_v36 }
  0x1d   :  { %1160 = vmatpush.bf16.msra.mxu3 %v4079_v28  ;;  %6193 = vst [vmem:[#allocation11_spill] sm:$0xff] %v4245_v37 }
  0x1e   :  { %1122 = vmatpush.bf16.msra.mxu0 %v4084_v29  ;;  %6198 = vst [vmem:[#allocation16_spill] sm:$0xff] %v4276_v59 }
  0x1f   :  { %1135 = vmatpush.bf16.msra.mxu1 %v4089_v30  ;;  %6199 = vst [vmem:[#allocation17_spill] sm:$0xff] %v4281_v35 }
  0x20   :  { %1148 = vmatpush.bf16.msra.mxu2 %v4094_v31  ;;  %6200 = vst [vmem:[#allocation18_spill] sm:$0xff] %v4288_v42 }
  0x21   :  { %1161 = vmatpush.bf16.msra.mxu3 %v4101_v33  ;;  %1123 = vmatmul.bf16.vlgmr.msra.gmra.mxu0 %v327_v44  ;;  %v4257_v44 = vld [vmem:[%s6107_s3 + $0x150] sm:$0xff]  ;;  %6201 = vst [vmem:[#allocation19_spill] sm:$0xff] %v4293_v20 }
  0x22   :  { %1167 = vmatpush.bf16.msrb.mxu0 %v4113_v38  ;;  %1136 = vmatmul.bf16.vlgmr.msra.gmra.mxu1 %v328_v46  ;;  %6195 = vst [vmem:[#allocation13_spill] sm:$0xff] %v4257_v44  ;;  %v4269_v46 = vld [vmem:[%s6107_s3 + $0x1d0] sm:$0xff] }
  0x23   :  { %1180 = vmatpush.bf16.msrb.mxu1 %v4118_v39  ;;  %1149 = vmatmul.bf16.vlgmr.msra.gmra.mxu2 %v329_v43  ;;  %v4252_v43 = vld [vmem:[%s6107_s3 + $0x110] sm:$0xff]  ;;  %6197 = vst [vmem:[#allocation15_spill] sm:$0xff] %v4269_v46 }
  0x24   :  { %1193 = vmatpush.bf16.msrb.mxu2 %v4124_v40  ;;  %1162 = vmatmul.bf16.vlgmr.msra.gmra.mxu3 %v330_v45  ;;  %6194 = vst [vmem:[#allocation12_spill] sm:$0xff] %v4252_v43  ;;  %v4264_v45 = vld [vmem:[%s6107_s3 + $0x190] sm:$0xff] }
  0x25   :  { %1206 = vmatpush.bf16.msrb.mxu3 %v4129_v41  ;;  %6196 = vst [vmem:[#allocation14_spill] sm:$0xff] %v4264_v45 }
  0x26   :  { %1168 = vmatpush.bf16.msrb.mxu0 %v4146_v47 }
  0x27   :  { %1181 = vmatpush.bf16.msrb.mxu1 %v4151_v48 }
  0x28   :  { %1194 = vmatpush.bf16.msrb.mxu2 %v4158_v49 }
  0x29   :  { %1207 = vmatpush.bf16.msrb.mxu3 %v4163_v50 }
  0x2a   :  { %1169 = vmatpush.bf16.msrb.mxu0 %v4170_v51 }
  0x2b   :  { %1182 = vmatpush.bf16.msrb.mxu1 %v4175_v52 }
  0x2c   :  { %1195 = vmatpush.bf16.msrb.mxu2 %v4182_v53 }
  0x2d   :  { %1208 = vmatpush.bf16.msrb.mxu3 %v4187_v54 }
  0x2e   :  { %1170 = vmatpush.bf16.msrb.mxu0 %v4192_v55 }
  0x2f   :  { %1183 = vmatpush.bf16.msrb.mxu1 %v4199_v57 }
  0x30   :  { %1196 = vmatpush.bf16.msrb.mxu2 %v4215_v62  ;;  %v3613_v62 = vld [vmem:[%s6107_s3 + $0x370] sm:$0xff] }
  0x31   :  { %1209 = vmatpush.bf16.msrb.mxu3 %v4220_v63  ;;  %v3605_v63 = vld [vmem:[%s6107_s3 + $0x330] sm:$0xff] }
  0x32   :  { %1171 = vmatpush.bf16.msrb.mxu0 %v4228_v32  ;;  %v332_v32 = vpack.c.bf16 %v298_v61, %v298_v61  ;;  %v3596_v61 = vld [vmem:[%s6107_s3 + $0x2e8] sm:$0xff] }
  0x33   :  { %1184 = vmatpush.bf16.msrb.mxu1 %v4233_v34  ;;  %v334_v34 = vpack.c.bf16 %v300_v60, %v300_v60  ;;  %v3588_v60 = vld [vmem:[%s6107_s3 + $0x2a8] sm:$0xff] }
  0x34   :  { %1197 = vmatpush.bf16.msrb.mxu2 %v4240_v36  ;;  %v331_v36 = vpack.c.bf16 %v4201_v58, %v4201_v58  ;;  %v3597_v58 = vld [vmem:[%s6107_s3 + $0x2f0] sm:$0xff] }
  0x35   :  { %1210 = vmatpush.bf16.msrb.mxu3 %v4245_v37  ;;  %v333_v37 = vpack.c.bf16 %v4194_v56, %v4194_v56  ;;  %v3589_v56 = vld [vmem:[%s6107_s3 + $0x2b0] sm:$0xff] }
  0x36   :  { %1172 = vmatpush.bf16.msrb.mxu0 %v4252_v43  ;;  %v3598_v43 = vld [vmem:[%s6107_s3 + $0x2f8] sm:$0xff] }
  0x37   :  { %1185 = vmatpush.bf16.msrb.mxu1 %v4257_v44  ;;  %v3574_v44 = vld [vmem:[%s6107_s3 + $0x238] sm:$0xff] }
  0x38   :  { %1198 = vmatpush.bf16.msrb.mxu2 %v4264_v45  ;;  %v4300_v45 = vld [vmem:[%s6107_s3 + $0x100] sm:$0xff] }
  0x39   :  { %1211 = vmatpush.bf16.msrb.mxu3 %v4269_v46  ;;  %6202 = vst [vmem:[#allocation20_spill] sm:$0xff] %v4300_v45  ;;  %v4305_v46 = vld [vmem:[%s6107_s3 + $0x140] sm:$0xff] }
  0x3a   :  { %1173 = vmatpush.bf16.msrb.mxu0 %v4276_v59  ;;  %6203 = vst [vmem:[#allocation21_spill] sm:$0xff] %v4305_v46  ;;  %v4312_v59 = vld [vmem:[%s6107_s3 + $0x180] sm:$0xff] }
  0x3b   :  { %1186 = vmatpush.bf16.msrb.mxu1 %v4281_v35  ;;  %6204 = vst [vmem:[#allocation22_spill] sm:$0xff] %v4312_v59  ;;  %v4317_v35 = vld [vmem:[%s6107_s3 + $0x1c0] sm:$0xff] }
  0x3c   :  { %1199 = vmatpush.bf16.msrb.mxu2 %v4288_v42  ;;  %6205 = vst [vmem:[#allocation23_spill] sm:$0xff] %v4317_v35  ;;  %v3582_v42 = vld [vmem:[%s6107_s3 + $0x278] sm:$0xff] }
  0x3d   :  { %1212 = vmatpush.bf16.msrb.mxu3 %v4293_v20  ;;  %v3590_v20 = vld [vmem:[%s6107_s3 + $0x2b8] sm:$0xff] }
  0x3e   :  { %1174 = vmatpush.bf16.msrb.mxu0 %v4300_v45  ;;  %v3573_v45 = vld [vmem:[%s6107_s3 + $0x230] sm:$0xff] }
  0x3f   :  { %1187 = vmatpush.bf16.msrb.mxu1 %v4305_v46  ;;  %v3581_v46 = vld [vmem:[%s6107_s3 + $0x270] sm:$0xff] }
  0x40   :  { %1200 = vmatpush.bf16.msrb.mxu2 %v4312_v59 }
  0x41   :  { %1213 = vmatpush.bf16.msrb.mxu3 %v4317_v35  ;;  %1175 = vmatmul.bf16.vlgmr.msrb.gmra.mxu0 %v331_v36  ;;  %v3587_v36 = vld [vmem:[%s6107_s3 + $0x2a0] sm:$0xff] }
  0x42   :  { %1219 = vmatpush.bf16.msra.mxu0 %v3574_v44  ;;  %1188 = vmatmul.bf16.vlgmr.msrb.gmra.mxu1 %v332_v32  ;;  %v3571_v32 = vld [vmem:[%s6107_s3 + $0x220] sm:$0xff]  ;;  %v3578_v44 = vld [vmem:[%s6107_s3 + $0x258] sm:$0xff] }
  0x43   :  { %1232 = vmatpush.bf16.msra.mxu1 %v3582_v42  ;;  %1201 = vmatmul.bf16.vlgmr.msrb.gmra.mxu2 %v333_v37  ;;  %v3572_v42 = vld [vmem:[%s6107_s3 + $0x228] sm:$0xff]  ;;  %v3595_v37 = vld [vmem:[%s6107_s3 + $0x2e0] sm:$0xff] }
  0x44   :  { %1245 = vmatpush.bf16.msra.mxu2 %v3590_v20  ;;  %1214 = vmatmul.bf16.vlgmr.msrb.gmra.mxu3 %v334_v34  ;;  %v3580_v20 = vld [vmem:[%s6107_s3 + $0x268] sm:$0xff]  ;;  %v3579_v34 = vld [vmem:[%s6107_s3 + $0x260] sm:$0xff] }
  0x45   :  { %1258 = vmatpush.bf16.msra.mxu3 %v3598_v43  ;;  %v3570_v43 = vld [vmem:[%s6107_s3 + $0x218] sm:$0xff] }
  0x46   :  { %1220 = vmatpush.bf16.msra.mxu0 %v3573_v45  ;;  %v3586_v45 = vld [vmem:[%s6107_s3 + $0x298] sm:$0xff] }
  0x47   :  { %1233 = vmatpush.bf16.msra.mxu1 %v3581_v46  ;;  %v3594_v46 = vld [vmem:[%s6107_s3 + $0x2d8] sm:$0xff] }
  0x48   :  { %1246 = vmatpush.bf16.msra.mxu2 %v3589_v56  ;;  %v3569_v56 = vld [vmem:[%s6107_s3 + $0x210] sm:$0xff] }
  0x49   :  { %1259 = vmatpush.bf16.msra.mxu3 %v3597_v58  ;;  %v3577_v58 = vld [vmem:[%s6107_s3 + $0x250] sm:$0xff] }
  0x4a   :  { %1221 = vmatpush.bf16.msra.mxu0 %v3572_v42  ;;  %v3585_v42 = vld [vmem:[%s6107_s3 + $0x290] sm:$0xff] }
  0x4b   :  { %1234 = vmatpush.bf16.msra.mxu1 %v3580_v20  ;;  %v3593_v20 = vld [vmem:[%s6107_s3 + $0x2d0] sm:$0xff] }
  0x4c   :  { %1247 = vmatpush.bf16.msra.mxu2 %v3588_v60  ;;  %v3568_v60 = vld [vmem:[%s6107_s3 + $0x208] sm:$0xff] }
  0x4d   :  { %1260 = vmatpush.bf16.msra.mxu3 %v3596_v61  ;;  %v3576_v61 = vld [vmem:[%s6107_s3 + $0x248] sm:$0xff] }
  0x4e   :  { %1222 = vmatpush.bf16.msra.mxu0 %v3571_v32  ;;  %v3584_v32 = vld [vmem:[%s6107_s3 + $0x288] sm:$0xff] }
  0x4f   :  { %1235 = vmatpush.bf16.msra.mxu1 %v3579_v34  ;;  %v3592_v34 = vld [vmem:[%s6107_s3 + $0x2c8] sm:$0xff] }
  0x50   :  { %1248 = vmatpush.bf16.msra.mxu2 %v3587_v36  ;;  %v3567_v36 = vld [vmem:[%s6107_s3 + $0x200] sm:$0xff] }
  0x51   :  { %1261 = vmatpush.bf16.msra.mxu3 %v3595_v37  ;;  %v3575_v37 = vld [vmem:[%s6107_s3 + $0x240] sm:$0xff] }
  0x52   :  { %1223 = vmatpush.bf16.msra.mxu0 %v3570_v43  ;;  %v3583_v43 = vld [vmem:[%s6107_s3 + $0x280] sm:$0xff] }
  0x53   :  { %1236 = vmatpush.bf16.msra.mxu1 %v3578_v44  ;;  %v3591_v44 = vld [vmem:[%s6107_s3 + $0x2c0] sm:$0xff] }
  0x54   :  { %1249 = vmatpush.bf16.msra.mxu2 %v3586_v45  ;;  %v3606_v45 = vld [vmem:[%s6107_s3 + $0x338] sm:$0xff] }
  0x55   :  { %1262 = vmatpush.bf16.msra.mxu3 %v3594_v46  ;;  %v3614_v46 = vld [vmem:[%s6107_s3 + $0x378] sm:$0xff] }
  0x56   :  { %1224 = vmatpush.bf16.msra.mxu0 %v3569_v56  ;;  %v303_v56 = vld.sshfl [vmem:[#allocation1] sm:$0xff pattern:$0x73625140] }
  0x57   :  { %1237 = vmatpush.bf16.msra.mxu1 %v3577_v58  ;;  %v305_v58 = vld.sshfl [vmem:[#allocation1 + $0x10] sm:$0xff pattern:$0x73625140]  ;;  %v335_v35 = vpack.c.bf16 %v303_v56, %v303_v56  ;;  %v3602_v56 = vld [vmem:[%s6107_s3 + $0x318] sm:$0xff] }
  0x58   :  { %1250 = vmatpush.bf16.msra.mxu2 %v3585_v42  ;;  %v304_v42 = vld.sshfl [vmem:[#allocation1 + $0x8] sm:$0xff pattern:$0x73625140]  ;;  %v337_v59 = vpack.c.bf16 %v305_v58, %v305_v58  ;;  %v3610_v58 = vld [vmem:[%s6107_s3 + $0x358] sm:$0xff] }
  0x59   :  { %1263 = vmatpush.bf16.msra.mxu3 %v3593_v20  ;;  %v306_v20 = vld.sshfl [vmem:[#allocation1 + $0x18] sm:$0xff pattern:$0x73625140] }
  0x5a   :  { %1225 = vmatpush.bf16.msra.mxu0 %v3568_v60  ;;  %v3622_v60 = vld [vmem:[%s6107_s3 + $0x3b8] sm:$0xff] }
  0x5b   :  { %1238 = vmatpush.bf16.msra.mxu1 %v3576_v61  ;;  %v3630_v61 = vld [vmem:[%s6107_s3 + $0x3f8] sm:$0xff] }
  0x5c   :  { %1251 = vmatpush.bf16.msra.mxu2 %v3584_v32  ;;  %v336_v32 = vpack.c.bf16 %v304_v42, %v304_v42  ;;  %v3618_v42 = vld [vmem:[%s6107_s3 + $0x398] sm:$0xff] }
  0x5d   :  { %1264 = vmatpush.bf16.msra.mxu3 %v3592_v34  ;;  %v338_v34 = vpack.c.bf16 %v306_v20, %v306_v20  ;;  %v3626_v20 = vld [vmem:[%s6107_s3 + $0x3d8] sm:$0xff] }
  0x5e   :  { %1226 = vmatpush.bf16.msra.mxu0 %v3567_v36  ;;  %v3621_v36 = vld [vmem:[%s6107_s3 + $0x3b0] sm:$0xff] }
  0x5f   :  { %1239 = vmatpush.bf16.msra.mxu1 %v3575_v37  ;;  %v3629_v37 = vld [vmem:[%s6107_s3 + $0x3f0] sm:$0xff] }
  0x60   :  { %1252 = vmatpush.bf16.msra.mxu2 %v3583_v43  ;;  %v3604_v43 = vld [vmem:[%s6107_s3 + $0x328] sm:$0xff] }
  0x61   :  { %1265 = vmatpush.bf16.msra.mxu3 %v3591_v44  ;;  %1227 = vmatmul.bf16.vlgmr.msra.gmra.mxu0 %v335_v35  ;;  %v3612_v44 = vld [vmem:[%s6107_s3 + $0x368] sm:$0xff] }
  0x62   :  { %1271 = vmatpush.bf16.msrb.mxu0 %v3606_v45  ;;  %1240 = vmatmul.bf16.vlgmr.msra.gmra.mxu1 %v336_v32  ;;  %v3620_v45 = vld [vmem:[%s6107_s3 + $0x3a8] sm:$0xff]  ;;  %v3617_v32 = vld [vmem:[%s6107_s3 + $0x390] sm:$0xff] }
  0x63   :  { %1284 = vmatpush.bf16.msrb.mxu1 %v3614_v46  ;;  %1253 = vmatmul.bf16.vlgmr.msra.gmra.mxu2 %v337_v59  ;;  %v3628_v35 = vld [vmem:[%s6107_s3 + $0x3e8] sm:$0xff]  ;;  %v3603_v59 = vld [vmem:[%s6107_s3 + $0x320] sm:$0xff] }
  0x64   :  { %1297 = vmatpush.bf16.msrb.mxu2 %v3622_v60  ;;  %1266 = vmatmul.bf16.vlgmr.msra.gmra.mxu3 %v338_v34  ;;  %v3627_v46 = vld [vmem:[%s6107_s3 + $0x3e0] sm:$0xff]  ;;  %v3601_v60 = vld [vmem:[%s6107_s3 + $0x310] sm:$0xff] }
  0x65   :  { %1310 = vmatpush.bf16.msrb.mxu3 %v3630_v61  ;;  %v3609_v61 = vld [vmem:[%s6107_s3 + $0x350] sm:$0xff] }
  0x66   :  { %1272 = vmatpush.bf16.msrb.mxu0 %v3605_v63  ;;  %v3619_v63 = vld [vmem:[%s6107_s3 + $0x3a0] sm:$0xff]  ;;  %v3625_v34 = vld [vmem:[%s6107_s3 + $0x3d0] sm:$0xff] }
  0x67   :  { %1285 = vmatpush.bf16.msrb.mxu1 %v3613_v62  ;;  %v3611_v62 = vld [vmem:[%s6107_s3 + $0x360] sm:$0xff] }
  0x68   :  { %1298 = vmatpush.bf16.msrb.mxu2 %v3621_v36  ;;  %v3600_v36 = vld [vmem:[%s6107_s3 + $0x308] sm:$0xff] }
  0x69   :  { %1311 = vmatpush.bf16.msrb.mxu3 %v3629_v37  ;;  %v3608_v37 = vld [vmem:[%s6107_s3 + $0x348] sm:$0xff] }
  0x6a   :  { %1273 = vmatpush.bf16.msrb.mxu0 %v3604_v43  ;;  %v3616_v43 = vld [vmem:[%s6107_s3 + $0x388] sm:$0xff] }
  0x6b   :  { %1286 = vmatpush.bf16.msrb.mxu1 %v3612_v44  ;;  %v3624_v44 = vld [vmem:[%s6107_s3 + $0x3c8] sm:$0xff] }
  0x6c   :  { %1299 = vmatpush.bf16.msrb.mxu2 %v3620_v45  ;;  %v3599_v45 = vld [vmem:[%s6107_s3 + $0x300] sm:$0xff] }
  0x6d   :  { %1312 = vmatpush.bf16.msrb.mxu3 %v3628_v35  ;;  %v3607_v35 = vld [vmem:[%s6107_s3 + $0x340] sm:$0xff] }
  0x6e   :  { %1274 = vmatpush.bf16.msrb.mxu0 %v3603_v59  ;;  %v3615_v59 = vld [vmem:[%s6107_s3 + $0x380] sm:$0xff] }
  0x6f   :  { %1287 = vmatpush.bf16.msrb.mxu1 %v3611_v62  ;;  %v3623_v62 = vld [vmem:[%s6107_s3 + $0x3c0] sm:$0xff] }
  0x70   :  { %1300 = vmatpush.bf16.msrb.mxu2 %v3619_v63  ;;  %v307_v63 = vld.sshfl [vmem:[#allocation1 + $0x20] sm:$0xff pattern:$0x73625140] }
  0x71   :  { %1313 = vmatpush.bf16.msrb.mxu3 %v3627_v46  ;;  %v308_v46 = vld.sshfl [vmem:[#allocation1 + $0x28] sm:$0xff pattern:$0x73625140] }
  0x72   :  { %1275 = vmatpush.bf16.msrb.mxu0 %v3602_v56  ;;  %v309_v56 = vld.sshfl [vmem:[#allocation1 + $0x30] sm:$0xff pattern:$0x73625140] }
  0x73   :  { %1288 = vmatpush.bf16.msrb.mxu1 %v3610_v58  ;;  %v310_v58 = vld.sshfl [vmem:[#allocation1 + $0x38] sm:$0xff pattern:$0x73625140] }
  0x74   :  { %1301 = vmatpush.bf16.msrb.mxu2 %v3618_v42  ;;  %v339_v42 = vpack.c.bf16 %v307_v63, %v307_v63 }
  0x75   :  { %1314 = vmatpush.bf16.msrb.mxu3 %v3626_v20  ;;  %v340_v20 = vpack.c.bf16 %v308_v46, %v308_v46 }
  0x76   :  { %1276 = vmatpush.bf16.msrb.mxu0 %v3601_v60  ;;  %v341_v60 = vpack.c.bf16 %v309_v56, %v309_v56 }
  0x77   :  { %1289 = vmatpush.bf16.msrb.mxu1 %v3609_v61  ;;  %v342_v61 = vpack.c.bf16 %v310_v58, %v310_v58 }
  0x78   :  { %1302 = vmatpush.bf16.msrb.mxu2 %v3617_v32 }
  0x79   :  { %1315 = vmatpush.bf16.msrb.mxu3 %v3625_v34 }
  0x7a   :  { %1277 = vmatpush.bf16.msrb.mxu0 %v3600_v36 }
  0x7b   :  { %1290 = vmatpush.bf16.msrb.mxu1 %v3608_v37 }
  0x7c   :  { %1303 = vmatpush.bf16.msrb.mxu2 %v3616_v43 }
  0x7d   :  { %1316 = vmatpush.bf16.msrb.mxu3 %v3624_v44 }
  0x7e   :  { %1278 = vmatpush.bf16.msrb.mxu0 %v3599_v45 }
  0x7f   :  { %1291 = vmatpush.bf16.msrb.mxu1 %v3607_v35 }
  0x80   :  { %1304 = vmatpush.bf16.msrb.mxu2 %v3615_v59 }
  0x81   :  { %1317 = vmatpush.bf16.msrb.mxu3 %v3623_v62  ;;  %1279 = vmatmul.bf16.vlgmr.msrb.gmra.mxu0 %v339_v42 }
  0x82   :  { %1796 = vmatpush.bf16.msra.mxu0 %v3914_v0  ;;  %1292 = vmatmul.bf16.vlgmr.msrb.gmra.mxu1 %v340_v20  ;;  %v3656_v0 = vld [vmem:[%s6109_s4] ss:$0 sm:$0xff] }
  0x83   :  { %1809 = vmatpush.bf16.msra.mxu1 %v3919_v1  ;;  %1305 = vmatmul.bf16.vlgmr.msrb.gmra.mxu2 %v341_v60 }
  0x84   :  { %1318 = vmatmul.bf16.vlgmr.msrb.gmra.mxu3 %v342_v61  ;;  %1822 = vmatpush.bf16.msra.mxu2 %v3924_v2 }
  0x85   :  { %1835 = vmatpush.bf16.msra.mxu3 %v3929_v3 }
  0x86   :  { %1797 = vmatpush.bf16.msra.mxu0 %v3936_v4 }
  0x87   :  { %1810 = vmatpush.bf16.msra.mxu1 %v3941_v5 }
  0x88   :  { %1823 = vmatpush.bf16.msra.mxu2 %v3948_v6 }
  0x89   :  { %1836 = vmatpush.bf16.msra.mxu3 %v3953_v7 }
  0x8a   :  { %1798 = vmatpush.bf16.msra.mxu0 %v3960_v8  ;;  %v6206_v8 = vld [vmem:[#allocation6_spill] sm:$0xff] }
  0x8b   :  { %1811 = vmatpush.bf16.msra.mxu1 %v3965_v9  ;;  %v6207_v9 = vld [vmem:[#allocation7_spill] sm:$0xff] }
  0x8c   :  { %1824 = vmatpush.bf16.msra.mxu2 %v3972_v10 }
  0x8d   :  { %1837 = vmatpush.bf16.msra.mxu3 %v3977_v11  ;;  %v6208_v11 = vld [vmem:[#allocation8_spill] sm:$0xff] }
  0x8e   :  { %1799 = vmatpush.bf16.msra.mxu0 %v3984_v12  ;;  %v6209_v12 = vld [vmem:[#allocation9_spill] sm:$0xff] }
  0x8f   :  { %1812 = vmatpush.bf16.msra.mxu1 %v3989_v13 }
  0x90   :  { %1825 = vmatpush.bf16.msra.mxu2 %v3996_v14 }
  0x91   :  { %1838 = vmatpush.bf16.msra.mxu3 %v4001_v15  ;;  %v6210_v15 = vld [vmem:[#allocation10_spill] sm:$0xff] }
  0x92   :  { %1800 = vmatpush.bf16.msra.mxu0 %v4008_v16  ;;  %v6211_v16 = vld [vmem:[#allocation11_spill] sm:$0xff] }
  0x93   :  { %1813 = vmatpush.bf16.msra.mxu1 %v4013_v17  ;;  %v6212_v17 = vld [vmem:[#allocation12_spill] sm:$0xff] }
  0x94   :  { %1826 = vmatpush.bf16.msra.mxu2 %v4020_v18  ;;  %v6213_v18 = vld [vmem:[#allocation13_spill] sm:$0xff] }
  0x95   :  { %1839 = vmatpush.bf16.msra.mxu3 %v4025_v19 }
  0x96   :  { %1801 = vmatpush.bf16.msra.mxu0 %v4037_v21 }
  0x97   :  { %1814 = vmatpush.bf16.msra.mxu1 %v4042_v22  ;;  %v6214_v22 = vld [vmem:[#allocation14_spill] sm:$0xff] }
  0x98   :  { %1827 = vmatpush.bf16.msra.mxu2 %v4050_v23  ;;  %v6215_v23 = vld [vmem:[#allocation15_spill] sm:$0xff] }
  0x99   :  { %1840 = vmatpush.bf16.msra.mxu3 %v4055_v24  ;;  %v6216_v24 = vld [vmem:[#allocation16_spill] sm:$0xff] }
  0x9a   :  { %1802 = vmatpush.bf16.msra.mxu0 %v4062_v25  ;;  %v6217_v25 = vld [vmem:[#allocation17_spill] sm:$0xff] }
  0x9b   :  { %1815 = vmatpush.bf16.msra.mxu1 %v4067_v26  ;;  %v6218_v26 = vld [vmem:[#allocation18_spill] sm:$0xff] }
  0x9c   :  { %1828 = vmatpush.bf16.msra.mxu2 %v4074_v27  ;;  %v6219_v27 = vld [vmem:[#allocation19_spill] sm:$0xff] }
  0x9d   :  { %1841 = vmatpush.bf16.msra.mxu3 %v4079_v28  ;;  %v6220_v28 = vld [vmem:[#allocation20_spill] sm:$0xff] }
  0x9e   :  { %1803 = vmatpush.bf16.msra.mxu0 %v4084_v29  ;;  %v1124_v1 = vpop.f32.mrf.mxu0  ;;  %v6221_v29 = vld [vmem:[#allocation21_spill] sm:$0xff] }
  0x9f   :  { %1816 = vmatpush.bf16.msra.mxu1 %v4089_v30  ;;  %v1125_v2 = vadd.f32 %v3656_v0, %v1124_v1  ;;  %v1137_v3 = vpop.f32.mrf.mxu1  ;;  %v6222_v30 = vld [vmem:[#allocation22_spill] sm:$0xff] }
  0xa0   :  { %1829 = vmatpush.bf16.msra.mxu2 %v4094_v31  ;;  %v6223_v31 = vld [vmem:[#allocation23_spill] sm:$0xff] }
  0xa1   :  { %1842 = vmatpush.bf16.msra.mxu3 %v4101_v33  ;;  %v1138_v4 = vadd.f32 %v1137_v3, %v1125_v2 }
  0xa2   :  { %1848 = vmatpush.bf16.msrb.mxu0 %v4113_v38 }
  0xa3   :  { %1861 = vmatpush.bf16.msrb.mxu1 %v4118_v39 }
  0xa4   :  { %1874 = vmatpush.bf16.msrb.mxu2 %v4124_v40 }
  0xa5   :  { %1887 = vmatpush.bf16.msrb.mxu3 %v4129_v41 }
  0xa6   :  { %1849 = vmatpush.bf16.msrb.mxu0 %v4146_v47  ;;  %v1150_v5 = vpop.f32.mrf.mxu2  ;;  %v1126_v10 = vpop.f32.mrf.mxu0 }
  0xa7   :  { %1862 = vmatpush.bf16.msrb.mxu1 %v4151_v48  ;;  %v1151_v6 = vadd.f32 %v1150_v5, %v1138_v4  ;;  %v1163_v7 = vpop.f32.mrf.mxu3  ;;  %v1139_v14 = vpop.f32.mrf.mxu1  ;;  %v3860_v10 = vmov 0  }
  0xa8   :  { %1875 = vmatpush.bf16.msrb.mxu2 %v4158_v49  ;;  %3643 = vset.pattern.permute.xlu1 %v3860_v10 }
  0xa9   :  { %1888 = vmatpush.bf16.msrb.mxu3 %v4163_v50  ;;  %v1164_v13 = vadd.f32 %v1163_v7, %v1151_v6 }
  0xaa   :  { %1850 = vmatpush.bf16.msrb.mxu0 %v4170_v51 }
  0xab   :  { %1863 = vmatpush.bf16.msrb.mxu1 %v4175_v52 }
  0xac   :  { %1876 = vmatpush.bf16.msrb.mxu2 %v4182_v53 }
  0xad   :  { %1889 = vmatpush.bf16.msrb.mxu3 %v4187_v54 }
  0xae   :  { %1851 = vmatpush.bf16.msrb.mxu0 %v4192_v55  ;;  %v1152_v19 = vpop.f32.mrf.mxu2 }
  0xaf   :  { %1864 = vmatpush.bf16.msrb.mxu1 %v4199_v57  ;;  %v1165_v21 = vpop.f32.mrf.mxu3 }
  0xb0   :  { %1877 = vmatpush.bf16.msrb.mxu2 %v6206_v8 }
  0xb1   :  { %1890 = vmatpush.bf16.msrb.mxu3 %v6207_v9  ;;  %v3859_v9 = vmov 2  }
  0xb2   :  { %1852 = vmatpush.bf16.msrb.mxu0 %v6208_v11  ;;  %3645 = vset.pattern.permute.xlu2 %v3859_v9 }
  0xb3   :  { %1865 = vmatpush.bf16.msrb.mxu1 %v6209_v12 }
  0xb4   :  { %1878 = vmatpush.bf16.msrb.mxu2 %v6210_v15 }
  0xb5   :  { %1891 = vmatpush.bf16.msrb.mxu3 %v6211_v16 }
  0xb6   :  { %1853 = vmatpush.bf16.msrb.mxu0 %v6212_v17 }
  0xb7   :  { %1866 = vmatpush.bf16.msrb.mxu1 %v6213_v18 }
  0xb8   :  { %1879 = vmatpush.bf16.msrb.mxu2 %v6214_v22 }
  0xb9   :  { %1892 = vmatpush.bf16.msrb.mxu3 %v6215_v23 }
  0xba   :  { %1854 = vmatpush.bf16.msrb.mxu0 %v6216_v24  ;;  %v3861_v24 = vmov 3  }
  0xbb   :  { %1867 = vmatpush.bf16.msrb.mxu1 %v6217_v25  ;;  %v3862_v25 = vmov 1  }
  0xbc   :  { %1880 = vmatpush.bf16.msrb.mxu2 %v6218_v26  ;;  %v4594_v26 = vld [vmem:[%s6111_s1] sm:$0xff] }
  0xbd   :  { %1893 = vmatpush.bf16.msrb.mxu3 %v6219_v27  ;;  %v4599_v27 = vld [vmem:[%s6111_s1 + $0x8] sm:$0xff] }
  0xbe   :  { %1855 = vmatpush.bf16.msrb.mxu0 %v6220_v28  ;;  %v1176_v33 = vpop.f32.mrf.mxu0  ;;  %v4604_v28 = vld [vmem:[%s6111_s1 + $0x10] sm:$0xff] }
  0xbf   :  { %1868 = vmatpush.bf16.msrb.mxu1 %v6221_v29  ;;  %v1189_v38 = vpop.f32.mrf.mxu1  ;;  %v1177_v52 = vadd.f32 %v1176_v33, %v1164_v13  ;;  %v4609_v29 = vld [vmem:[%s6111_s1 + $0x18] sm:$0xff]  ;;  %v4624_v33 = vld [vmem:[%s6111_s1 + $0x30] sm:$0xff] }
  0xc0   :  { %1881 = vmatpush.bf16.msrb.mxu2 %v6222_v30  ;;  %v4614_v30 = vld [vmem:[%s6111_s1 + $0x20] sm:$0xff] }
  0xc1   :  { %1894 = vmatpush.bf16.msrb.mxu3 %v6223_v31  ;;  %v1190_v57 = vadd.f32 %v1189_v38, %v1177_v52  ;;  %v4619_v31 = vld [vmem:[%s6111_s1 + $0x28] sm:$0xff]  ;;  %v4629_v38 = vld [vmem:[%s6111_s1 + $0x38] sm:$0xff]  ;;  %v1529_v52 = vperm.slane %v4614_v30, 2  ;;  %v1613_v9 = vperm.slane %v4614_v30, 3  ;;  %v1614_v10 = vperm.slane %v4614_v30, 7 }
  0xc6   :  { %v1202_v39 = vpop.f32.mrf.mxu2  ;;  %v1178_v41 = vpop.f32.mrf.mxu0 }
  0xc7   :  { %v1215_v40 = vpop.f32.mrf.mxu3  ;;  %v1191_v47 = vpop.f32.mrf.mxu1  ;;  %v1203_v34 = vadd.f32 %v1202_v39, %v1190_v57  ;;  %v1521_v39 = vperm.slane %v4594_v26, 2  ;;  %v1523_v41 = vperm.slane %v4599_v27, 2  ;;  %v1533_v57 = vperm.slane %v4624_v33, 2 }
  0xc8   :  { %v1524_v47 = vperm.slane %v4599_v27, 6 }
  0xc9   :  { %v1216_v43 = vadd.f32 %v1215_v40, %v1203_v34  ;;  %v1522_v40 = vperm.slane %v4594_v26, 6  ;;  %v1535_v34 = vperm.slane %v4629_v38, 2 }
  0xce   :  { %v1204_v48 = vpop.f32.mrf.mxu2 }
  0xcf   :  { %v1217_v49 = vpop.f32.mrf.mxu3  ;;  %v1525_v48 = vperm.slane %v4604_v28, 2 }
  0xd0   :  { %v1526_v49 = vperm.slane %v4604_v28, 6 }
  0xde   :  { %v1228_v50 = vpop.f32.mrf.mxu0 }
  0xdf   :  { %v1241_v51 = vpop.f32.mrf.mxu1  ;;  %v1229_v44 = vadd.f32 %v1228_v50, %v1216_v43  ;;  %v1527_v50 = vperm.slane %v4609_v29, 2  ;;  %v4649_v43 = vperm.slane %v1522_v40, 2  ;;  %v4713_v40 = vperm.slane %v1614_v10, 3 }
  0xe1   :  { %v1242_v45 = vadd.f32 %v1241_v51, %v1229_v44  ;;  %v1528_v51 = vperm.slane %v4609_v29, 6  ;;  %v4651_v44 = vperm.slane %v1523_v41, 2 }
  0xe6   :  { %v1254_v53 = vpop.f32.mrf.mxu2  ;;  %v1230_v55 = vpop.f32.mrf.mxu0 }
  0xe7   :  { %v1267_v54 = vpop.f32.mrf.mxu3  ;;  %v1243_v32 = vpop.f32.mrf.mxu1  ;;  %v1255_v35 = vadd.f32 %v1254_v53, %v1242_v45  ;;  %v1530_v53 = vperm.slane %v4614_v30, 6  ;;  %v1532_v55 = vperm.slane %v4619_v31, 6  ;;  %v4653_v45 = vperm.slane %v1524_v47, 2 }
  0xe8   :  { %v1534_v32 = vperm.slane %v4624_v33, 6 }
  0xe9   :  { %v1268_v59 = vadd.f32 %v1267_v54, %v1255_v35  ;;  %v1531_v54 = vperm.slane %v4619_v31, 2  ;;  %v4655_v35 = vperm.slane %v1525_v48, 2 }
  0xee   :  { %v1256_v36 = vpop.f32.mrf.mxu2 }
  0xef   :  { %v1269_v37 = vpop.f32.mrf.mxu3  ;;  %v1536_v36 = vperm.slane %v4629_v38, 6 }
  0xf0   :  { %v4647_v37 = vperm.slane %v1521_v39, 2  ;;  %v4711_v39 = vperm.slane %v1613_v9, 3 }
  0xfe   :  { %v1280_v62 = vpop.f32.mrf.mxu0 }
  0xff   :  { %v1293_v63 = vpop.f32.mrf.mxu1  ;;  %v1281_v46 = vadd.f32 %v1280_v62, %v1268_v59  ;;  %v4657_v59 = vperm.slane %v1526_v49, 2  ;;  %v4659_v62 = vperm.slane %v1527_v50, 2 }
 0x101   :  { %v1294_v56 = vadd.f32 %v1293_v63, %v1281_v46  ;;  %v4661_v63 = vperm.slane %v1528_v51, 2  ;;  %v4663_v46 = vperm.slane %v1529_v52, 2  ;;  %v1369_v52 = vperm.slane %v4594_v26, 0 }
 0x103   :  { %v4743_v9 = vperm.slane %v1369_v52, 0 }
 0x106   :  { %v1306_v58 = vpop.f32.mrf.mxu2  ;;  %v1282_v60 = vpop.f32.mrf.mxu0 }
 0x107   :  { %v1319_v42 = vpop.f32.mrf.mxu3  ;;  %v1307_v20 = vadd.f32 %v1306_v58, %v1294_v56  ;;  %v1295_v61 = vpop.f32.mrf.mxu1  ;;  %v4665_v56 = vperm.slane %v1530_v53, 2  ;;  %v4667_v58 = vperm.slane %v1531_v54, 2  ;;  %v4673_v60 = vperm.slane %v1534_v32, 2 }
 0x108   :  { %v4675_v61 = vperm.slane %v1535_v34, 2  ;;  %v1370_v53 = vperm.slane %v4594_v26, 4  ;;  %v1371_v54 = vperm.slane %v4599_v27, 0  ;;  %v1374_v32 = vperm.slane %v4604_v28, 4 }
 0x109   :  { %v1320_v0 = vadd.f32 %v1319_v42, %v1307_v20  ;;  %v4669_v42 = vperm.slane %v1532_v55, 2  ;;  %v4671_v20 = vperm.slane %v1533_v57, 2  ;;  %v1372_v55 = vperm.slane %v4599_v27, 4 }
 0x10a   :  { %v1373_v57 = vperm.slane %v4604_v28, 0  ;;  %v1375_v34 = vperm.slane %v4609_v29, 0  ;;  %v4745_v10 = vperm.slane %v1370_v53, 0 }
 0x10b   :  { %v1324_v1 = vsel %vm1323_vm0, %v1320_v0, -inf  ;;  %3502 = vst [vmem:[%s6110_s7 + $0x4] sm:$0x3] %v1320_v0 }
 0x10c   :  { %1325 = vmax.xlane.f32.xlu0 %v1324_v1  ;;  %v1605_v1 = vperm.slane %v4594_v26, 3  ;;  %6226 = vst [vmem:[#allocation8_spill] sm:$0xff] %v4745_v10 }
 0x10e   :  { %v1308_v2 = vpop.f32.mrf.mxu2 }
 0x10f   :  { %v1321_v3 = vpop.f32.mrf.mxu3  ;;  %v1606_v2 = vperm.slane %v4594_v26, 7 }
 0x110   :  { %v1607_v3 = vperm.slane %v4599_v27, 3 }
 0x17f   :  { %v1326_v4 = vpop.xlane.xlu0 %1325 }
 0x180   :  { %v1327_v5 = vsub.f32 %v1320_v0, %v1326_v4  ;;  %v4677_v0 = vperm.slane %v1536_v36, 2  ;;  %v1608_v4 = vperm.slane %v4599_v27, 7  ;;  %v1376_v36 = vperm.slane %v4609_v29, 4 }
 0x182   :  { %v1328_v6 = vmul.f32 1.442695, %v1327_v5  ;;  %v1609_v5 = vperm.slane %v4604_v28, 3 }
 0x184   :  { %3659 = vpow2.f32 %v1328_v6  ;;  %v1610_v6 = vperm.slane %v4604_v28, 7 }
 0x18a   :  { %v3660_v7 = vpop.eup %3659 }
 0x18b   :  { %v1330_v8 = vsel %vm1323_vm0, %v3660_v7, 0.0 }
 0x18c   :  { %1331 = vadd.xlane.f32.xlu0 %v1330_v8  ;;  %v1612_v8 = vperm.slane %v4609_v29, 7 }
 0x1ff   :  { %v1332_v11 = vpop.xlane.xlu0 %1331 }
 0x200   :  { %3661 = vrcp.f32 %v1332_v11  ;;  %v1344_v15 = vand.u32 2147483648, %v1332_v11  ;;  %v1342_v17 = vand.u32 2147483647, %v1332_v11  ;;  %vm1338_vm2 = vweird.f32 %v1332_v11 }
 0x202   :  { %v1345_v19 = vor.u32 1.1754944e-38, %v1344_v15  ;;  %vm1343_vm4 = vcmp.eq.f32.partialorder %v1342_v17, 8.507059e+37  ;;  %v1619_v15 = vperm.slane %v4629_v38, 3  ;;  %v4695_v17 = vperm.slane %v1605_v1, 3 }
 0x203   :  { %v1377_v1 = vperm.slane %v4614_v30, 0 }
 0x204   :  { %v4723_v50 = vperm.slane %v1619_v15, 3  ;;  %v4755_v15 = vperm.slane %v1375_v34, 0  ;;  %v1437_v34 = vperm.slane %v4594_v26, 1 }
 0x206   :  { %v3662_v12 = vpop.eup %3661 }
 0x207   :  { %v1334_v13 = vmul.f32 %v3662_v12, %v1332_v11  ;;  %vm1339_vm1 = vweird.f32 %v3662_v12  ;;  %v1615_v11 = vperm.slane %v4619_v31, 3 }
 0x208   :  { %vm1340_vm3 = vmor %vm1338_vm2, %vm1339_vm1 }
 0x209   :  { %v1335_v14 = vsub.f32 1.0, %v1334_v13  ;;  %v1617_v13 = vperm.slane %v4624_v33, 3  ;;  %v4715_v41 = vperm.slane %v1615_v11, 3  ;;  %v4747_v11 = vperm.slane %v1371_v54, 0 }
 0x20b   :  { %v1336_v16 = vmul.f32 %v3662_v12, %v1335_v14  ;;  %v1618_v14 = vperm.slane %v4624_v33, 7  ;;  %v4719_v48 = vperm.slane %v1617_v13, 3  ;;  %v4751_v13 = vperm.slane %v1373_v57, 0 }
 0x20d   :  { %v1337_v18 = vadd.f32 %v3662_v12, %v1336_v16  ;;  %v1620_v16 = vperm.slane %v4629_v38, 7  ;;  %6224 = vst [vmem:[#allocation6_spill] sm:$0xff] %v4719_v48  ;;  %v4721_v49 = vperm.slane %v1618_v14, 3  ;;  %v4753_v14 = vperm.slane %v1374_v32, 0 }
 0x20e   :  { %v4759_v48 = vperm.slane %v1377_v1, 0  ;;  %v1439_v1 = vperm.slane %v4599_v27, 1 }
 0x20f   :  { %v1341_v21 = vsel %vm1340_vm3, %v3662_v12, %v1337_v18  ;;  %v1616_v12 = vperm.slane %v4619_v31, 7  ;;  %v4697_v18 = vperm.slane %v1606_v2, 3  ;;  %v4725_v51 = vperm.slane %v1620_v16, 3 }
 0x210   :  { %v1346_v22 = vsel %vm1343_vm4, %v1345_v19, %v1341_v21  ;;  %v4699_v19 = vperm.slane %v1607_v3, 3  ;;  %v4701_v21 = vperm.slane %v1608_v4, 3  ;;  %v1378_v2 = vperm.slane %v4614_v30, 4  ;;  %6227 = vst [vmem:[#allocation9_spill] sm:$0xff] %v4759_v48 }
 0x211   :  { %v1347_v23 = vmul.f32 %v3660_v7, %v1346_v22  ;;  %v1611_v7 = vperm.slane %v4609_v29, 3  ;;  %v4703_v22 = vperm.slane %v1609_v5, 3  ;;  %v4717_v47 = vperm.slane %v1616_v12, 3  ;;  %6225 = vst [vmem:[#allocation7_spill] sm:$0xff] %v4725_v51 }
 0x212   :  { %v1379_v3 = vperm.slane %v4619_v31, 0  ;;  %v1380_v4 = vperm.slane %v4619_v31, 4  ;;  %v1381_v5 = vperm.slane %v4624_v33, 0  ;;  %v4749_v12 = vperm.slane %v1372_v55, 0 }
 0x213   :  { %1518 = vperm.xlu2 %3645, %v1347_v23   ;;  %1358 = vperm.xlu1 %3643, %v1347_v23   ;;  %v4757_v16 = vperm.slane %v1376_v36, 0  ;;  %v4761_v51 = vperm.slane %v1378_v2, 0  ;;  %v1438_v36 = vperm.slane %v4594_v26, 5  ;;  %v1440_v2 = vperm.slane %v4599_v27, 5 }
 0x214   :  { %v4763_v52 = vperm.slane %v1379_v3, 0  ;;  %v4765_v10 = vperm.slane %v1380_v4, 0  ;;  %v4767_v54 = vperm.slane %v1381_v5, 0  ;;  %v1441_v3 = vperm.slane %v4604_v28, 1 }
 0x215   :  { %6228 = vst [vmem:[#allocation10_spill] sm:$0xff] %v4761_v51  ;;  %v1442_v4 = vperm.slane %v4604_v28, 5  ;;  %v1443_v5 = vperm.slane %v4609_v29, 1  ;;  %v1448_v26 = vperm.slane %v4619_v31, 5  ;;  %v1450_v27 = vperm.slane %v4624_v33, 5 }
 0x216   :  { %6229 = vst [vmem:[#allocation11_spill] sm:$0xff] %v4763_v52  ;;  %v1452_v28 = vperm.slane %v4629_v38, 5  ;;  %v1472_v51 = vperm.slane %v1440_v2, 1 }
 0x217   :  { %6230 = vst [vmem:[#allocation12_spill] sm:$0xff] %v4765_v10  ;;  %v1470_v10 = vperm.slane %v1438_v36, 1 }
 0x218   :  { %6231 = vst [vmem:[#allocation13_spill] sm:$0xff] %v4767_v54  ;;  %v4791_v54 = vperm.slane %v1437_v34, 1 }
 0x21b   :  { %3646 = vset.pattern.permute.xlu2 %v3861_v24  ;;  %3644 = vset.pattern.permute.xlu1 %v3862_v25  ;;  %v4707_v24 = vperm.slane %v1611_v7, 3  ;;  %v4709_v25 = vperm.slane %v1612_v8, 3  ;;  %v1383_v7 = vperm.slane %v4629_v38, 0  ;;  %v1384_v8 = vperm.slane %v4629_v38, 4 }
 0x21c   :  { %1602 = vperm.xlu2 %3646, %v1347_v23   ;;  %1434 = vperm.xlu1 %3644, %v1347_v23   ;;  %v4705_v23 = vperm.slane %v1610_v6, 3  ;;  %v1382_v6 = vperm.slane %v4624_v33, 4 }
 0x21d   :  { %v4771_v57 = vperm.slane %v1383_v7, 0  ;;  %v4773_v32 = vperm.slane %v1384_v8, 0  ;;  %v1445_v7 = vperm.slane %v4614_v30, 1  ;;  %v1446_v8 = vperm.slane %v4614_v30, 5 }
 0x21e   :  { %v4769_v55 = vperm.slane %v1382_v6, 0  ;;  %v1444_v6 = vperm.slane %v4609_v29, 5  ;;  %v1471_v29 = vperm.slane %v1439_v1, 1  ;;  %v1474_v1 = vperm.slane %v1442_v4, 1  ;;  %v6255_v4 = vld [vmem:[#allocation8_spill] sm:$0xff] }
 0x21f   :  { %6233 = vst [vmem:[#allocation15_spill] sm:$0xff] %v4771_v57  ;;  %v1449_v57 = vperm.slane %v4624_v33, 1 }
 0x220   :  { %6232 = vst [vmem:[#allocation14_spill] sm:$0xff] %v4769_v55  ;;  %v1451_v55 = vperm.slane %v4629_v38, 1  ;;  %v1476_v2 = vperm.slane %v1444_v6, 1 }
 0x221   :  { %6234 = vst [vmem:[#allocation16_spill] sm:$0xff] %v4773_v32  ;;  %v1447_v32 = vperm.slane %v4619_v31, 1 }
 0x26d   :  { %v1519_v53 = vpop.permute.xlu2 %1518 }
 0x26e   :  { %v4794_v52 = vmul.f32 %v4647_v37, %v1519_v53  ;;  %v4797_v30 = vmul.f32 %v4649_v43, %v1519_v53  ;;  %v4800_v31 = vmul.f32 %v4651_v44, %v1519_v53  ;;  %v4803_v33 = vmul.f32 %v4653_v45, %v1519_v53 }
 0x26f   :  { %v4806_v48 = vmul.f32 %v4655_v35, %v1519_v53  ;;  %v4809_v38 = vmul.f32 %v4657_v59, %v1519_v53  ;;  %v4812_v34 = vmul.f32 %v4659_v62, %v1519_v53  ;;  %v4815_v37 = vmul.f32 %v4661_v63, %v1519_v53 }
 0x270   :  { %v4818_v43 = vmul.f32 %v4663_v46, %v1519_v53  ;;  %v4821_v44 = vmul.f32 %v4665_v56, %v1519_v53  ;;  %v4824_v45 = vmul.f32 %v4667_v58, %v1519_v53  ;;  %v4827_v35 = vmul.f32 %v4669_v42, %v1519_v53 }
 0x271   :  { %6235 = vst [vmem:[#allocation17_spill] sm:$0xff] %v4806_v48  ;;  %v4830_v59 = vmul.f32 %v4671_v20, %v1519_v53  ;;  %v4833_v62 = vmul.f32 %v4673_v60, %v1519_v53  ;;  %v4836_v63 = vmul.f32 %v4675_v61, %v1519_v53  ;;  %v4841_v56 = vmul.f32 %v4677_v0, %v1519_v53 }
 0x272   :  { %6236 = vst [vmem:[#allocation18_spill] sm:$0xff] %v4818_v43  ;;  %v1473_v58 = vperm.slane %v1441_v3, 1  ;;  %v1475_v42 = vperm.slane %v1443_v5, 1  ;;  %v1477_v43 = vperm.slane %v1445_v7, 1  ;;  %v1478_v20 = vperm.slane %v1446_v8, 1 }
 0x273   :  { %6237 = vst [vmem:[#allocation19_spill] sm:$0xff] %v4830_v59  ;;  %v1479_v59 = vperm.slane %v1447_v32, 1  ;;  %v1480_v48 = vperm.slane %v1448_v26, 1  ;;  %v4845_v60 = vperm.slane %v1449_v57, 1  ;;  %v1483_v61 = vperm.slane %v1451_v55, 1  ;;  %v6253_v57 = vld [vmem:[#allocation7_spill] sm:$0xff] }
 0x274   :  { %6238 = vst [vmem:[#allocation20_spill] sm:$0xff] %v4833_v62  ;;  %v1482_v62 = vperm.slane %v1450_v27, 1  ;;  %v1484_v3 = vperm.slane %v1452_v28, 1  ;;  %v6256_v26 = vld [vmem:[#allocation9_spill] sm:$0xff] }
 0x275   :  { %6239 = vst [vmem:[#allocation21_spill] sm:$0xff] %v4836_v63 }
 0x276   :  { %6240 = vst [vmem:[#allocation22_spill] sm:$0xff] %v4841_v56  ;;  %v4843_v36 = vpop.permute.xlu2 %1602 }
 0x277   :  { %6241 = vst [vmem:[#allocation23_spill] sm:$0xff] %v4843_v36  ;;  %v4849_v63 = vmul.f32 %v4695_v17, %v4843_v36  ;;  %v4853_v0 = vmul.f32 %v4697_v18, %v4843_v36  ;;  %v4857_v53 = vmul.f32 %v4699_v19, %v4843_v36  ;;  %v4861_v32 = vmul.f32 %v4701_v21, %v4843_v36 }
 0x278   :  { %v4865_v55 = vmul.f32 %v4703_v22, %v4843_v36  ;;  %v4869_v17 = vmul.f32 %v4705_v23, %v4843_v36  ;;  %v4873_v18 = vmul.f32 %v4707_v24, %v4843_v36  ;;  %v4877_v19 = vmul.f32 %v4709_v25, %v4843_v36 }
 0x279   :  { %6242 = vst [vmem:[#allocation24_spill] sm:$0xff] %v4849_v63  ;;  %v4881_v21 = vmul.f32 %v4711_v39, %v4843_v36  ;;  %v4885_v22 = vmul.f32 %v4713_v40, %v4843_v36  ;;  %v4889_v23 = vmul.f32 %v4715_v41, %v4843_v36  ;;  %v4893_v24 = vmul.f32 %v4717_v47, %v4843_v36 }
 0x27a   :  { %6243 = vst [vmem:[#allocation25_spill] sm:$0xff] %v4865_v55  ;;  %v4897_v25 = vmul.f32 %v4721_v49, %v4843_v36  ;;  %v4901_v39 = vmul.f32 %v4723_v50, %v4843_v36  ;;  %v4905_v40 = vmul.f32 %v6253_v57, %v4843_v36 }
 0x27b   :  { %6244 = vst [vmem:[#allocation26_spill] sm:$0xff] %v4869_v17 }
 0x27c   :  { %6245 = vst [vmem:[#allocation27_spill] sm:$0xff] %v4873_v18 }
 0x27d   :  { %6246 = vst [vmem:[#allocation28_spill] sm:$0xff] %v4877_v19 }
 0x27e   :  { %6247 = vst [vmem:[#allocation29_spill] sm:$0xff] %v4881_v21 }
 0x27f   :  { %6248 = vst [vmem:[#allocation30_spill] sm:$0xff] %v4885_v22 }
 0x280   :  { %6249 = vst [vmem:[#allocation31_spill] sm:$0xff] %v4889_v23 }
 0x281   :  { %6250 = vst [vmem:[#allocation32_spill] sm:$0xff] %v4893_v24 }
 0x282   :  { %6251 = vst [vmem:[#allocation33_spill] sm:$0xff] %v4897_v25 }
 0x283   :  { %6252 = vst [vmem:[#allocation34_spill] sm:$0xff] %v4901_v39 }
 0x284   :  { %6254 = vst [vmem:[#allocation7_spill] sm:$0xff] %v4905_v40 }
 0x285   :  { %v4838_v46 = vpop.permute.xlu1 %1358 }
 0x286   :  { %v1417_v41 = vmul.f32 %v4743_v9, %v4838_v46  ;;  %v1418_v5 = vmul.f32 %v6255_v4, %v4838_v46  ;;  %v1419_v47 = vmul.f32 %v4747_v11, %v4838_v46  ;;  %v1420_v49 = vmul.f32 %v4749_v12, %v4838_v46  ;;  %v6257_v12 = vld [vmem:[#allocation10_spill] sm:$0xff] }
 0x287   :  { %v1421_v50 = vmul.f32 %v4751_v13, %v4838_v46  ;;  %v1422_v6 = vmul.f32 %v4753_v14, %v4838_v46  ;;  %v1423_v7 = vmul.f32 %v4755_v15, %v4838_v46  ;;  %v1424_v9 = vmul.f32 %v4757_v16, %v4838_v46  ;;  %v6258_v14 = vld [vmem:[#allocation11_spill] sm:$0xff]  ;;  %v6259_v15 = vld [vmem:[#allocation12_spill] sm:$0xff]  ;;  %v6260_v16 = vld [vmem:[#allocation13_spill] sm:$0xff] }
 0x288   :  { %v1425_v27 = vmul.f32 %v6256_v26, %v4838_v46  ;;  %v1426_v4 = vmul.f32 %v6257_v12, %v4838_v46  ;;  %v1427_v40 = vmul.f32 %v6258_v14, %v4838_v46  ;;  %v1428_v39 = vmul.f32 %v6259_v15, %v4838_v46 }
 0x289   :  { %v1429_v25 = vmul.f32 %v6260_v16, %v4838_v46 }
 0x28e   :  { %v1435_v8 = vpop.permute.xlu1 %1434 }
 0x28f   :  { %v1486_v11 = vmul.f32 %v1470_v10, %v1435_v8  ;;  %v1487_v28 = vmul.f32 %v1471_v29, %v1435_v8  ;;  %v1488_v57 = vmul.f32 %v1472_v51, %v1435_v8  ;;  %v1490_v13 = vmul.f32 %v1474_v1, %v1435_v8  ;;  %v6261_v10 = vld [vmem:[#allocation14_spill] sm:$0xff]  ;;  %v6262_v51 = vld [vmem:[#allocation15_spill] sm:$0xff] }
 0x290   :  { %v1491_v36 = vmul.f32 %v1475_v42, %v1435_v8  ;;  %v1492_v21 = vmul.f32 %v1476_v2, %v1435_v8  ;;  %v1494_v55 = vmul.f32 %v1478_v20, %v1435_v8  ;;  %v1430_v29 = vmul.f32 %v6261_v10, %v4838_v46  ;;  %v6263_v10 = vld [vmem:[#allocation16_spill] sm:$0xff] }
 0x291   :  { %v1431_v26 = vmul.f32 %v6262_v51, %v4838_v46  ;;  %v1495_v12 = vmul.f32 %v1479_v59, %v1435_v8  ;;  %v1496_v1 = vmul.f32 %v1480_v48, %v1435_v8  ;;  %v1485_v42 = vmul.f32 %v4791_v54, %v1435_v8 }
 0x292   :  { %v1502_v2 = vadd.f32 %v1486_v11, %v1418_v5  ;;  %v1503_v63 = vadd.f32 %v1487_v28, %v1419_v47  ;;  %v1504_v14 = vadd.f32 %v1488_v57, %v1420_v49  ;;  %v1489_v24 = vmul.f32 %v1473_v58, %v1435_v8  ;;  %v6271_v47 = vld [vmem:[#allocation30_spill] sm:$0xff]  ;;  %v6275_v57 = vld [vmem:[#allocation24_spill] sm:$0xff] }
 0x293   :  { %v1506_v23 = vadd.f32 %v1490_v13, %v1422_v6  ;;  %v1507_v15 = vadd.f32 %v1491_v36, %v1423_v7  ;;  %v1508_v22 = vadd.f32 %v1492_v21, %v1424_v9  ;;  %v1498_v56 = vmul.f32 %v1482_v62, %v1435_v8  ;;  %v6274_v7 = vld [vmem:[#allocation32_spill] sm:$0xff]  ;;  %v6276_v13 = vld [vmem:[#allocation25_spill] sm:$0xff] }
 0x294   :  { %v1499_v16 = vmul.f32 %v1483_v61, %v1435_v8  ;;  %v1500_v20 = vmul.f32 %v1484_v3, %v1435_v8  ;;  %v1510_v19 = vadd.f32 %v1494_v55, %v1426_v4  ;;  %v1432_v18 = vmul.f32 %v6263_v10, %v4838_v46 }
 0x295   :  { %v1493_v17 = vmul.f32 %v1477_v43, %v1435_v8  ;;  %v1511_v51 = vadd.f32 %v1495_v12, %v1427_v40  ;;  %v1512_v59 = vadd.f32 %v1496_v1, %v1428_v39  ;;  %v1501_v48 = vadd.f32 %v1485_v42, %v1417_v41  ;;  %v6269_v40 = vld [vmem:[#allocation21_spill] sm:$0xff]  ;;  %v6270_v41 = vld [vmem:[#allocation22_spill] sm:$0xff] }
 0x296   :  { %v1586_v54 = vadd.f32 %v4797_v30, %v1502_v2  ;;  %v1587_v5 = vadd.f32 %v4800_v31, %v1503_v63  ;;  %v1588_v58 = vadd.f32 %v4803_v33, %v1504_v14  ;;  %v1505_v36 = vadd.f32 %v1489_v24, %v1421_v50  ;;  %v6268_v24 = vld [vmem:[#allocation20_spill] sm:$0xff]  ;;  %v6277_v1 = vld [vmem:[#allocation33_spill] sm:$0xff]  ;;  %v6278_v2 = vld [vmem:[#allocation34_spill] sm:$0xff] }
 0x297   :  { %v1590_v62 = vadd.f32 %v4809_v38, %v1506_v23  ;;  %v1591_v61 = vadd.f32 %v4812_v34, %v1507_v15  ;;  %v1592_v3 = vadd.f32 %v4815_v37, %v1508_v22  ;;  %v1514_v46 = vadd.f32 %v1498_v56, %v1430_v29  ;;  %v6264_v56 = vld [vmem:[#allocation17_spill] sm:$0xff]  ;;  %v6279_v14 = vld [vmem:[#allocation7_spill] sm:$0xff] }
 0x298   :  { %v1515_v43 = vadd.f32 %v1499_v16, %v1431_v26  ;;  %v1516_v55 = vadd.f32 %v1500_v20, %v1432_v18  ;;  %v1594_v21 = vadd.f32 %v4821_v44, %v1510_v19  ;;  %v1497_v39 = vmul.f32 %v4845_v60, %v1435_v8  ;;  %v6265_v18 = vld [vmem:[#allocation26_spill] sm:$0xff]  ;;  %v6266_v44 = vld [vmem:[#allocation27_spill] sm:$0xff]  ;;  %v6267_v60 = vld [vmem:[#allocation28_spill] sm:$0xff] }
 0x299   :  { %v1509_v30 = vadd.f32 %v1493_v17, %v1425_v27  ;;  %v1595_v31 = vadd.f32 %v4824_v45, %v1511_v51  ;;  %v1596_v33 = vadd.f32 %v4827_v35, %v1512_v59  ;;  %v1585_v63 = vadd.f32 %v4794_v52, %v1501_v48 }
 0x29a   :  { %v1670_v38 = vadd.f32 %v4853_v0, %v1586_v54  ;;  %v1671_v34 = vadd.f32 %v4857_v53, %v1587_v5  ;;  %v1672_v37 = vadd.f32 %v4861_v32, %v1588_v58  ;;  %v1589_v22 = vadd.f32 %v6264_v56, %v1505_v36  ;;  %v6272_v53 = vld [vmem:[#allocation18_spill] sm:$0xff]  ;;  %v6273_v32 = vld [vmem:[#allocation31_spill] sm:$0xff] }
 0x29b   :  { %v1674_v23 = vadd.f32 %v6265_v18, %v1590_v62  ;;  %v1675_v19 = vadd.f32 %v6266_v44, %v1591_v61  ;;  %v1676_v17 = vadd.f32 %v6267_v60, %v1592_v3  ;;  %v1598_v45 = vadd.f32 %v6268_v24, %v1514_v46  ;;  %v6280_v36 = vld [vmem:[#allocation19_spill] sm:$0xff]  ;;  %v6281_v61 = vld [vmem:[#allocation2_spill] sm:$0xff]  ;;  %v6282_v46 = vld [vmem:[#allocation29_spill] sm:$0xff] }
 0x29c   :  { %v1599_v35 = vadd.f32 %v6269_v40, %v1515_v43  ;;  %v1600_v52 = vadd.f32 %v6270_v41, %v1516_v55  ;;  %v1678_v0 = vadd.f32 %v6271_v47, %v1594_v21  ;;  %v1513_v49 = vadd.f32 %v1497_v39, %v1429_v25  ;;  %v6283_v55 = vld [vmem:[#allocation4_spill] sm:$0xff]  ;;  %v6284_v39 = vld [vmem:[#allocation23_spill] sm:$0xff] }
 0x29d   :  { %v1593_v50 = vadd.f32 %v6272_v53, %v1509_v30  ;;  %v1679_v6 = vadd.f32 %v6273_v32, %v1595_v31  ;;  %v1680_v9 = vadd.f32 %v6274_v7, %v1596_v33  ;;  %v1701_v8 = vrot.slane %v1670_v38, 6  ;;  %v6285_v30 = vld [vmem:[#allocation6_spill] sm:$0xff]  ;;  %v3667_v7 = vld [vmem:[%s6107_s3 + $0x238] sm:$0xff] }
 0x29e   :  { %v1702_v27 = vrot.slane %v1671_v34, 4  ;;  %v1703_v11 = vrot.slane %v1672_v37, 2  ;;  %v1704_v28 = vrot.slane %v1674_v23, 6  ;;  %v1669_v4 = vadd.f32 %v6275_v57, %v1585_v63  ;;  %v3673_v57 = vld [vmem:[%s6107_s3 + $0x2b0] sm:$0xff] }
 0x29f   :  { %v1673_v29 = vadd.f32 %v6276_v13, %v1589_v22  ;;  %v1705_v26 = vrot.slane %v1675_v19, 4  ;;  %v1706_v12 = vrot.slane %v1676_v17, 2  ;;  %v1682_v42 = vadd.f32 %v6277_v1, %v1598_v45  ;;  %v6286_v19 = vld [vmem:[#allocation3_spill] sm:$0xff]  ;;  %v3675_v13 = vld [vmem:[%s6107_s3 + $0x228] sm:$0xff]  ;;  %v3679_v1 = vld [vmem:[%s6107_s3 + $0x220] sm:$0xff] }
 0x2a0   :  { %v1683_v25 = vadd.f32 %v6278_v2, %v1599_v35  ;;  %v1684_v15 = vadd.f32 %v6279_v14, %v1600_v52  ;;  %v1707_v16 = vrot.slane %v1678_v0, 6  ;;  %v1713_v20 = vsel %vm1323_vm0, %v1669_v4, %v1701_v8  ;;  %v3669_v8 = vld [vmem:[%s6107_s3 + $0x2b8] sm:$0xff]  ;;  %v3674_v4 = vld [vmem:[%s6107_s3 + $0x2f0] sm:$0xff]  ;;  %v3681_v14 = vld [vmem:[%s6107_s3 + $0x2a0] sm:$0xff] }
 0x2a1   :  { %v1715_v10 = vsel %vm1714_vm5, %v1702_v27, %v1703_v11  ;;  %v1718_v51 = vsel %vm1323_vm0, %v1673_v29, %v1704_v28  ;;  %v1719_v59 = vsel %vm1714_vm5, %v1705_v26, %v1706_v12  ;;  %v1708_v48 = vrot.slane %v1679_v6, 4  ;;  %v3670_v27 = vld [vmem:[%s6107_s3 + $0x2f8] sm:$0xff]  ;;  %v3671_v11 = vld [vmem:[%s6107_s3 + $0x230] sm:$0xff]  ;;  %v3676_v29 = vld [vmem:[%s6107_s3 + $0x268] sm:$0xff] }
 0x2a2   :  { %v1709_v54 = vrot.slane %v1680_v9, 2  ;;  %v1717_v5 = vsel %vm1716_vm6, %v1713_v20, %v1715_v10  ;;  %v1720_v58 = vsel %vm1716_vm6, %v1718_v51, %v1719_v59  ;;  %v1597_v62 = vadd.f32 %v6280_v36, %v1513_v49  ;;  %v6287_v49 = vld [vmem:[#allocation5_spill] sm:$0xff]  ;;  %v3668_v9 = vld [vmem:[%s6107_s3 + $0x278] sm:$0xff]  ;;  %v3672_v28 = vld [vmem:[%s6107_s3 + $0x270] sm:$0xff] }
 0x2a3   :  { %v1731_v3 = vmul.f32 %v1717_v5, %v6281_v61  ;;  %v1677_v43 = vadd.f32 %v6282_v46, %v1593_v50  ;;  %v1732_v21 = vmul.f32 %v1720_v58, %v6283_v55  ;;  %v1665_v31 = vmul.f32 %v6285_v30, %v6284_v39  ;;  %v3677_v26 = vld [vmem:[%s6107_s3 + $0x2a8] sm:$0xff]  ;;  %v3683_v10 = vld [vmem:[%s6107_s3 + $0x218] sm:$0xff]  ;;  %v3688_v5 = vld [vmem:[%s6107_s3 + $0x250] sm:$0xff] }
 0x2a4   :  { %v1710_v33 = vrot.slane %v1682_v42, 6  ;;  %v1711_v63 = vrot.slane %v1683_v25, 4  ;;  %v1712_v38 = vrot.slane %v1684_v15, 2  ;;  %v1722_v37 = vsel %vm1714_vm5, %v1708_v48, %v1709_v54  ;;  %v3678_v12 = vld [vmem:[%s6107_s3 + $0x2e8] sm:$0xff]  ;;  %v3680_v42 = vld [vmem:[%s6107_s3 + $0x260] sm:$0xff]  ;;  %v3684_v51 = vld [vmem:[%s6107_s3 + $0x258] sm:$0xff] }
 0x2a5   :  { %1739 = vst [vmem:[#allocation1] ss:$4 sm:$0xff] %v1731_v3  ;;  %v1721_v34 = vsel %vm1323_vm0, %v1677_v43, %v1707_v16  ;;  %v1681_v56 = vadd.f32 %v1665_v31, %v1597_v62  ;;  %v3682_v15 = vld [vmem:[%s6107_s3 + $0x2e0] sm:$0xff]  ;;  %v3685_v59 = vld [vmem:[%s6107_s3 + $0x298] sm:$0xff]  ;;  %v3687_v54 = vld [vmem:[%s6107_s3 + $0x210] sm:$0xff] }
 0x2a6   :  { %1741 = vst [vmem:[#allocation1 + $0x20] ss:$4 sm:$0xff] %v1732_v21  ;;  %v1723_v22 = vsel %vm1716_vm6, %v1721_v34, %v1722_v37  ;;  %v1725_v23 = vsel %vm1714_vm5, %v1711_v63, %v1712_v38  ;;  %v3686_v48 = vld [vmem:[%s6107_s3 + $0x2d8] sm:$0xff]  ;;  %v3689_v58 = vld [vmem:[%s6107_s3 + $0x290] sm:$0xff]  ;;  %v3691_v62 = vld [vmem:[%s6107_s3 + $0x208] sm:$0xff] }
 0x2a7   :  { %v1724_v18 = vsel %vm1323_vm0, %v1681_v56, %v1710_v33  ;;  %v1733_v60 = vmul.f32 %v1723_v22, %v6286_v19  ;;  %v3690_v36 = vld [vmem:[%s6107_s3 + $0x2d0] sm:$0xff]  ;;  %v3692_v3 = vld [vmem:[%s6107_s3 + $0x248] sm:$0xff]  ;;  %v3695_v30 = vld [vmem:[%s6107_s3 + $0x200] sm:$0xff] }
 0x2a8   :  { %v1726_v44 = vsel %vm1716_vm6, %v1724_v18, %v1725_v23  ;;  %v3693_v46 = vld [vmem:[%s6107_s3 + $0x288] sm:$0xff]  ;;  %v3696_v31 = vld [vmem:[%s6107_s3 + $0x240] sm:$0xff]  ;;  %v3699_v37 = vld [vmem:[%s6107_s3 + $0x338] sm:$0xff] }
 0x2a9   :  { %v1734_v53 = vmul.f32 %v1726_v44, %v6287_v49  ;;  %v3694_v43 = vld [vmem:[%s6107_s3 + $0x2c8] sm:$0xff]  ;;  %v3697_v38 = vld [vmem:[%s6107_s3 + $0x280] sm:$0xff]  ;;  %v3700_v56 = vld [vmem:[%s6107_s3 + $0x378] sm:$0xff] }
 0x2aa   :  { %v3698_v34 = vld [vmem:[%s6107_s3 + $0x2c0] sm:$0xff]  ;;  %v3701_v23 = vld [vmem:[%s6107_s3 + $0x3b8] sm:$0xff] }
 0x2ab   :  { %v3702_v44 = vld [vmem:[%s6107_s3 + $0x3f8] sm:$0xff] }
 0x2ac   :  { %v1742_v17 = vld.sshfl [vmem:[#allocation1] sm:$0xff pattern:$0x73625140]  ;;  %v1743_v24 = vld.sshfl [vmem:[#allocation1 + $0x8] sm:$0xff pattern:$0x73625140] }
 0x2ad   :  { %v1776_v45 = vpack.c.bf16 %v1742_v17, %v1742_v17  ;;  %v1777_v40 = vpack.c.bf16 %v1743_v24, %v1743_v24  ;;  %v1744_v35 = vld.sshfl [vmem:[#allocation1 + $0x10] sm:$0xff pattern:$0x73625140]  ;;  %v1745_v41 = vld.sshfl [vmem:[#allocation1 + $0x18] sm:$0xff pattern:$0x73625140] }
 0x2ae   :  { %v1778_v52 = vpack.c.bf16 %v1744_v35, %v1744_v35  ;;  %v1779_v47 = vpack.c.bf16 %v1745_v41, %v1745_v41  ;;  %1750 = vst [vmem:[#allocation1] ss:$4 sm:$0xff] %v1733_v60  ;;  %v1746_v0 = vld.sshfl [vmem:[#allocation1 + $0x20] sm:$0xff pattern:$0x73625140]  ;;  %v3703_v24 = vld [vmem:[%s6107_s3 + $0x330] sm:$0xff] }
 0x2af   :  { %1804 = vmatmul.bf16.vlgmr.msra.gmra.mxu0 %v1776_v45  ;;  %1817 = vmatmul.bf16.vlgmr.msra.gmra.mxu1 %v1777_v40  ;;  %v1747_v50 = vld.sshfl [vmem:[#allocation1 + $0x28] sm:$0xff pattern:$0x73625140]  ;;  %v1748_v32 = vld.sshfl [vmem:[#allocation1 + $0x30] sm:$0xff pattern:$0x73625140]  ;;  %v1780_v2 = vpack.c.bf16 %v1746_v0, %v1746_v0 }
 0x2b0   :  { %1830 = vmatmul.bf16.vlgmr.msra.gmra.mxu2 %v1778_v52  ;;  %1843 = vmatmul.bf16.vlgmr.msra.gmra.mxu3 %v1779_v47  ;;  %v1749_v6 = vld.sshfl [vmem:[#allocation1 + $0x38] sm:$0xff pattern:$0x73625140]  ;;  %v1781_v25 = vpack.c.bf16 %v1747_v50, %v1747_v50  ;;  %v1782_v16 = vpack.c.bf16 %v1748_v32, %v1748_v32  ;;  %v3704_v45 = vld [vmem:[%s6107_s3 + $0x370] sm:$0xff]  ;;  %v3707_v41 = vld [vmem:[%s6107_s3 + $0x328] sm:$0xff] }
 0x2b1   :  { %1900 = vmatpush.bf16.msra.mxu0 %v3667_v7  ;;  %1913 = vmatpush.bf16.msra.mxu1 %v3668_v9  ;;  %1751 = vst [vmem:[#allocation1 + $0x20] ss:$4 sm:$0xff] %v1734_v53  ;;  %v1783_v20 = vpack.c.bf16 %v1749_v6, %v1749_v6  ;;  %v3705_v40 = vld [vmem:[%s6107_s3 + $0x3b0] sm:$0xff]  ;;  %v3708_v52 = vld [vmem:[%s6107_s3 + $0x368] sm:$0xff]  ;;  %v3711_v53 = vld [vmem:[%s6107_s3 + $0x320] sm:$0xff] }
 0x2b2   :  { %1926 = vmatpush.bf16.msra.mxu2 %v3669_v8  ;;  %1939 = vmatpush.bf16.msra.mxu3 %v3670_v27  ;;  %v3706_v35 = vld [vmem:[%s6107_s3 + $0x3f0] sm:$0xff]  ;;  %v3709_v47 = vld [vmem:[%s6107_s3 + $0x3a8] sm:$0xff]  ;;  %v3712_v50 = vld [vmem:[%s6107_s3 + $0x360] sm:$0xff] }
 0x2b3   :  { %v3710_v0 = vld [vmem:[%s6107_s3 + $0x3e8] sm:$0xff]  ;;  %v3713_v32 = vld [vmem:[%s6107_s3 + $0x3a0] sm:$0xff]  ;;  %v3715_v7 = vld [vmem:[%s6107_s3 + $0x318] sm:$0xff] }
 0x2b4   :  { %v3714_v6 = vld [vmem:[%s6107_s3 + $0x3e0] sm:$0xff]  ;;  %v3716_v9 = vld [vmem:[%s6107_s3 + $0x358] sm:$0xff] }
 0x2b5   :  { %1901 = vmatpush.bf16.msra.mxu0 %v3671_v11  ;;  %1914 = vmatpush.bf16.msra.mxu1 %v3672_v28  ;;  %v1752_v21 = vld.sshfl [vmem:[#allocation1] sm:$0xff pattern:$0x73625140]  ;;  %v1753_v39 = vld.sshfl [vmem:[#allocation1 + $0x8] sm:$0xff pattern:$0x73625140] }
 0x2b6   :  { %1927 = vmatpush.bf16.msra.mxu2 %v3673_v57  ;;  %1940 = vmatpush.bf16.msra.mxu3 %v3674_v4  ;;  %v1754_v33 = vld.sshfl [vmem:[#allocation1 + $0x10] sm:$0xff pattern:$0x73625140]  ;;  %v1755_v63 = vld.sshfl [vmem:[#allocation1 + $0x18] sm:$0xff pattern:$0x73625140]  ;;  %v1784_v22 = vpack.c.bf16 %v1752_v21, %v1752_v21  ;;  %v1785_v18 = vpack.c.bf16 %v1753_v39, %v1753_v39 }
 0x2b7   :  { %v1786_v60 = vpack.c.bf16 %v1754_v33, %v1754_v33  ;;  %v1787_v17 = vpack.c.bf16 %v1755_v63, %v1755_v63  ;;  %v3717_v8 = vld [vmem:[%s6107_s3 + $0x398] sm:$0xff]  ;;  %v3719_v11 = vld [vmem:[%s6107_s3 + $0x310] sm:$0xff]  ;;  %v3739_v21 = vld [vmem:[%s6107_s3 + $0x28] sm:$0xff] }
 0x2b8   :  { %v3718_v27 = vld [vmem:[%s6107_s3 + $0x3d8] sm:$0xff]  ;;  %v3720_v28 = vld [vmem:[%s6107_s3 + $0x350] sm:$0xff]  ;;  %v3740_v39 = vld [vmem:[%s6107_s3 + $0x68] sm:$0xff] }
 0x2b9   :  { %1902 = vmatpush.bf16.msra.mxu0 %v3675_v13  ;;  %1915 = vmatpush.bf16.msra.mxu1 %v3676_v29  ;;  %v3721_v57 = vld [vmem:[%s6107_s3 + $0x390] sm:$0xff]  ;;  %v3723_v13 = vld [vmem:[%s6107_s3 + $0x308] sm:$0xff]  ;;  %v3743_v33 = vld [vmem:[%s6107_s3 + $0x20] sm:$0xff] }
 0x2ba   :  { %1928 = vmatpush.bf16.msra.mxu2 %v3677_v26  ;;  %1941 = vmatpush.bf16.msra.mxu3 %v3678_v12  ;;  %v3722_v4 = vld [vmem:[%s6107_s3 + $0x3d0] sm:$0xff]  ;;  %v3724_v29 = vld [vmem:[%s6107_s3 + $0x348] sm:$0xff]  ;;  %v3744_v63 = vld [vmem:[%s6107_s3 + $0x60] sm:$0xff] }
 0x2bb   :  { %v3725_v26 = vld [vmem:[%s6107_s3 + $0x388] sm:$0xff] }
 0x2bc   :  { %v3726_v12 = vld [vmem:[%s6107_s3 + $0x3c8] sm:$0xff] }
 0x2bd   :  { %1903 = vmatpush.bf16.msra.mxu0 %v3679_v1  ;;  %1916 = vmatpush.bf16.msra.mxu1 %v3680_v42  ;;  %v1756_v1 = vld.sshfl [vmem:[#allocation1 + $0x20] sm:$0xff pattern:$0x73625140]  ;;  %v1757_v42 = vld.sshfl [vmem:[#allocation1 + $0x28] sm:$0xff pattern:$0x73625140] }
 0x2be   :  { %1929 = vmatpush.bf16.msra.mxu2 %v3681_v14  ;;  %1942 = vmatpush.bf16.msra.mxu3 %v3682_v15  ;;  %v3727_v14 = vld [vmem:[%s6107_s3 + $0x300] sm:$0xff] }
 0x2bf   :  { %1856 = vmatmul.bf16.vlgmr.msrb.gmra.mxu0 %v1780_v2  ;;  %1869 = vmatmul.bf16.vlgmr.msrb.gmra.mxu1 %v1781_v25  ;;  %v1758_v2 = vld.sshfl [vmem:[#allocation1 + $0x30] sm:$0xff pattern:$0x73625140]  ;;  %v1759_v25 = vld.sshfl [vmem:[#allocation1 + $0x38] sm:$0xff pattern:$0x73625140] }
 0x2c0   :  { %1882 = vmatmul.bf16.vlgmr.msrb.gmra.mxu2 %v1782_v16  ;;  %1895 = vmatmul.bf16.vlgmr.msrb.gmra.mxu3 %v1783_v20  ;;  %v3728_v15 = vld [vmem:[%s6107_s3 + $0x340] sm:$0xff] }
 0x2c1   :  { %1904 = vmatpush.bf16.msra.mxu0 %v3683_v10  ;;  %1917 = vmatpush.bf16.msra.mxu1 %v3684_v51  ;;  %v3729_v16 = vld [vmem:[%s6107_s3 + $0x380] sm:$0xff]  ;;  %v1788_v10 = vpack.c.bf16 %v1756_v1, %v1756_v1  ;;  %v1789_v51 = vpack.c.bf16 %v1757_v42, %v1757_v42  ;;  %v3779_v1 = vld [vmem:[%s6107_s3 + $0x118] sm:$0xff] }
 0x2c2   :  { %1930 = vmatpush.bf16.msra.mxu2 %v3685_v59  ;;  %1943 = vmatpush.bf16.msra.mxu3 %v3686_v48  ;;  %v3730_v20 = vld [vmem:[%s6107_s3 + $0x3c0] sm:$0xff]  ;;  %v1790_v59 = vpack.c.bf16 %v1758_v2, %v1758_v2  ;;  %v1791_v48 = vpack.c.bf16 %v1759_v25, %v1759_v25  ;;  %v3780_v42 = vld [vmem:[%s6107_s3 + $0x158] sm:$0xff] }
 0x2c3   :  { %v3781_v2 = vld [vmem:[%s6107_s3 + $0x198] sm:$0xff] }
 0x2c4   :  { %v3782_v25 = vld [vmem:[%s6107_s3 + $0x1d8] sm:$0xff] }
 0x2c5   :  { %1905 = vmatpush.bf16.msra.mxu0 %v3687_v54  ;;  %1918 = vmatpush.bf16.msra.mxu1 %v3688_v5  ;;  %v3731_v54 = vld [vmem:[%s6107_s3 + $0x38] sm:$0xff] }
 0x2c6   :  { %1931 = vmatpush.bf16.msra.mxu2 %v3689_v58  ;;  %1944 = vmatpush.bf16.msra.mxu3 %v3690_v36  ;;  %v3732_v5 = vld [vmem:[%s6107_s3 + $0x78] sm:$0xff] }
 0x2c7   :  { %v3733_v58 = vld [vmem:[%s6107_s3 + $0xb8] sm:$0xff] }
 0x2c8   :  { %v3734_v36 = vld [vmem:[%s6107_s3 + $0xf8] sm:$0xff] }
 0x2c9   :  { %1906 = vmatpush.bf16.msra.mxu0 %v3691_v62  ;;  %1919 = vmatpush.bf16.msra.mxu1 %v3692_v3  ;;  %v3735_v62 = vld [vmem:[%s6107_s3 + $0x30] sm:$0xff] }
 0x2ca   :  { %1932 = vmatpush.bf16.msra.mxu2 %v3693_v46  ;;  %1945 = vmatpush.bf16.msra.mxu3 %v3694_v43  ;;  %v3736_v3 = vld [vmem:[%s6107_s3 + $0x70] sm:$0xff] }
 0x2cb   :  { %v3737_v46 = vld [vmem:[%s6107_s3 + $0xb0] sm:$0xff] }
 0x2cc   :  { %v3738_v43 = vld [vmem:[%s6107_s3 + $0xf0] sm:$0xff] }
 0x2cd   :  { %1907 = vmatpush.bf16.msra.mxu0 %v3695_v30  ;;  %1920 = vmatpush.bf16.msra.mxu1 %v3696_v31  ;;  %v3741_v30 = vld [vmem:[%s6107_s3 + $0xa8] sm:$0xff] }
 0x2ce   :  { %1933 = vmatpush.bf16.msra.mxu2 %v3697_v38  ;;  %1946 = vmatpush.bf16.msra.mxu3 %v3698_v34  ;;  %v3742_v31 = vld [vmem:[%s6107_s3 + $0xe8] sm:$0xff]  ;;  %v3745_v38 = vld [vmem:[%s6107_s3 + $0xa0] sm:$0xff] }
 0x2cf   :  { %v3746_v34 = vld [vmem:[%s6107_s3 + $0xe0] sm:$0xff] }
 0x2d0   :  { %1908 = vmatmul.bf16.vlgmr.msra.gmra.mxu0 %v1784_v22  ;;  %1921 = vmatmul.bf16.vlgmr.msra.gmra.mxu1 %v1785_v18  ;;  %v3749_v22 = vld [vmem:[%s6107_s3 + $0x98] sm:$0xff] }
 0x2d1   :  { %1952 = vmatpush.bf16.msrb.mxu0 %v3699_v37  ;;  %1965 = vmatpush.bf16.msrb.mxu1 %v3700_v56  ;;  %v3747_v37 = vld [vmem:[%s6107_s3 + $0x18] sm:$0xff] }
 0x2d2   :  { %1978 = vmatpush.bf16.msrb.mxu2 %v3701_v23  ;;  %1991 = vmatpush.bf16.msrb.mxu3 %v3702_v44  ;;  %v3748_v56 = vld [vmem:[%s6107_s3 + $0x58] sm:$0xff]  ;;  %v3751_v23 = vld [vmem:[%s6107_s3 + $0x10] sm:$0xff] }
 0x2d3   :  { %1934 = vmatmul.bf16.vlgmr.msra.gmra.mxu2 %v1786_v60  ;;  %1947 = vmatmul.bf16.vlgmr.msra.gmra.mxu3 %v1787_v17  ;;  %v3750_v18 = vld [vmem:[%s6107_s3 + $0xd8] sm:$0xff]  ;;  %v3752_v44 = vld [vmem:[%s6107_s3 + $0x50] sm:$0xff] }
 0x2d4   :  { %v3753_v60 = vld [vmem:[%s6107_s3 + $0x90] sm:$0xff] }
 0x2d5   :  { %1953 = vmatpush.bf16.msrb.mxu0 %v3703_v24  ;;  %1966 = vmatpush.bf16.msrb.mxu1 %v3704_v45  ;;  %v3754_v17 = vld [vmem:[%s6107_s3 + $0xd0] sm:$0xff]  ;;  %v3755_v24 = vld [vmem:[%s6107_s3 + $0x8] sm:$0xff] }
 0x2d6   :  { %1979 = vmatpush.bf16.msrb.mxu2 %v3705_v40  ;;  %1992 = vmatpush.bf16.msrb.mxu3 %v3706_v35  ;;  %v3756_v45 = vld [vmem:[%s6107_s3 + $0x48] sm:$0xff] }
 0x2d7   :  { %v3757_v40 = vld [vmem:[%s6107_s3 + $0x88] sm:$0xff] }
 0x2d8   :  { %v3758_v35 = vld [vmem:[%s6107_s3 + $0xc8] sm:$0xff] }
 0x2d9   :  { %1954 = vmatpush.bf16.msrb.mxu0 %v3707_v41  ;;  %1967 = vmatpush.bf16.msrb.mxu1 %v3708_v52  ;;  %v3759_v41 = vld [vmem:[%s6107_s3] sm:$0xff] }
 0x2da   :  { %1980 = vmatpush.bf16.msrb.mxu2 %v3709_v47  ;;  %1993 = vmatpush.bf16.msrb.mxu3 %v3710_v0  ;;  %v3760_v52 = vld [vmem:[%s6107_s3 + $0x40] sm:$0xff]  ;;  %v3761_v47 = vld [vmem:[%s6107_s3 + $0x138] sm:$0xff] }
 0x2db   :  { %v3762_v0 = vld [vmem:[%s6107_s3 + $0x178] sm:$0xff] }
 0x2dd   :  { %1955 = vmatpush.bf16.msrb.mxu0 %v3711_v53  ;;  %1968 = vmatpush.bf16.msrb.mxu1 %v3712_v50  ;;  %v3763_v53 = vld [vmem:[%s6107_s3 + $0x80] sm:$0xff] }
 0x2de   :  { %1981 = vmatpush.bf16.msrb.mxu2 %v3713_v32  ;;  %1994 = vmatpush.bf16.msrb.mxu3 %v3714_v6  ;;  %v3764_v50 = vld [vmem:[%s6107_s3 + $0xc0] sm:$0xff]  ;;  %v3765_v32 = vld [vmem:[%s6107_s3 + $0x1b8] sm:$0xff] }
 0x2df   :  { %v3766_v6 = vld [vmem:[%s6107_s3 + $0x1f8] sm:$0xff] }
 0x2e1   :  { %1956 = vmatpush.bf16.msrb.mxu0 %v3715_v7  ;;  %1969 = vmatpush.bf16.msrb.mxu1 %v3716_v9  ;;  %v3767_v7 = vld [vmem:[%s6107_s3 + $0x130] sm:$0xff] }
 0x2e2   :  { %1982 = vmatpush.bf16.msrb.mxu2 %v3717_v8  ;;  %1995 = vmatpush.bf16.msrb.mxu3 %v3718_v27  ;;  %v3768_v9 = vld [vmem:[%s6107_s3 + $0x170] sm:$0xff] }
 0x2e3   :  { %v3769_v8 = vld [vmem:[%s6107_s3 + $0x1b0] sm:$0xff] }
 0x2e4   :  { %v3770_v27 = vld [vmem:[%s6107_s3 + $0x1f0] sm:$0xff] }
 0x2e5   :  { %1957 = vmatpush.bf16.msrb.mxu0 %v3719_v11  ;;  %1970 = vmatpush.bf16.msrb.mxu1 %v3720_v28  ;;  %v3771_v11 = vld [vmem:[%s6107_s3 + $0x128] sm:$0xff] }
 0x2e6   :  { %1983 = vmatpush.bf16.msrb.mxu2 %v3721_v57  ;;  %1996 = vmatpush.bf16.msrb.mxu3 %v3722_v4  ;;  %v3772_v28 = vld [vmem:[%s6107_s3 + $0x168] sm:$0xff] }
 0x2e7   :  { %v3773_v57 = vld [vmem:[%s6107_s3 + $0x1a8] sm:$0xff] }
 0x2e8   :  { %v3774_v4 = vld [vmem:[%s6107_s3 + $0x1e8] sm:$0xff] }
 0x2e9   :  { %1958 = vmatpush.bf16.msrb.mxu0 %v3723_v13  ;;  %1971 = vmatpush.bf16.msrb.mxu1 %v3724_v29  ;;  %v3775_v13 = vld [vmem:[%s6107_s3 + $0x120] sm:$0xff] }
 0x2ea   :  { %1984 = vmatpush.bf16.msrb.mxu2 %v3725_v26  ;;  %1997 = vmatpush.bf16.msrb.mxu3 %v3726_v12  ;;  %v3776_v29 = vld [vmem:[%s6107_s3 + $0x160] sm:$0xff] }
 0x2eb   :  { %v3777_v26 = vld [vmem:[%s6107_s3 + $0x1a0] sm:$0xff] }
 0x2ec   :  { %v3778_v12 = vld [vmem:[%s6107_s3 + $0x1e0] sm:$0xff] }
 0x2ed   :  { %1959 = vmatpush.bf16.msrb.mxu0 %v3727_v14  ;;  %1972 = vmatpush.bf16.msrb.mxu1 %v3728_v15  ;;  %v3783_v14 = vld [vmem:[%s6107_s3 + $0x110] sm:$0xff] }
 0x2ee   :  { %1985 = vmatpush.bf16.msrb.mxu2 %v3729_v16  ;;  %1998 = vmatpush.bf16.msrb.mxu3 %v3730_v20  ;;  %v3784_v15 = vld [vmem:[%s6107_s3 + $0x150] sm:$0xff] }
 0x2ef   :  { %v3785_v16 = vld [vmem:[%s6107_s3 + $0x190] sm:$0xff] }
 0x2f0   :  { %1960 = vmatmul.bf16.vlgmr.msrb.gmra.mxu0 %v1788_v10  ;;  %1973 = vmatmul.bf16.vlgmr.msrb.gmra.mxu1 %v1789_v51  ;;  %v3786_v20 = vld [vmem:[%s6107_s3 + $0x1d0] sm:$0xff]  ;;  %v3787_v10 = vld [vmem:[%s6107_s3 + $0x108] sm:$0xff] }
 0x2f1   :  { %2772 = vmatpush.bf16.msra.mxu0 %v3731_v54  ;;  %2785 = vmatpush.bf16.msra.mxu1 %v3732_v5  ;;  %v3788_v51 = vld [vmem:[%s6107_s3 + $0x148] sm:$0xff]  ;;  %v3791_v54 = vld [vmem:[%s6107_s3 + $0x100] sm:$0xff] }
 0x2f2   :  { %1986 = vmatmul.bf16.vlgmr.msrb.gmra.mxu2 %v1790_v59  ;;  %1999 = vmatmul.bf16.vlgmr.msrb.gmra.mxu3 %v1791_v48  ;;  %v3789_v59 = vld [vmem:[%s6107_s3 + $0x188] sm:$0xff]  ;;  %v3792_v5 = vld [vmem:[%s6107_s3 + $0x140] sm:$0xff] }
 0x2f3   :  { %2798 = vmatpush.bf16.msra.mxu2 %v3733_v58  ;;  %2811 = vmatpush.bf16.msra.mxu3 %v3734_v36  ;;  %v3790_v48 = vld [vmem:[%s6107_s3 + $0x1c8] sm:$0xff]  ;;  %v3793_v58 = vld [vmem:[%s6107_s3 + $0x180] sm:$0xff] }
 0x2f4   :  { %v3794_v36 = vld [vmem:[%s6107_s3 + $0x1c0] sm:$0xff] }
 0x2f5   :  { %2773 = vmatpush.bf16.msra.mxu0 %v3735_v62  ;;  %2786 = vmatpush.bf16.msra.mxu1 %v3736_v3 }
 0x2f7   :  { %2799 = vmatpush.bf16.msra.mxu2 %v3737_v46  ;;  %2812 = vmatpush.bf16.msra.mxu3 %v3738_v43 }
 0x2f9   :  { %2774 = vmatpush.bf16.msra.mxu0 %v3739_v21  ;;  %2787 = vmatpush.bf16.msra.mxu1 %v3740_v39 }
 0x2fb   :  { %2800 = vmatpush.bf16.msra.mxu2 %v3741_v30  ;;  %2813 = vmatpush.bf16.msra.mxu3 %v3742_v31 }
 0x2fd   :  { %2775 = vmatpush.bf16.msra.mxu0 %v3743_v33  ;;  %2788 = vmatpush.bf16.msra.mxu1 %v3744_v63 }
 0x2ff   :  { %2801 = vmatpush.bf16.msra.mxu2 %v3745_v38  ;;  %2814 = vmatpush.bf16.msra.mxu3 %v3746_v34 }
 0x301   :  { %2776 = vmatpush.bf16.msra.mxu0 %v3747_v37  ;;  %2789 = vmatpush.bf16.msra.mxu1 %v3748_v56 }
 0x303   :  { %2802 = vmatpush.bf16.msra.mxu2 %v3749_v22  ;;  %2815 = vmatpush.bf16.msra.mxu3 %v3750_v18  ;;  %v3657_v22 = vld [vmem:[%s6112_s5] ss:$0 sm:$0xff] }
 0x305   :  { %2777 = vmatpush.bf16.msra.mxu0 %v3751_v23  ;;  %2790 = vmatpush.bf16.msra.mxu1 %v3752_v44 }
 0x307   :  { %2803 = vmatpush.bf16.msra.mxu2 %v3753_v60  ;;  %2816 = vmatpush.bf16.msra.mxu3 %v3754_v17 }
 0x309   :  { %2778 = vmatpush.bf16.msra.mxu0 %v3755_v24  ;;  %2791 = vmatpush.bf16.msra.mxu1 %v3756_v45 }
 0x30b   :  { %2804 = vmatpush.bf16.msra.mxu2 %v3757_v40  ;;  %2817 = vmatpush.bf16.msra.mxu3 %v3758_v35 }
 0x30d   :  { %2779 = vmatpush.bf16.msra.mxu0 %v3759_v41  ;;  %2792 = vmatpush.bf16.msra.mxu1 %v3760_v52 }
 0x30f   :  { %2805 = vmatpush.bf16.msra.mxu2 %v3763_v53  ;;  %2818 = vmatpush.bf16.msra.mxu3 %v3764_v50 }
 0x311   :  { %2824 = vmatpush.bf16.msrb.mxu0 %v3761_v47  ;;  %2837 = vmatpush.bf16.msrb.mxu1 %v3762_v0 }
 0x313   :  { %2850 = vmatpush.bf16.msrb.mxu2 %v3765_v32  ;;  %2863 = vmatpush.bf16.msrb.mxu3 %v3766_v6 }
 0x315   :  { %2825 = vmatpush.bf16.msrb.mxu0 %v3767_v7  ;;  %2838 = vmatpush.bf16.msrb.mxu1 %v3768_v9 }
 0x317   :  { %2851 = vmatpush.bf16.msrb.mxu2 %v3769_v8  ;;  %2864 = vmatpush.bf16.msrb.mxu3 %v3770_v27 }
 0x319   :  { %2826 = vmatpush.bf16.msrb.mxu0 %v3771_v11  ;;  %2839 = vmatpush.bf16.msrb.mxu1 %v3772_v28 }
 0x31b   :  { %2852 = vmatpush.bf16.msrb.mxu2 %v3773_v57  ;;  %2865 = vmatpush.bf16.msrb.mxu3 %v3774_v4 }
 0x31d   :  { %2827 = vmatpush.bf16.msrb.mxu0 %v3775_v13  ;;  %2840 = vmatpush.bf16.msrb.mxu1 %v3776_v29 }
 0x31f   :  { %2853 = vmatpush.bf16.msrb.mxu2 %v3777_v26  ;;  %2866 = vmatpush.bf16.msrb.mxu3 %v3778_v12 }
 0x321   :  { %2828 = vmatpush.bf16.msrb.mxu0 %v3779_v1  ;;  %2841 = vmatpush.bf16.msrb.mxu1 %v3780_v42 }
 0x323   :  { %2854 = vmatpush.bf16.msrb.mxu2 %v3781_v2  ;;  %2867 = vmatpush.bf16.msrb.mxu3 %v3782_v25 }
 0x325   :  { %2829 = vmatpush.bf16.msrb.mxu0 %v3783_v14  ;;  %2842 = vmatpush.bf16.msrb.mxu1 %v3784_v15 }
 0x327   :  { %2855 = vmatpush.bf16.msrb.mxu2 %v3785_v16  ;;  %2868 = vmatpush.bf16.msrb.mxu3 %v3786_v20 }
 0x329   :  { %2830 = vmatpush.bf16.msrb.mxu0 %v3787_v10  ;;  %2843 = vmatpush.bf16.msrb.mxu1 %v3788_v51 }
 0x32b   :  { %2856 = vmatpush.bf16.msrb.mxu2 %v3789_v59  ;;  %2869 = vmatpush.bf16.msrb.mxu3 %v3790_v48  ;;  %v3863_v48 = vmov 4  }
 0x32c   :  { %v1805_v62 = vpop.f32.mrf.mxu0  ;;  %v1818_v3 = vpop.f32.mrf.mxu1  ;;  %3648 = vset.pattern.permute.xlu0 %v3863_v48 }
 0x32d   :  { %2831 = vmatpush.bf16.msrb.mxu0 %v3791_v54  ;;  %2844 = vmatpush.bf16.msrb.mxu1 %v3792_v5  ;;  %v1806_v18 = vadd.f32 %v3657_v22, %v1805_v62  ;;  %v3864_v54 = vmov 5   ;;  %v3865_v5 = vmov 11   ;;  %v5386_v22 = vld [vmem:[%s6113_s2] sm:$0xff] }
 0x32e   :  { %3647 = vset.pattern.permute.xlu2 %v3864_v54  ;;  %3654 = vset.pattern.permute.xlu1 %v3865_v5 }
 0x32f   :  { %2857 = vmatpush.bf16.msrb.mxu2 %v3793_v58  ;;  %2870 = vmatpush.bf16.msrb.mxu3 %v3794_v36  ;;  %v1819_v60 = vadd.f32 %v1818_v3, %v1806_v18  ;;  %v5391_v18 = vld [vmem:[%s6113_s2 + $0x8] sm:$0xff] }
 0x333   :  { %v1831_v46 = vpop.f32.mrf.mxu2  ;;  %v1844_v43 = vpop.f32.mrf.mxu3 }
 0x334   :  { %v1807_v21 = vpop.f32.mrf.mxu0  ;;  %v1820_v39 = vpop.f32.mrf.mxu1  ;;  %v1832_v45 = vadd.f32 %v1831_v46, %v1819_v60  ;;  %v5406_v60 = vld [vmem:[%s6113_s2 + $0x20] sm:$0xff] }
 0x336   :  { %v1845_v40 = vadd.f32 %v1844_v43, %v1832_v45  ;;  %v5421_v45 = vld [vmem:[%s6113_s2 + $0x38] sm:$0xff] }
 0x33b   :  { %v1833_v30 = vpop.f32.mrf.mxu2  ;;  %v1846_v31 = vpop.f32.mrf.mxu3 }
 0x33c   :  { %v1857_v33 = vpop.f32.mrf.mxu0  ;;  %v1870_v63 = vpop.f32.mrf.mxu1 }
 0x33d   :  { %v1858_v35 = vadd.f32 %v1857_v33, %v1845_v40  ;;  %v3866_v33 = vmov 6   ;;  %v5426_v40 = vld [vmem:[%s6113_s2 + $0x40] sm:$0xff] }
 0x33e   :  { %6288 = vst [vmem:[#allocation8_spill] sm:$0xff] %v5426_v40 }
 0x33f   :  { %v1871_v53 = vadd.f32 %v1870_v63, %v1858_v35  ;;  %v3867_v63 = vmov 7   ;;  %v5431_v35 = vld [vmem:[%s6113_s2 + $0x48] sm:$0xff] }
 0x343   :  { %v1883_v38 = vpop.f32.mrf.mxu2  ;;  %v1896_v34 = vpop.f32.mrf.mxu3 }
 0x344   :  { %v1859_v37 = vpop.f32.mrf.mxu0  ;;  %v1872_v56 = vpop.f32.mrf.mxu1  ;;  %v1884_v50 = vadd.f32 %v1883_v38, %v1871_v53  ;;  %v3868_v38 = vmov 8   ;;  %v5456_v53 = vld [vmem:[%s6113_s2 + $0x70] sm:$0xff] }
 0x345   :  { %v3870_v37 = vmov 10   ;;  %6292 = vst [vmem:[#allocation12_spill] sm:$0xff] %v5456_v53 }
 0x346   :  { %v1897_v7 = vadd.f32 %v1896_v34, %v1884_v50  ;;  %v3869_v34 = vmov 9   ;;  %v5461_v50 = vld [vmem:[%s6113_s2 + $0x78] sm:$0xff] }
 0x347   :  { %6293 = vst [vmem:[#allocation13_spill] sm:$0xff] %v5461_v50 }
 0x34b   :  { %v1885_v23 = vpop.f32.mrf.mxu2  ;;  %v1898_v44 = vpop.f32.mrf.mxu3 }
 0x34c   :  { %v5396_v23 = vld [vmem:[%s6113_s2 + $0x10] sm:$0xff]  ;;  %v5401_v44 = vld [vmem:[%s6113_s2 + $0x18] sm:$0xff] }
 0x34d   :  { %v1909_v17 = vpop.f32.mrf.mxu0  ;;  %v1922_v24 = vpop.f32.mrf.mxu1 }
 0x34e   :  { %v1910_v9 = vadd.f32 %v1909_v17, %v1897_v7  ;;  %v5411_v17 = vld [vmem:[%s6113_s2 + $0x28] sm:$0xff] }
 0x350   :  { %v1923_v8 = vadd.f32 %v1922_v24, %v1910_v9  ;;  %v5416_v24 = vld [vmem:[%s6113_s2 + $0x30] sm:$0xff] }
 0x355   :  { %v1911_v47 = vpop.f32.mrf.mxu0  ;;  %v1924_v0 = vpop.f32.mrf.mxu1 }
 0x356   :  { %v1935_v41 = vpop.f32.mrf.mxu2  ;;  %v1948_v52 = vpop.f32.mrf.mxu3  ;;  %v5446_v47 = vld [vmem:[%s6113_s2 + $0x60] sm:$0xff]  ;;  %v5451_v0 = vld [vmem:[%s6113_s2 + $0x68] sm:$0xff] }
 0x357   :  { %v1936_v27 = vadd.f32 %v1935_v41, %v1923_v8  ;;  %v5436_v41 = vld [vmem:[%s6113_s2 + $0x50] sm:$0xff]  ;;  %6290 = vst [vmem:[#allocation10_spill] sm:$0xff] %v5446_v47 }
 0x358   :  { %6291 = vst [vmem:[#allocation11_spill] sm:$0xff] %v5451_v0 }
 0x359   :  { %v1949_v11 = vadd.f32 %v1948_v52, %v1936_v27  ;;  %v5441_v52 = vld [vmem:[%s6113_s2 + $0x58] sm:$0xff] }
 0x35a   :  { %6289 = vst [vmem:[#allocation9_spill] sm:$0xff] %v5441_v52 }
 0x35e   :  { %v1937_v32 = vpop.f32.mrf.mxu2  ;;  %v1950_v6 = vpop.f32.mrf.mxu3 }
 0x36d   :  { %v1961_v28 = vpop.f32.mrf.mxu0  ;;  %v1974_v57 = vpop.f32.mrf.mxu1 }
 0x36e   :  { %v1962_v4 = vadd.f32 %v1961_v28, %v1949_v11 }
 0x370   :  { %v1975_v13 = vadd.f32 %v1974_v57, %v1962_v4 }
 0x375   :  { %v1987_v29 = vpop.f32.mrf.mxu2  ;;  %v2000_v26 = vpop.f32.mrf.mxu3 }
 0x376   :  { %v1988_v12 = vadd.f32 %v1987_v29, %v1975_v13  ;;  %v1963_v1 = vpop.f32.mrf.mxu0  ;;  %v1976_v42 = vpop.f32.mrf.mxu1 }
 0x378   :  { %v2001_v2 = vadd.f32 %v2000_v26, %v1988_v12 }
 0x37a   :  { %v2004_v25 = vsel %vm1323_vm0, %v2001_v2, -inf  ;;  %3501 = vst [vmem:[%s6110_s7 + $0x2] sm:$0x3] %v2001_v2 }
 0x37b   :  { %2005 = vmax.xlane.f32.xlu0 %v2004_v25 }
 0x37d   :  { %v1989_v14 = vpop.f32.mrf.mxu2  ;;  %v2002_v15 = vpop.f32.mrf.mxu3 }
 0x3ee   :  { %v2006_v16 = vpop.xlane.xlu0 %2005 }
 0x3ef   :  { %v2007_v20 = vsub.f32 %v2001_v2, %v2006_v16 }
 0x3f1   :  { %v2008_v10 = vmul.f32 1.442695, %v2007_v20 }
 0x3f3   :  { %3663 = vpow2.f32 %v2008_v10 }
 0x3f9   :  { %v3664_v51 = vpop.eup %3663 }
 0x3fa   :  { %v2010_v59 = vsel %vm1323_vm0, %v3664_v51, 0.0 }
 0x3fb   :  { %2011 = vadd.xlane.f32.xlu1 %v2010_v59 }
 0x46e   :  { %v2012_v58 = vpop.xlane.xlu1 %2011 }
 0x46f   :  { %3665 = vrcp.f32 %v2012_v58 }
 0x475   :  { %v3666_v36 = vpop.eup %3665 }
 0x476   :  { %v2014_v62 = vmul.f32 %v3666_v36, %v3664_v51 }
 0x478   :  { %v2015_v3 = vsel %vm1323_vm0, %v2014_v62, 0.0 }
 0x479   :  { %v2016_v46 = vrot.slane %v2015_v3, 4 }
 0x47b   :  { %v2017_v43 = vadd.f32 %v2016_v46, %v2015_v3 }
 0x47d   :  { %v2018_v21 = vrot.slane %v2017_v43, 2 }
 0x47f   :  { %v2019_v39 = vadd.f32 %v2018_v21, %v2017_v43 }
 0x481   :  { %v2020_v30 = vrot.slane %v2019_v39, 1 }
 0x483   :  { %v2021_v31 = vadd.f32 %v2020_v30, %v2019_v39 }
 0x485   :  { %2564 = vperm.xlu1 %3654, %v2021_v31   ;;  %2040 = vperm.xlu0 %3648, %v2021_v31  }
 0x486   :  { %2060 = vperm.xlu2 %3647, %v2021_v31  }
 0x48d   :  { %3655 = vset.pattern.permute.xlu0 %v3865_v5 }
 0x48e   :  { %3649 = vset.pattern.permute.xlu2 %v3866_v33 }
 0x48f   :  { %2144 = vperm.xlu2 %3649, %v2021_v31  }
 0x497   :  { %3650 = vset.pattern.permute.xlu2 %v3867_v63 }
 0x498   :  { %2228 = vperm.xlu2 %3650, %v2021_v31  }
 0x4a0   :  { %3651 = vset.pattern.permute.xlu2 %v3868_v38 }
 0x4a1   :  { %2312 = vperm.xlu2 %3651, %v2021_v31  }
 0x4a9   :  { %3652 = vset.pattern.permute.xlu2 %v3869_v34 }
 0x4aa   :  { %2396 = vperm.xlu2 %3652, %v2021_v31  }
 0x4b2   :  { %3653 = vset.pattern.permute.xlu2 %v3870_v37 }
 0x4b3   :  { %2480 = vperm.xlu2 %3653, %v2021_v31  }
 0x4e0   :  { %v2061_v56 = vpop.permute.xlu2 %2060 }
 0x4e1   :  { %v5464_v32 = vmul.f32 %v2061_v56, %v5386_v22  ;;  %v5467_v6 = vmul.f32 %v2061_v56, %v5391_v18  ;;  %v5470_v7 = vmul.f32 %v2061_v56, %v5396_v23  ;;  %v5473_v9 = vmul.f32 %v2061_v56, %v5401_v44 }
 0x4e2   :  { %v5476_v8 = vmul.f32 %v2061_v56, %v5406_v60  ;;  %v5479_v27 = vmul.f32 %v2061_v56, %v5411_v17  ;;  %v5482_v11 = vmul.f32 %v2061_v56, %v5416_v24  ;;  %v5485_v28 = vmul.f32 %v2061_v56, %v5421_v45 }
 0x4e3   :  { %v5488_v57 = vmul.f32 %v2061_v56, %v5426_v40  ;;  %v5491_v4 = vmul.f32 %v2061_v56, %v5431_v35  ;;  %v5494_v13 = vmul.f32 %v2061_v56, %v5436_v41  ;;  %v5497_v29 = vmul.f32 %v2061_v56, %v5441_v52 }
 0x4e4   :  { %v5500_v26 = vmul.f32 %v2061_v56, %v5446_v47  ;;  %v5503_v12 = vmul.f32 %v2061_v56, %v5451_v0  ;;  %v5506_v1 = vmul.f32 %v2061_v56, %v5456_v53  ;;  %v5509_v42 = vmul.f32 %v2061_v56, %v5461_v50 }
 0x4e9   :  { %v2145_v2 = vpop.permute.xlu2 %2144 }
 0x4ea   :  { %v5528_v43 = vmul.f32 %v2145_v2, %v5386_v22  ;;  %v5531_v21 = vmul.f32 %v2145_v2, %v5391_v18  ;;  %v5534_v39 = vmul.f32 %v2145_v2, %v5396_v23  ;;  %v5537_v30 = vmul.f32 %v2145_v2, %v5401_v44 }
 0x4eb   :  { %v5540_v31 = vmul.f32 %v2145_v2, %v5406_v60  ;;  %v5543_v33 = vmul.f32 %v2145_v2, %v5411_v17  ;;  %v5546_v63 = vmul.f32 %v2145_v2, %v5416_v24  ;;  %v5549_v38 = vmul.f32 %v2145_v2, %v5421_v45 }
 0x4ec   :  { %v5552_v34 = vmul.f32 %v2145_v2, %v5426_v40  ;;  %v5555_v37 = vmul.f32 %v2145_v2, %v5431_v35  ;;  %v5558_v56 = vmul.f32 %v2145_v2, %v5436_v41  ;;  %v5561_v46 = vmul.f32 %v2145_v2, %v5441_v52 }
 0x4ed   :  { %6294 = vst [vmem:[#allocation14_spill] sm:$0xff] %v5543_v33  ;;  %v5564_v3 = vmul.f32 %v2145_v2, %v5446_v47  ;;  %v5567_v62 = vmul.f32 %v2145_v2, %v5451_v0  ;;  %v5570_v36 = vmul.f32 %v2145_v2, %v5456_v53  ;;  %v5573_v58 = vmul.f32 %v2145_v2, %v5461_v50 }
 0x4ee   :  { %6295 = vst [vmem:[#allocation15_spill] sm:$0xff] %v5546_v63 }
 0x4ef   :  { %6296 = vst [vmem:[#allocation16_spill] sm:$0xff] %v5549_v38 }
 0x4f0   :  { %6297 = vst [vmem:[#allocation17_spill] sm:$0xff] %v5552_v34 }
 0x4f1   :  { %6298 = vst [vmem:[#allocation26_spill] sm:$0xff] %v5555_v37 }
 0x4f2   :  { %6299 = vst [vmem:[#allocation27_spill] sm:$0xff] %v5558_v56  ;;  %v2229_v51 = vpop.permute.xlu2 %2228 }
 0x4f3   :  { %6300 = vst [vmem:[#allocation28_spill] sm:$0xff] %v5561_v46  ;;  %v5592_v16 = vmul.f32 %v2229_v51, %v5386_v22  ;;  %v5595_v15 = vmul.f32 %v2229_v51, %v5391_v18  ;;  %v5598_v14 = vmul.f32 %v2229_v51, %v5396_v23  ;;  %v5601_v5 = vmul.f32 %v2229_v51, %v5401_v44 }
 0x4f4   :  { %6301 = vst [vmem:[#allocation20_spill] sm:$0xff] %v5564_v3  ;;  %v5604_v48 = vmul.f32 %v2229_v51, %v5406_v60  ;;  %v5607_v59 = vmul.f32 %v2229_v51, %v5411_v17  ;;  %v5610_v20 = vmul.f32 %v2229_v51, %v5416_v24  ;;  %v5613_v10 = vmul.f32 %v2229_v51, %v5421_v45 }
 0x4f5   :  { %6302 = vst [vmem:[#allocation21_spill] sm:$0xff] %v5567_v62  ;;  %v5616_v54 = vmul.f32 %v2229_v51, %v5426_v40  ;;  %v5619_v2 = vmul.f32 %v2229_v51, %v5431_v35  ;;  %v5622_v25 = vmul.f32 %v2229_v51, %v5436_v41  ;;  %v5625_v49 = vmul.f32 %v2229_v51, %v5441_v52 }
 0x4f6   :  { %6303 = vst [vmem:[#allocation22_spill] sm:$0xff] %v5570_v36  ;;  %v5628_v55 = vmul.f32 %v2229_v51, %v5446_v47  ;;  %v5631_v61 = vmul.f32 %v2229_v51, %v5451_v0 }
 0x4f7   :  { %6304 = vst [vmem:[#allocation30_spill] sm:$0xff] %v5573_v58  ;;  %v2565_v19 = vpop.permute.xlu1 %2564  ;;  %v2041_v63 = vpop.permute.xlu0 %2040 }
 0x4f8   :  { %6305 = vst [vmem:[#allocation18_spill] sm:$0xff] %v5592_v16  ;;  %v5677_v16 = vmul.f32 %v2565_v19, %v5441_v52  ;;  %v5689_v58 = vmul.f32 %v2565_v19, %v5461_v50  ;;  %v2043_v34 = vmul.f32 %v2041_v63, %v5386_v22  ;;  %v2044_v38 = vmul.f32 %v2041_v63, %v5391_v18 }
 0x4f9   :  { %6306 = vst [vmem:[#allocation31_spill] sm:$0xff] %v5595_v15  ;;  %v5674_v15 = vmul.f32 %v2565_v19, %v5436_v41  ;;  %v2046_v33 = vmul.f32 %v2041_v63, %v5401_v44  ;;  %v2047_v36 = vmul.f32 %v2041_v63, %v5406_v60  ;;  %v2048_v62 = vmul.f32 %v2041_v63, %v5411_v17 }
 0x4fa   :  { %6307 = vst [vmem:[#allocation32_spill] sm:$0xff] %v5598_v14  ;;  %v5671_v14 = vmul.f32 %v2565_v19, %v5431_v35  ;;  %v2049_v3 = vmul.f32 %v2041_v63, %v5416_v24  ;;  %v2050_v46 = vmul.f32 %v2041_v63, %v5421_v45  ;;  %v2051_v56 = vmul.f32 %v2041_v63, %v5426_v40 }
 0x4fb   :  { %6308 = vst [vmem:[#allocation24_spill] sm:$0xff] %v5601_v5  ;;  %v5668_v5 = vmul.f32 %v2565_v19, %v5426_v40  ;;  %v2052_v37 = vmul.f32 %v2041_v63, %v5431_v35 }
 0x4fc   :  { %6309 = vst [vmem:[#allocation25_spill] sm:$0xff] %v5604_v48  ;;  %v5686_v48 = vmul.f32 %v2565_v19, %v5456_v53 }
 0x4fd   :  { %6310 = vst [vmem:[#allocation33_spill] sm:$0xff] %v5607_v59  ;;  %v5644_v59 = vmul.f32 %v2565_v19, %v5386_v22 }
 0x4fe   :  { %6311 = vst [vmem:[#allocation34_spill] sm:$0xff] %v5610_v20  ;;  %v5665_v20 = vmul.f32 %v2565_v19, %v5421_v45 }
 0x4ff   :  { %6312 = vst [vmem:[#allocation7_spill] sm:$0xff] %v5613_v10  ;;  %v5634_v10 = vmul.f32 %v2229_v51, %v5456_v53 }
 0x500   :  { %6313 = vst [vmem:[#allocation19_spill] sm:$0xff] %v5616_v54  ;;  %v5637_v54 = vmul.f32 %v2229_v51, %v5461_v50  ;;  %v5653_v51 = vmul.f32 %v2565_v19, %v5401_v44 }
 0x501   :  { %6314 = vst [vmem:[#allocation29_spill] sm:$0xff] %v5619_v2  ;;  %v5656_v2 = vmul.f32 %v2565_v19, %v5406_v60 }
 0x502   :  { %6315 = vst [vmem:[#allocation23_spill] sm:$0xff] %v5622_v25  ;;  %v5659_v25 = vmul.f32 %v2565_v19, %v5411_v17 }
 0x503   :  { %6316 = vst [vmem:[#allocation6_spill] sm:$0xff] %v5625_v49  ;;  %v5662_v49 = vmul.f32 %v2565_v19, %v5416_v24 }
 0x504   :  { %6317 = vst [vmem:[#allocation35_spill] sm:$0xff] %v5628_v55  ;;  %v5647_v55 = vmul.f32 %v2565_v19, %v5391_v18 }
 0x505   :  { %6318 = vst [vmem:[#allocation36_spill] sm:$0xff] %v5631_v61  ;;  %v5650_v61 = vmul.f32 %v2565_v19, %v5396_v23 }
 0x506   :  { %6319 = vst [vmem:[#allocation37_spill] sm:$0xff] %v5634_v10  ;;  %v5683_v10 = vmul.f32 %v2565_v19, %v5451_v0 }
 0x507   :  { %6320 = vst [vmem:[#allocation38_spill] sm:$0xff] %v5637_v54  ;;  %v5680_v54 = vmul.f32 %v2565_v19, %v5446_v47  ;;  %v2045_v19 = vmul.f32 %v2041_v63, %v5396_v23 }
 0x508   :  { %6321 = vst [vmem:[#allocation39_spill] sm:$0xff] %v5644_v59  ;;  %v6337_v59 = vrot.slane %v5464_v32, 1  ;;  %v6344_v32 = vrot.slane %v5485_v28, 1  ;;  %v6351_v28 = vrot.slane %v5506_v1, 1  ;;  %v6358_v1 = vld [vmem:[#allocation14_spill] sm:$0xff] }
 0x509   :  { %6322 = vst [vmem:[#allocation40_spill] sm:$0xff] %v5647_v55 }
 0x50a   :  { %6323 = vst [vmem:[#allocation41_spill] sm:$0xff] %v5650_v61  ;;  %v6341_v61 = vrot.slane %v5476_v8, 1 }
 0x50b   :  { %6324 = vst [vmem:[#allocation42_spill] sm:$0xff] %v5653_v51 }
 0x50c   :  { %6325 = vst [vmem:[#allocation43_spill] sm:$0xff] %v5656_v2  ;;  %v2058_v2 = vmul.f32 %v2041_v63, %v5461_v50  ;;  %v2131_v55 = vadd.f32 %v6341_v61, %v2047_v36  ;;  %v6348_v61 = vrot.slane %v5497_v29, 1  ;;  %v6355_v29 = vrot.slane %v5534_v39, 2  ;;  %v6366_v39 = vld [vmem:[#allocation26_spill] sm:$0xff] }
 0x50d   :  { %6326 = vst [vmem:[#allocation44_spill] sm:$0xff] %v5659_v25  ;;  %v6340_v25 = vrot.slane %v5473_v9, 1  ;;  %v6347_v9 = vrot.slane %v5494_v13, 1  ;;  %v6354_v13 = vrot.slane %v5531_v21, 2  ;;  %v6364_v21 = vld [vmem:[#allocation17_spill] sm:$0xff] }
 0x50e   :  { %6327 = vst [vmem:[#allocation45_spill] sm:$0xff] %v5662_v49 }
 0x50f   :  { %6328 = vst [vmem:[#allocation46_spill] sm:$0xff] %v5665_v20  ;;  %v6339_v20 = vrot.slane %v5470_v7, 1  ;;  %v2130_v51 = vadd.f32 %v6340_v25, %v2046_v33  ;;  %v6346_v7 = vrot.slane %v5491_v4, 1  ;;  %v6353_v4 = vrot.slane %v5528_v43, 2  ;;  %v6362_v43 = vld [vmem:[#allocation16_spill] sm:$0xff] }
 0x510   :  { %6329 = vst [vmem:[#allocation47_spill] sm:$0xff] %v5668_v5  ;;  %v2054_v5 = vmul.f32 %v2041_v63, %v5441_v52 }
 0x511   :  { %6330 = vst [vmem:[#allocation48_spill] sm:$0xff] %v5671_v14  ;;  %v2129_v49 = vadd.f32 %v6339_v20, %v2045_v19  ;;  %v2136_v20 = vadd.f32 %v6346_v7, %v2052_v37  ;;  %v6374_v7 = vld [vmem:[#allocation21_spill] sm:$0xff] }
 0x512   :  { %6331 = vst [vmem:[#allocation49_spill] sm:$0xff] %v5674_v15  ;;  %v6338_v15 = vrot.slane %v5467_v6, 1  ;;  %v6345_v6 = vrot.slane %v5488_v57, 1  ;;  %v2138_v8 = vadd.f32 %v6348_v61, %v2054_v5  ;;  %v6352_v57 = vrot.slane %v5509_v42, 1  ;;  %v6360_v42 = vld [vmem:[#allocation15_spill] sm:$0xff]  ;;  %v6376_v61 = vld [vmem:[#allocation22_spill] sm:$0xff] }
 0x513   :  { %6332 = vst [vmem:[#allocation50_spill] sm:$0xff] %v5677_v16  ;;  %v2127_v16 = vadd.f32 %v6337_v59, %v2043_v34  ;;  %v2134_v59 = vadd.f32 %v6344_v32, %v2050_v46  ;;  %v2213_v5 = vadd.f32 %v6355_v29, %v2129_v49  ;;  %v6367_v49 = vrot.slane %v6366_v39, 2  ;;  %v6372_v32 = vld [vmem:[#allocation20_spill] sm:$0xff] }
 0x514   :  { %6333 = vst [vmem:[#allocation51_spill] sm:$0xff] %v5680_v54  ;;  %v2053_v54 = vmul.f32 %v2041_v63, %v5436_v41  ;;  %v2128_v14 = vadd.f32 %v6338_v15, %v2044_v38  ;;  %v2135_v15 = vadd.f32 %v6345_v6, %v2051_v56  ;;  %v6361_v38 = vrot.slane %v6360_v42, 2  ;;  %v6386_v42 = vld [vmem:[#allocation23_spill] sm:$0xff] }
 0x515   :  { %6334 = vst [vmem:[#allocation52_spill] sm:$0xff] %v5683_v10  ;;  %v2057_v10 = vmul.f32 %v2041_v63, %v5456_v53  ;;  %v2211_v46 = vadd.f32 %v6353_v4, %v2127_v16  ;;  %v6363_v16 = vrot.slane %v6362_v43, 2  ;;  %v6381_v4 = vld [vmem:[#allocation33_spill] sm:$0xff] }
 0x516   :  { %6335 = vst [vmem:[#allocation53_spill] sm:$0xff] %v5686_v48  ;;  %v2056_v48 = vmul.f32 %v2041_v63, %v5451_v0  ;;  %v6342_v0 = vrot.slane %v5479_v27, 1  ;;  %v2137_v25 = vadd.f32 %v6347_v9, %v2053_v54  ;;  %v2212_v54 = vadd.f32 %v6354_v13, %v2128_v14 }
 0x517   :  { %6336 = vst [vmem:[#allocation54_spill] sm:$0xff] %v5689_v58  ;;  %v2055_v58 = vmul.f32 %v2041_v63, %v5446_v47  ;;  %v6343_v63 = vrot.slane %v5482_v11, 1  ;;  %v6350_v11 = vrot.slane %v5503_v12, 1  ;;  %v6357_v12 = vrot.slane %v5540_v31, 2  ;;  %v6370_v31 = vld [vmem:[#allocation28_spill] sm:$0xff] }
 0x518   :  { %v2132_v53 = vadd.f32 %v6342_v0, %v2048_v62  ;;  %v6349_v0 = vrot.slane %v5500_v26, 1  ;;  %v2141_v62 = vadd.f32 %v6351_v28, %v2057_v10  ;;  %v6356_v26 = vrot.slane %v5537_v30, 2  ;;  %v6368_v30 = vld [vmem:[#allocation27_spill] sm:$0xff] }
 0x519   :  { %v2133_v50 = vadd.f32 %v6343_v63, %v2049_v3  ;;  %v2140_v36 = vadd.f32 %v6350_v11, %v2056_v48  ;;  %v2142_v3 = vadd.f32 %v6352_v57, %v2058_v2  ;;  %v2215_v48 = vadd.f32 %v6357_v12, %v2131_v55  ;;  %v6378_v11 = vld [vmem:[#allocation30_spill] sm:$0xff]  ;;  %v6380_v57 = vld [vmem:[#allocation25_spill] sm:$0xff]  ;;  %v6384_v12 = vld [vmem:[#allocation19_spill] sm:$0xff] }
 0x51a   :  { %v2139_v27 = vadd.f32 %v6349_v0, %v2055_v58  ;;  %v2214_v58 = vadd.f32 %v6356_v26, %v2130_v51  ;;  %v6359_v10 = vrot.slane %v6358_v1, 2  ;;  %v2218_v37 = vadd.f32 %v6363_v16, %v2134_v59  ;;  %v6383_v26 = vld [vmem:[#allocation7_spill] sm:$0xff] }
 0x51b   :  { %v2217_v34 = vadd.f32 %v6361_v38, %v2133_v50  ;;  %v6365_v14 = vrot.slane %v6364_v21, 2  ;;  %v2220_v2 = vadd.f32 %v6367_v49, %v2136_v20  ;;  %v6369_v51 = vrot.slane %v6368_v30, 2  ;;  %v6387_v38 = vld [vmem:[#allocation6_spill] sm:$0xff]  ;;  %v6389_v21 = vld [vmem:[#allocation36_spill] sm:$0xff] }
 0x51c   :  { %v2216_v33 = vadd.f32 %v6359_v10, %v2132_v53  ;;  %v6371_v55 = vrot.slane %v6370_v31, 2  ;;  %v6373_v53 = vrot.slane %v6372_v32, 2  ;;  %v6375_v50 = vrot.slane %v6374_v7, 2  ;;  %v6391_v49 = vld [vmem:[#allocation38_spill] sm:$0xff]  ;;  %v6394_v32 = vld [vmem:[#allocation31_spill] sm:$0xff] }
 0x51d   :  { %v2219_v56 = vadd.f32 %v6365_v14, %v2135_v15  ;;  %v2221_v19 = vadd.f32 %v6369_v51, %v2137_v25  ;;  %v6377_v59 = vrot.slane %v6376_v61, 2  ;;  %v6379_v15 = vrot.slane %v6378_v11, 2  ;;  %v6382_v25 = vld [vmem:[#allocation34_spill] sm:$0xff]  ;;  %v6390_v14 = vld [vmem:[#allocation37_spill] sm:$0xff]  ;;  %v6398_v11 = vld [vmem:[#allocation24_spill] sm:$0xff] }
 0x51e   :  { %v2222_v63 = vadd.f32 %v6371_v55, %v2138_v8  ;;  %v2223_v6 = vadd.f32 %v6373_v53, %v2139_v27  ;;  %v2224_v9 = vadd.f32 %v6375_v50, %v2140_v36  ;;  %v2267_v20 = vrot.slane %v6380_v57, 3  ;;  %v6385_v27 = vld [vmem:[#allocation29_spill] sm:$0xff]  ;;  %v6392_v51 = vld [vmem:[#allocation18_spill] sm:$0xff]  ;;  %v6396_v50 = vld [vmem:[#allocation32_spill] sm:$0xff] }
 0x51f   :  { %v2225_v0 = vadd.f32 %v6377_v59, %v2141_v62  ;;  %v2226_v28 = vadd.f32 %v6379_v15, %v2142_v3  ;;  %v2268_v13 = vrot.slane %v6381_v4, 3  ;;  %v2269_v29 = vrot.slane %v6382_v25, 3  ;;  %v6388_v62 = vld [vmem:[#allocation35_spill] sm:$0xff] }
 0x520   :  { %v2270_v8 = vrot.slane %v6383_v26, 3  ;;  %v2271_v1 = vrot.slane %v6384_v12, 3  ;;  %v2272_v10 = vrot.slane %v6385_v27, 3  ;;  %v2273_v36 = vrot.slane %v6386_v42, 3  ;;  %v2313_v27 = vpop.permute.xlu2 %2312 }
 0x521   :  { %v2274_v43 = vrot.slane %v6387_v38, 3  ;;  %v2275_v16 = vrot.slane %v6388_v62, 3  ;;  %v2276_v3 = vrot.slane %v6389_v21, 3  ;;  %v2277_v39 = vrot.slane %v6390_v14, 3 }
 0x522   :  { %v2278_v30 = vrot.slane %v6391_v49, 3  ;;  %v6393_v31 = vrot.slane %v6392_v51, 3  ;;  %v6395_v53 = vrot.slane %v6394_v32, 3  ;;  %v6397_v61 = vrot.slane %v6396_v50, 3 }
 0x523   :  { %v6399_v15 = vrot.slane %v6398_v11, 3  ;;  %v2299_v4 = vadd.f32 %v2267_v20, %v2215_v48  ;;  %v2300_v25 = vadd.f32 %v2268_v13, %v2216_v33  ;;  %v2301_v26 = vadd.f32 %v2269_v29, %v2217_v34  ;;  %v6402_v13 = vld [vmem:[#allocation13_spill] sm:$0xff] }
 0x524   :  { %v2295_v55 = vadd.f32 %v6393_v31, %v2211_v46  ;;  %v2296_v7 = vadd.f32 %v6395_v53, %v2212_v54  ;;  %v2297_v59 = vadd.f32 %v6397_v61, %v2213_v5  ;;  %v2302_v12 = vadd.f32 %v2270_v8, %v2218_v37 }
 0x525   :  { %v2298_v57 = vadd.f32 %v6399_v15, %v2214_v58  ;;  %v2303_v42 = vadd.f32 %v2271_v1, %v2219_v56  ;;  %v2304_v38 = vadd.f32 %v2272_v10, %v2220_v2  ;;  %v2305_v62 = vadd.f32 %v2273_v36, %v2221_v19 }
 0x526   :  { %v2306_v21 = vadd.f32 %v2274_v43, %v2222_v63  ;;  %v2307_v14 = vadd.f32 %v2275_v16, %v2223_v6  ;;  %v2308_v46 = vadd.f32 %v2276_v3, %v2224_v9  ;;  %v2309_v49 = vadd.f32 %v2277_v39, %v2225_v0  ;;  %v6400_v9 = vld [vmem:[#allocation11_spill] sm:$0xff] }
 0x527   :  { %v2310_v51 = vadd.f32 %v2278_v30, %v2226_v28  ;;  %v2315_v54 = vmul.f32 %v2313_v27, %v5386_v22  ;;  %v2316_v5 = vmul.f32 %v2313_v27, %v5391_v18  ;;  %v2317_v31 = vmul.f32 %v2313_v27, %v5396_v23  ;;  %v6401_v28 = vld [vmem:[#allocation12_spill] sm:$0xff] }
 0x528   :  { %v2318_v58 = vmul.f32 %v2313_v27, %v5401_v44  ;;  %v2319_v48 = vmul.f32 %v2313_v27, %v5406_v60  ;;  %v2320_v33 = vmul.f32 %v2313_v27, %v5411_v17  ;;  %v2321_v34 = vmul.f32 %v2313_v27, %v5416_v24 }
 0x529   :  { %v2322_v37 = vmul.f32 %v2313_v27, %v5421_v45  ;;  %v2323_v56 = vmul.f32 %v2313_v27, %v5426_v40  ;;  %v2324_v2 = vmul.f32 %v2313_v27, %v5431_v35  ;;  %v2325_v19 = vmul.f32 %v2313_v27, %v5436_v41 }
 0x52a   :  { %v2326_v63 = vmul.f32 %v2313_v27, %v5441_v52  ;;  %v2327_v6 = vmul.f32 %v2313_v27, %v5446_v47  ;;  %v2328_v0 = vmul.f32 %v2313_v27, %v6400_v9  ;;  %v2329_v20 = vmul.f32 %v2313_v27, %v6401_v28 }
 0x52b   :  { %v2330_v29 = vmul.f32 %v2313_v27, %v6402_v13  ;;  %v2347_v8 = vrot.slane %v2315_v54, 4  ;;  %v2348_v1 = vrot.slane %v2316_v5, 4  ;;  %v2349_v10 = vrot.slane %v2317_v31, 4  ;;  %v2397_v54 = vpop.permute.xlu2 %2396 }
 0x52c   :  { %v2350_v36 = vrot.slane %v2318_v58, 4  ;;  %v2351_v43 = vrot.slane %v2319_v48, 4  ;;  %v2352_v16 = vrot.slane %v2320_v33, 4  ;;  %v2353_v3 = vrot.slane %v2321_v34, 4 }
 0x52d   :  { %v2354_v39 = vrot.slane %v2322_v37, 4  ;;  %v2355_v30 = vrot.slane %v2323_v56, 4  ;;  %v2356_v32 = vrot.slane %v2324_v2, 4  ;;  %v2357_v53 = vrot.slane %v2325_v19, 4 }
 0x52e   :  { %v2358_v50 = vrot.slane %v2326_v63, 4  ;;  %v2359_v61 = vrot.slane %v2327_v6, 4  ;;  %v2360_v11 = vrot.slane %v2328_v0, 4  ;;  %v2361_v15 = vrot.slane %v2329_v20, 4 }
 0x52f   :  { %v2362_v9 = vrot.slane %v2330_v29, 4  ;;  %v2379_v47 = vadd.f32 %v2347_v8, %v2295_v55  ;;  %v2380_v28 = vadd.f32 %v2348_v1, %v2296_v7  ;;  %v2381_v52 = vadd.f32 %v2349_v10, %v2297_v59 }
 0x530   :  { %v2382_v27 = vadd.f32 %v2350_v36, %v2298_v57  ;;  %v2383_v5 = vadd.f32 %v2351_v43, %v2299_v4  ;;  %v2384_v31 = vadd.f32 %v2352_v16, %v2300_v25  ;;  %v2385_v58 = vadd.f32 %v2353_v3, %v2301_v26 }
 0x531   :  { %v2386_v48 = vadd.f32 %v2354_v39, %v2302_v12  ;;  %v2387_v33 = vadd.f32 %v2355_v30, %v2303_v42  ;;  %v2388_v34 = vadd.f32 %v2356_v32, %v2304_v38  ;;  %v2389_v37 = vadd.f32 %v2357_v53, %v2305_v62  ;;  %v6404_v62 = vld [vmem:[#allocation9_spill] sm:$0xff] }
 0x532   :  { %v2390_v56 = vadd.f32 %v2358_v50, %v2306_v21  ;;  %v2391_v2 = vadd.f32 %v2359_v61, %v2307_v14  ;;  %v2392_v19 = vadd.f32 %v2360_v11, %v2308_v46  ;;  %v2393_v63 = vadd.f32 %v2361_v15, %v2309_v49  ;;  %v6405_v14 = vld [vmem:[#allocation10_spill] sm:$0xff]  ;;  %v6406_v49 = vld [vmem:[#allocation11_spill] sm:$0xff] }
 0x533   :  { %v5823_v6 = vadd.f32 %v2362_v9, %v2310_v51  ;;  %v2399_v0 = vmul.f32 %v2397_v54, %v5386_v22  ;;  %v2400_v55 = vmul.f32 %v2397_v54, %v5391_v18  ;;  %v2401_v7 = vmul.f32 %v2397_v54, %v5396_v23  ;;  %v6407_v9 = vld [vmem:[#allocation12_spill] sm:$0xff] }
 0x534   :  { %v2402_v59 = vmul.f32 %v2397_v54, %v5401_v44  ;;  %v2403_v57 = vmul.f32 %v2397_v54, %v5406_v60  ;;  %v2404_v4 = vmul.f32 %v2397_v54, %v5411_v17  ;;  %v2405_v25 = vmul.f32 %v2397_v54, %v5416_v24 }
 0x535   :  { %6403 = vst [vmem:[#allocation14_spill] sm:$0xff] %v5823_v6  ;;  %v2406_v26 = vmul.f32 %v2397_v54, %v5421_v45  ;;  %v2407_v12 = vmul.f32 %v2397_v54, %v5426_v40  ;;  %v2408_v42 = vmul.f32 %v2397_v54, %v5431_v35  ;;  %v2409_v38 = vmul.f32 %v2397_v54, %v5436_v41  ;;  %v2481_v40 = vpop.permute.xlu2 %2480 }
 0x536   :  { %v2410_v21 = vmul.f32 %v2397_v54, %v6404_v62  ;;  %v2411_v46 = vmul.f32 %v2397_v54, %v6405_v14  ;;  %v2412_v51 = vmul.f32 %v2397_v54, %v6406_v49  ;;  %v2413_v20 = vmul.f32 %v2397_v54, %v6407_v9 }
 0x537   :  { %v2414_v29 = vmul.f32 %v2397_v54, %v6402_v13  ;;  %v2431_v8 = vrot.slane %v2399_v0, 5  ;;  %v2432_v1 = vrot.slane %v2400_v55, 5  ;;  %v2433_v10 = vrot.slane %v2401_v7, 5 }
 0x538   :  { %v2434_v36 = vrot.slane %v2402_v59, 5  ;;  %v2435_v43 = vrot.slane %v2403_v57, 5  ;;  %v2436_v16 = vrot.slane %v2404_v4, 5  ;;  %v2437_v3 = vrot.slane %v2405_v25, 5 }
 0x539   :  { %v2438_v39 = vrot.slane %v2406_v26, 5  ;;  %v2439_v30 = vrot.slane %v2407_v12, 5  ;;  %v2440_v32 = vrot.slane %v2408_v42, 5  ;;  %v2441_v53 = vrot.slane %v2409_v38, 5 }
 0x53a   :  { %v2442_v50 = vrot.slane %v2410_v21, 5  ;;  %v2443_v61 = vrot.slane %v2411_v46, 5  ;;  %v2444_v11 = vrot.slane %v2412_v51, 5  ;;  %v2445_v15 = vrot.slane %v2413_v20, 5 }
 0x53b   :  { %v2446_v14 = vrot.slane %v2414_v29, 5  ;;  %v2463_v6 = vadd.f32 %v2431_v8, %v2379_v47  ;;  %v2464_v9 = vadd.f32 %v2432_v1, %v2380_v28  ;;  %v2465_v54 = vadd.f32 %v2433_v10, %v2381_v52 }
 0x53c   :  { %v2466_v0 = vadd.f32 %v2434_v36, %v2382_v27  ;;  %v2467_v55 = vadd.f32 %v2435_v43, %v2383_v5  ;;  %v2468_v7 = vadd.f32 %v2436_v16, %v2384_v31  ;;  %v2469_v59 = vadd.f32 %v2437_v3, %v2385_v58 }
 0x53d   :  { %v2470_v57 = vadd.f32 %v2438_v39, %v2386_v48  ;;  %v2471_v4 = vadd.f32 %v2439_v30, %v2387_v33  ;;  %v2484_v25 = vmul.f32 %v2481_v40, %v5391_v18  ;;  %v2485_v26 = vmul.f32 %v2481_v40, %v5396_v23 }
 0x53e   :  { %v2486_v12 = vmul.f32 %v2481_v40, %v5401_v44  ;;  %v2472_v42 = vadd.f32 %v2440_v32, %v2388_v34  ;;  %v2488_v38 = vmul.f32 %v2481_v40, %v5411_v17  ;;  %v2489_v21 = vmul.f32 %v2481_v40, %v5416_v24 }
 0x53f   :  { %v2490_v47 = vmul.f32 %v2481_v40, %v5421_v45  ;;  %v2473_v52 = vadd.f32 %v2441_v53, %v2389_v37  ;;  %v2474_v28 = vadd.f32 %v2442_v50, %v2390_v56  ;;  %v5847_v27 = vadd.f32 %v2443_v61, %v2391_v2  ;;  %v6408_v2 = vld [vmem:[#allocation12_spill] sm:$0xff] }
 0x540   :  { %v2492_v5 = vmul.f32 %v2481_v40, %v5431_v35  ;;  %v2476_v31 = vadd.f32 %v2444_v11, %v2392_v19  ;;  %v2477_v58 = vadd.f32 %v2445_v15, %v2393_v63  ;;  %v2493_v18 = vmul.f32 %v2481_v40, %v5436_v41  ;;  %v6409_v41 = vld [vmem:[#allocation14_spill] sm:$0xff]  ;;  %v6412_v11 = vld [vmem:[#allocation40_spill] sm:$0xff] }
 0x541   :  { %v2494_v23 = vmul.f32 %v2481_v40, %v6404_v62  ;;  %v2483_v44 = vmul.f32 %v2481_v40, %v5386_v22  ;;  %v2516_v48 = vrot.slane %v2484_v25, 6  ;;  %v2517_v17 = vrot.slane %v2485_v26, 6  ;;  %v6410_v62 = vld [vmem:[#allocation8_spill] sm:$0xff]  ;;  %v6416_v26 = vld [vmem:[#allocation42_spill] sm:$0xff] }
 0x542   :  { %v2518_v33 = vrot.slane %v2486_v12, 6  ;;  %v2487_v24 = vmul.f32 %v2481_v40, %v5406_v60  ;;  %v2520_v45 = vrot.slane %v2488_v38, 6  ;;  %v2521_v34 = vrot.slane %v2489_v21, 6  ;;  %v6418_v12 = vld [vmem:[#allocation44_spill] sm:$0xff] }
 0x543   :  { %v2522_v37 = vrot.slane %v2490_v47, 6  ;;  %v2496_v56 = vmul.f32 %v2481_v40, %v6406_v49  ;;  %v2497_v35 = vmul.f32 %v2481_v40, %v6408_v2  ;;  %v2498_v19 = vmul.f32 %v2481_v40, %v6402_v13  ;;  %v6411_v13 = vld [vmem:[#allocation10_spill] sm:$0xff] }
 0x544   :  { %v2524_v63 = vrot.slane %v2492_v5, 6  ;;  %v2478_v46 = vadd.f32 %v2446_v14, %v6409_v41  ;;  %v2491_v51 = vmul.f32 %v2481_v40, %v6410_v62  ;;  %v2525_v22 = vrot.slane %v2493_v18, 6  ;;  %v6422_v5 = vld [vmem:[#allocation46_spill] sm:$0xff] }
 0x545   :  { %v2526_v20 = vrot.slane %v2494_v23, 6  ;;  %v2515_v29 = vrot.slane %v2483_v44, 6  ;;  %v2548_v8 = vadd.f32 %v2516_v48, %v2464_v9  ;;  %v2549_v1 = vadd.f32 %v2517_v17, %v2465_v54  ;;  %v6414_v9 = vld [vmem:[#allocation41_spill] sm:$0xff]  ;;  %v6424_v44 = vld [vmem:[#allocation48_spill] sm:$0xff] }
 0x546   :  { %v2550_v60 = vadd.f32 %v2518_v33, %v2466_v0  ;;  %v2519_v10 = vrot.slane %v2487_v24, 6  ;;  %v2552_v36 = vadd.f32 %v2520_v45, %v2468_v7  ;;  %v2553_v43 = vadd.f32 %v2521_v34, %v2469_v59  ;;  %v6426_v45 = vld [vmem:[#allocation49_spill] sm:$0xff] }
 0x547   :  { %v2554_v16 = vadd.f32 %v2522_v37, %v2470_v57  ;;  %v2528_v49 = vrot.slane %v2496_v56, 6  ;;  %v2529_v3 = vrot.slane %v2497_v35, 6  ;;  %v2530_v39 = vrot.slane %v2498_v19, 6  ;;  %v6428_v37 = vld [vmem:[#allocation50_spill] sm:$0xff]  ;;  %v6430_v35 = vld [vmem:[#allocation39_spill] sm:$0xff] }
 0x548   :  { %v2556_v30 = vadd.f32 %v2524_v63, %v2472_v42  ;;  %v2495_v32 = vmul.f32 %v2481_v40, %v6411_v13  ;;  %v2523_v53 = vrot.slane %v2491_v51, 6  ;;  %v2557_v14 = vadd.f32 %v2525_v22, %v2473_v52  ;;  %v6420_v42 = vld [vmem:[#allocation45_spill] sm:$0xff] }
 0x549   :  { %v2558_v50 = vadd.f32 %v2526_v20, %v2474_v28  ;;  %v2547_v61 = vadd.f32 %v2515_v29, %v2463_v6  ;;  %v6413_v15 = vrot.slane %v6412_v11, 7  ;;  %v6415_v54 = vrot.slane %v6414_v9, 7 }
 0x54a   :  { %v6417_v7 = vrot.slane %v6416_v26, 7  ;;  %v2551_v57 = vadd.f32 %v2519_v10, %v2467_v55  ;;  %v6419_v38 = vrot.slane %v6418_v12, 7  ;;  %v6421_v47 = vrot.slane %v6420_v42, 7 }
 0x54b   :  { %v2632_v25 = vadd.f32 %v6413_v15, %v2548_v8  ;;  %v2633_v0 = vadd.f32 %v6415_v54, %v2549_v1  ;;  %v6423_v52 = vrot.slane %v6422_v5, 7  ;;  %v2560_v6 = vadd.f32 %v2528_v49, %v2476_v31  ;;  %v6432_v31 = vld [vmem:[#allocation43_spill] sm:$0xff]  ;;  %v6434_v8 = vld [vmem:[#allocation52_spill] sm:$0xff] }
 0x54c   :  { %v2634_v59 = vadd.f32 %v6417_v7, %v2550_v60  ;;  %v2636_v21 = vadd.f32 %v6419_v38, %v2552_v36  ;;  %v2637_v40 = vadd.f32 %v6421_v47, %v2553_v43  ;;  %v2561_v18 = vadd.f32 %v2529_v3, %v2477_v58  ;;  %v6436_v60 = vld [vmem:[#allocation53_spill] sm:$0xff]  ;;  %v6438_v43 = vld [vmem:[#allocation54_spill] sm:$0xff] }
 0x54d   :  { %v2638_v28 = vadd.f32 %v6423_v52, %v2554_v16  ;;  %v2562_v23 = vadd.f32 %v2530_v39, %v2478_v46  ;;  %v6425_v48 = vrot.slane %v6424_v44, 7  ;;  %v2527_v33 = vrot.slane %v2495_v32, 6  ;;  %v6442_v52 = vld [vmem:[#allocation51_spill] sm:$0xff] }
 0x54e   :  { %v2555_v24 = vadd.f32 %v2523_v53, %v2471_v4  ;;  %v6427_v34 = vrot.slane %v6426_v45, 7  ;;  %v6429_v56 = vrot.slane %v6428_v37, 7  ;;  %v6431_v19 = vrot.slane %v6430_v35, 7 }
 0x54f   :  { %v2640_v17 = vadd.f32 %v6425_v48, %v2556_v30  ;;  %v2648_v41 = vperm.slane %v2632_v25, 0  ;;  %v2649_v62 = vperm.slane %v2633_v0, 0  ;;  %v2650_v51 = vperm.slane %v2634_v59, 0  ;;  %v6440_v30 = vld [vmem:[#allocation47_spill] sm:$0xff]  ;;  %v6445_v48 = vld [vmem:[#allocation4_spill] sm:$0xff] }
 0x550   :  { %v2641_v55 = vadd.f32 %v6427_v34, %v2557_v14  ;;  %v2642_v2 = vadd.f32 %v6429_v56, %v2558_v50  ;;  %v2631_v63 = vadd.f32 %v6431_v19, %v2547_v61  ;;  %v6433_v58 = vrot.slane %v6432_v31, 7 }
 0x551   :  { %v2652_v22 = vperm.slane %v2636_v21, 0  ;;  %v2653_v20 = vperm.slane %v2637_v40, 0  ;;  %v2654_v29 = vperm.slane %v2638_v28, 0  ;;  %v6435_v4 = vrot.slane %v6434_v8, 7 }
 0x552   :  { %v2635_v46 = vadd.f32 %v6433_v58, %v2551_v57  ;;  %v6437_v10 = vrot.slane %v6436_v60, 7  ;;  %v6439_v16 = vrot.slane %v6438_v43, 7  ;;  %v2656_v3 = vperm.slane %v2640_v17, 0  ;;  %v3795_v43 = vld [vmem:[%s6107_s3 + $0x238] sm:$0xff] }
 0x553   :  { %v2644_v1 = vadd.f32 %v6435_v4, %v2560_v6  ;;  %v2559_v39 = vadd.f32 %v2527_v33, %v5847_v27  ;;  %v6441_v13 = vrot.slane %v6440_v30, 7  ;;  %v2657_v53 = vperm.slane %v2641_v55, 0  ;;  %v6447_v4 = vld [vmem:[#allocation5_spill] sm:$0xff]  ;;  %v3800_v30 = vld [vmem:[%s6107_s3 + $0x270] sm:$0xff] }
 0x554   :  { %v2645_v36 = vadd.f32 %v6437_v10, %v2561_v18  ;;  %v2646_v49 = vadd.f32 %v6439_v16, %v2562_v23  ;;  %v2658_v14 = vperm.slane %v2642_v2, 0  ;;  %v2679_v50 = vrot.slane %v2648_v41, 6  ;;  %v6444_v18 = vld [vmem:[#allocation2_spill] sm:$0xff]  ;;  %v3796_v16 = vld [vmem:[%s6107_s3 + $0x278] sm:$0xff] }
 0x555   :  { %v2639_v32 = vadd.f32 %v6441_v13, %v2555_v24  ;;  %v2680_v61 = vrot.slane %v2649_v62, 4  ;;  %v2681_v11 = vrot.slane %v2650_v51, 2  ;;  %v2682_v15 = vrot.slane %v2652_v22, 6  ;;  %v3801_v13 = vld [vmem:[%s6107_s3 + $0x2b0] sm:$0xff] }
 0x556   :  { %v2647_v25 = vperm.slane %v2631_v63, 0  ;;  %v2651_v9 = vperm.slane %v2635_v46, 0  ;;  %v2683_v54 = vrot.slane %v2653_v20, 4  ;;  %v2684_v0 = vrot.slane %v2654_v29, 2  ;;  %v6446_v63 = vld [vmem:[#allocation3_spill] sm:$0xff] }
 0x557   :  { %v2660_v26 = vperm.slane %v2644_v1, 0  ;;  %v2661_v7 = vperm.slane %v2645_v36, 0  ;;  %v2662_v59 = vperm.slane %v2646_v49, 0  ;;  %v2685_v57 = vrot.slane %v2656_v3, 6  ;;  %v3797_v49 = vld [vmem:[%s6107_s3 + $0x2b8] sm:$0xff] }
 0x558   :  { %v2691_v12 = vsel %vm1323_vm0, %v2647_v25, %v2679_v50  ;;  %v2692_v27 = vsel %vm1714_vm5, %v2680_v61, %v2681_v11  ;;  %v2694_v38 = vsel %vm1323_vm0, %v2651_v9, %v2682_v15  ;;  %v2695_v21 = vsel %vm1714_vm5, %v2683_v54, %v2684_v0  ;;  %v3798_v3 = vld [vmem:[%s6107_s3 + $0x2f8] sm:$0xff]  ;;  %v3805_v50 = vld [vmem:[%s6107_s3 + $0x2a8] sm:$0xff]  ;;  %v3807_v11 = vld [vmem:[%s6107_s3 + $0x220] sm:$0xff] }
 0x559   :  { %v2686_v42 = vrot.slane %v2657_v53, 4  ;;  %v2687_v47 = vrot.slane %v2658_v14, 2  ;;  %v2693_v40 = vsel %vm1716_vm6, %v2691_v12, %v2692_v27  ;;  %v2696_v5 = vsel %vm1716_vm6, %v2694_v38, %v2695_v21  ;;  %v3803_v53 = vld [vmem:[%s6107_s3 + $0x228] sm:$0xff]  ;;  %v3808_v15 = vld [vmem:[%s6107_s3 + $0x260] sm:$0xff]  ;;  %v3813_v12 = vld [vmem:[%s6107_s3 + $0x298] sm:$0xff] }
 0x55a   :  { %v6443_v28 = vrot.slane %v6442_v52, 7  ;;  %v2707_v23 = vmul.f32 %v2693_v40, %v6444_v18  ;;  %v2655_v44 = vperm.slane %v2639_v32, 0  ;;  %v2708_v17 = vmul.f32 %v2696_v5, %v6445_v48  ;;  %v3802_v32 = vld [vmem:[%s6107_s3 + $0x2f0] sm:$0xff]  ;;  %v3804_v14 = vld [vmem:[%s6107_s3 + $0x268] sm:$0xff]  ;;  %v3809_v54 = vld [vmem:[%s6107_s3 + $0x2a0] sm:$0xff] }
 0x55b   :  { %v2688_v33 = vrot.slane %v2660_v26, 6  ;;  %v2689_v24 = vrot.slane %v2661_v7, 4  ;;  %v2690_v45 = vrot.slane %v2662_v59, 2  ;;  %v2698_v55 = vsel %vm1714_vm5, %v2686_v42, %v2687_v47  ;;  %v3806_v61 = vld [vmem:[%s6107_s3 + $0x2e8] sm:$0xff]  ;;  %v3810_v0 = vld [vmem:[%s6107_s3 + $0x2e0] sm:$0xff]  ;;  %v3811_v59 = vld [vmem:[%s6107_s3 + $0x218] sm:$0xff] }
 0x55c   :  { %v2643_v6 = vadd.f32 %v6443_v28, %v2559_v39  ;;  %2715 = vst [vmem:[#allocation1] ss:$4 sm:$0xff] %v2707_v23  ;;  %v2697_v34 = vsel %vm1323_vm0, %v2655_v44, %v2685_v57  ;;  %v3799_v39 = vld [vmem:[%s6107_s3 + $0x230] sm:$0xff]  ;;  %v3812_v57 = vld [vmem:[%s6107_s3 + $0x258] sm:$0xff]  ;;  %v3819_v40 = vld [vmem:[%s6107_s3 + $0x208] sm:$0xff] }
 0x55d   :  { %2717 = vst [vmem:[#allocation1 + $0x20] ss:$4 sm:$0xff] %v2708_v17  ;;  %v2699_v56 = vsel %vm1716_vm6, %v2697_v34, %v2698_v55  ;;  %v2701_v35 = vsel %vm1714_vm5, %v2689_v24, %v2690_v45  ;;  %v3814_v27 = vld [vmem:[%s6107_s3 + $0x2d8] sm:$0xff]  ;;  %v3815_v38 = vld [vmem:[%s6107_s3 + $0x210] sm:$0xff]  ;;  %v3820_v5 = vld [vmem:[%s6107_s3 + $0x248] sm:$0xff] }
 0x55e   :  { %v2659_v37 = vperm.slane %v2643_v6, 0  ;;  %v2709_v41 = vmul.f32 %v2699_v56, %v6446_v63  ;;  %v3816_v21 = vld [vmem:[%s6107_s3 + $0x250] sm:$0xff]  ;;  %v3821_v52 = vld [vmem:[%s6107_s3 + $0x288] sm:$0xff]  ;;  %v3823_v23 = vld [vmem:[%s6107_s3 + $0x200] sm:$0xff] }
 0x55f   :  { %v3817_v42 = vld [vmem:[%s6107_s3 + $0x290] sm:$0xff]  ;;  %v3822_v28 = vld [vmem:[%s6107_s3 + $0x2c8] sm:$0xff]  ;;  %v3824_v44 = vld [vmem:[%s6107_s3 + $0x240] sm:$0xff] }
 0x560   :  { %v2700_v2 = vsel %vm1323_vm0, %v2659_v37, %v2688_v33  ;;  %v3818_v47 = vld [vmem:[%s6107_s3 + $0x2d0] sm:$0xff]  ;;  %v3825_v33 = vld [vmem:[%s6107_s3 + $0x280] sm:$0xff]  ;;  %v3827_v45 = vld [vmem:[%s6107_s3 + $0x338] sm:$0xff] }
 0x561   :  { %v2702_v19 = vsel %vm1716_vm6, %v2700_v2, %v2701_v35  ;;  %v3826_v24 = vld [vmem:[%s6107_s3 + $0x2c0] sm:$0xff]  ;;  %v3828_v34 = vld [vmem:[%s6107_s3 + $0x378] sm:$0xff]  ;;  %v3831_v63 = vld [vmem:[%s6107_s3 + $0x330] sm:$0xff] }
 0x562   :  { %v2710_v1 = vmul.f32 %v2702_v19, %v6447_v4  ;;  %v3829_v56 = vld [vmem:[%s6107_s3 + $0x3b8] sm:$0xff]  ;;  %v3842_v4 = vld [vmem:[%s6107_s3 + $0x3e0] sm:$0xff] }
 0x563   :  { %v2718_v62 = vld.sshfl [vmem:[#allocation1] sm:$0xff pattern:$0x73625140]  ;;  %v2719_v51 = vld.sshfl [vmem:[#allocation1 + $0x8] sm:$0xff pattern:$0x73625140] }
 0x564   :  { %v2752_v31 = vpack.c.bf16 %v2718_v62, %v2718_v62  ;;  %v2753_v58 = vpack.c.bf16 %v2719_v51, %v2719_v51  ;;  %v2720_v46 = vld.sshfl [vmem:[#allocation1 + $0x10] sm:$0xff pattern:$0x73625140]  ;;  %v2721_v22 = vld.sshfl [vmem:[#allocation1 + $0x18] sm:$0xff pattern:$0x73625140] }
 0x565   :  { %v2754_v20 = vpack.c.bf16 %v2720_v46, %v2720_v46  ;;  %v2755_v29 = vpack.c.bf16 %v2721_v22, %v2721_v22  ;;  %2726 = vst [vmem:[#allocation1] ss:$4 sm:$0xff] %v2709_v41  ;;  %v2722_v8 = vld.sshfl [vmem:[#allocation1 + $0x20] sm:$0xff pattern:$0x73625140]  ;;  %v3830_v2 = vld [vmem:[%s6107_s3 + $0x3f8] sm:$0xff] }
 0x566   :  { %2780 = vmatmul.bf16.vlgmr.msra.gmra.mxu0 %v2752_v31  ;;  %2793 = vmatmul.bf16.vlgmr.msra.gmra.mxu1 %v2753_v58  ;;  %v2723_v60 = vld.sshfl [vmem:[#allocation1 + $0x28] sm:$0xff pattern:$0x73625140]  ;;  %v2724_v10 = vld.sshfl [vmem:[#allocation1 + $0x30] sm:$0xff pattern:$0x73625140]  ;;  %v2756_v25 = vpack.c.bf16 %v2722_v8, %v2722_v8 }
 0x567   :  { %2806 = vmatmul.bf16.vlgmr.msra.gmra.mxu2 %v2754_v20  ;;  %2819 = vmatmul.bf16.vlgmr.msra.gmra.mxu3 %v2755_v29  ;;  %v2725_v36 = vld.sshfl [vmem:[#allocation1 + $0x38] sm:$0xff pattern:$0x73625140]  ;;  %v2757_v9 = vpack.c.bf16 %v2723_v60, %v2723_v60  ;;  %v2758_v26 = vpack.c.bf16 %v2724_v10, %v2724_v10  ;;  %v3832_v41 = vld [vmem:[%s6107_s3 + $0x370] sm:$0xff]  ;;  %v3835_v31 = vld [vmem:[%s6107_s3 + $0x328] sm:$0xff] }
 0x568   :  { %2876 = vmatpush.bf16.msra.mxu0 %v3795_v43  ;;  %2889 = vmatpush.bf16.msra.mxu1 %v3796_v16  ;;  %2727 = vst [vmem:[#allocation1 + $0x20] ss:$4 sm:$0xff] %v2710_v1  ;;  %v2759_v7 = vpack.c.bf16 %v2725_v36, %v2725_v36  ;;  %v3833_v62 = vld [vmem:[%s6107_s3 + $0x3b0] sm:$0xff]  ;;  %v3836_v58 = vld [vmem:[%s6107_s3 + $0x368] sm:$0xff]  ;;  %v3839_v20 = vld [vmem:[%s6107_s3 + $0x320] sm:$0xff] }
 0x569   :  { %2902 = vmatpush.bf16.msra.mxu2 %v3797_v49  ;;  %2915 = vmatpush.bf16.msra.mxu3 %v3798_v3  ;;  %v3834_v51 = vld [vmem:[%s6107_s3 + $0x3f0] sm:$0xff]  ;;  %v3837_v46 = vld [vmem:[%s6107_s3 + $0x3a8] sm:$0xff]  ;;  %v3840_v29 = vld [vmem:[%s6107_s3 + $0x360] sm:$0xff] }
 0x56a   :  { %v3838_v22 = vld [vmem:[%s6107_s3 + $0x3e8] sm:$0xff]  ;;  %v3841_v8 = vld [vmem:[%s6107_s3 + $0x3a0] sm:$0xff]  ;;  %v3843_v1 = vld [vmem:[%s6107_s3 + $0x318] sm:$0xff] }
 0x56b   :  { %v3844_v60 = vld [vmem:[%s6107_s3 + $0x358] sm:$0xff]  ;;  %v3847_v43 = vld [vmem:[%s6107_s3 + $0x310] sm:$0xff] }
 0x56c   :  { %2877 = vmatpush.bf16.msra.mxu0 %v3799_v39  ;;  %2890 = vmatpush.bf16.msra.mxu1 %v3800_v30  ;;  %v2728_v6 = vld.sshfl [vmem:[#allocation1] sm:$0xff pattern:$0x73625140]  ;;  %v2729_v18 = vld.sshfl [vmem:[#allocation1 + $0x8] sm:$0xff pattern:$0x73625140] }
 0x56d   :  { %2903 = vmatpush.bf16.msra.mxu2 %v3801_v13  ;;  %2916 = vmatpush.bf16.msra.mxu3 %v3802_v32  ;;  %v2730_v48 = vld.sshfl [vmem:[#allocation1 + $0x10] sm:$0xff pattern:$0x73625140]  ;;  %v2731_v17 = vld.sshfl [vmem:[#allocation1 + $0x18] sm:$0xff pattern:$0x73625140]  ;;  %v2760_v55 = vpack.c.bf16 %v2728_v6, %v2728_v6  ;;  %v2761_v37 = vpack.c.bf16 %v2729_v18, %v2729_v18 }
 0x56e   :  { %v2762_v35 = vpack.c.bf16 %v2730_v48, %v2730_v48  ;;  %v2763_v19 = vpack.c.bf16 %v2731_v17, %v2731_v17  ;;  %v3845_v10 = vld [vmem:[%s6107_s3 + $0x398] sm:$0xff]  ;;  %v3848_v16 = vld [vmem:[%s6107_s3 + $0x350] sm:$0xff]  ;;  %v3851_v39 = vld [vmem:[%s6107_s3 + $0x308] sm:$0xff] }
 0x56f   :  { %v3846_v36 = vld [vmem:[%s6107_s3 + $0x3d8] sm:$0xff]  ;;  %v3849_v49 = vld [vmem:[%s6107_s3 + $0x390] sm:$0xff]  ;;  %v3852_v30 = vld [vmem:[%s6107_s3 + $0x348] sm:$0xff] }
 0x570   :  { %2878 = vmatpush.bf16.msra.mxu0 %v3803_v53  ;;  %2891 = vmatpush.bf16.msra.mxu1 %v3804_v14  ;;  %v3850_v3 = vld [vmem:[%s6107_s3 + $0x3d0] sm:$0xff]  ;;  %v3853_v13 = vld [vmem:[%s6107_s3 + $0x388] sm:$0xff]  ;;  %v2732_v53 = vld.sshfl [vmem:[#allocation1 + $0x20] sm:$0xff pattern:$0x73625140] }
 0x571   :  { %2904 = vmatpush.bf16.msra.mxu2 %v3805_v50  ;;  %2917 = vmatpush.bf16.msra.mxu3 %v3806_v61  ;;  %v3854_v32 = vld [vmem:[%s6107_s3 + $0x3c8] sm:$0xff]  ;;  %v2734_v50 = vld.sshfl [vmem:[#allocation1 + $0x30] sm:$0xff pattern:$0x73625140] }
 0x572   :  { %v2733_v14 = vld.sshfl [vmem:[#allocation1 + $0x28] sm:$0xff pattern:$0x73625140]  ;;  %v2735_v61 = vld.sshfl [vmem:[#allocation1 + $0x38] sm:$0xff pattern:$0x73625140] }
 0x574   :  { %2879 = vmatpush.bf16.msra.mxu0 %v3807_v11  ;;  %2892 = vmatpush.bf16.msra.mxu1 %v3808_v15  ;;  %v3855_v11 = vld [vmem:[%s6107_s3 + $0x300] sm:$0xff] }
 0x575   :  { %2905 = vmatpush.bf16.msra.mxu2 %v3809_v54  ;;  %2918 = vmatpush.bf16.msra.mxu3 %v3810_v0  ;;  %v3856_v15 = vld [vmem:[%s6107_s3 + $0x340] sm:$0xff]  ;;  %v2764_v54 = vpack.c.bf16 %v2732_v53, %v2732_v53  ;;  %v2765_v0 = vpack.c.bf16 %v2733_v14, %v2733_v14 }
 0x576   :  { %2832 = vmatmul.bf16.vlgmr.msrb.gmra.mxu0 %v2756_v25  ;;  %2845 = vmatmul.bf16.vlgmr.msrb.gmra.mxu1 %v2757_v9  ;;  %v3857_v25 = vld [vmem:[%s6107_s3 + $0x380] sm:$0xff] }
 0x577   :  { %2858 = vmatmul.bf16.vlgmr.msrb.gmra.mxu2 %v2758_v26  ;;  %2871 = vmatmul.bf16.vlgmr.msrb.gmra.mxu3 %v2759_v7  ;;  %v3858_v9 = vld [vmem:[%s6107_s3 + $0x3c0] sm:$0xff]  ;;  %v2766_v26 = vpack.c.bf16 %v2734_v50, %v2734_v50  ;;  %v2767_v7 = vpack.c.bf16 %v2735_v61, %v2735_v61 }
 0x578   :  { %2880 = vmatpush.bf16.msra.mxu0 %v3811_v59  ;;  %2893 = vmatpush.bf16.msra.mxu1 %v3812_v57 }
 0x579   :  { %2906 = vmatpush.bf16.msra.mxu2 %v3813_v12  ;;  %2919 = vmatpush.bf16.msra.mxu3 %v3814_v27 }
 0x57c   :  { %2881 = vmatpush.bf16.msra.mxu0 %v3815_v38  ;;  %2894 = vmatpush.bf16.msra.mxu1 %v3816_v21 }
 0x57d   :  { %2907 = vmatpush.bf16.msra.mxu2 %v3817_v42  ;;  %2920 = vmatpush.bf16.msra.mxu3 %v3818_v47 }
 0x580   :  { %2882 = vmatpush.bf16.msra.mxu0 %v3819_v40  ;;  %2895 = vmatpush.bf16.msra.mxu1 %v3820_v5 }
 0x581   :  { %2908 = vmatpush.bf16.msra.mxu2 %v3821_v52  ;;  %2921 = vmatpush.bf16.msra.mxu3 %v3822_v28 }
 0x584   :  { %2883 = vmatpush.bf16.msra.mxu0 %v3823_v23  ;;  %2896 = vmatpush.bf16.msra.mxu1 %v3824_v44  ;;  %v3658_v23 = vld [vmem:[%s6114_s6] ss:$0 sm:$0xff] }
 0x585   :  { %2909 = vmatpush.bf16.msra.mxu2 %v3825_v33  ;;  %2922 = vmatpush.bf16.msra.mxu3 %v3826_v24 }
 0x587   :  { %2884 = vmatmul.bf16.vlgmr.msra.gmra.mxu0 %v2760_v55  ;;  %2897 = vmatmul.bf16.vlgmr.msra.gmra.mxu1 %v2761_v37 }
 0x588   :  { %2928 = vmatpush.bf16.msrb.mxu0 %v3827_v45  ;;  %2941 = vmatpush.bf16.msrb.mxu1 %v3828_v34 }
 0x589   :  { %2954 = vmatpush.bf16.msrb.mxu2 %v3829_v56  ;;  %2967 = vmatpush.bf16.msrb.mxu3 %v3830_v2 }
 0x58a   :  { %2910 = vmatmul.bf16.vlgmr.msra.gmra.mxu2 %v2762_v35  ;;  %2923 = vmatmul.bf16.vlgmr.msra.gmra.mxu3 %v2763_v19 }
 0x58c   :  { %2929 = vmatpush.bf16.msrb.mxu0 %v3831_v63  ;;  %2942 = vmatpush.bf16.msrb.mxu1 %v3832_v41 }
 0x58d   :  { %2955 = vmatpush.bf16.msrb.mxu2 %v3833_v62  ;;  %2968 = vmatpush.bf16.msrb.mxu3 %v3834_v51 }
 0x590   :  { %2930 = vmatpush.bf16.msrb.mxu0 %v3835_v31  ;;  %2943 = vmatpush.bf16.msrb.mxu1 %v3836_v58 }
 0x591   :  { %2956 = vmatpush.bf16.msrb.mxu2 %v3837_v46  ;;  %2969 = vmatpush.bf16.msrb.mxu3 %v3838_v22 }
 0x594   :  { %2931 = vmatpush.bf16.msrb.mxu0 %v3839_v20  ;;  %2944 = vmatpush.bf16.msrb.mxu1 %v3840_v29 }
 0x595   :  { %2957 = vmatpush.bf16.msrb.mxu2 %v3841_v8  ;;  %2970 = vmatpush.bf16.msrb.mxu3 %v3842_v4 }
 0x598   :  { %2932 = vmatpush.bf16.msrb.mxu0 %v3843_v1  ;;  %2945 = vmatpush.bf16.msrb.mxu1 %v3844_v60 }
 0x599   :  { %2958 = vmatpush.bf16.msrb.mxu2 %v3845_v10  ;;  %2971 = vmatpush.bf16.msrb.mxu3 %v3846_v36 }
 0x59c   :  { %2933 = vmatpush.bf16.msrb.mxu0 %v3847_v43  ;;  %2946 = vmatpush.bf16.msrb.mxu1 %v3848_v16 }
 0x59d   :  { %2959 = vmatpush.bf16.msrb.mxu2 %v3849_v49  ;;  %2972 = vmatpush.bf16.msrb.mxu3 %v3850_v3 }
 0x5a0   :  { %2934 = vmatpush.bf16.msrb.mxu0 %v3851_v39  ;;  %2947 = vmatpush.bf16.msrb.mxu1 %v3852_v30 }
 0x5a1   :  { %2960 = vmatpush.bf16.msrb.mxu2 %v3853_v13  ;;  %2973 = vmatpush.bf16.msrb.mxu3 %v3854_v32 }
 0x5a4   :  { %2935 = vmatpush.bf16.msrb.mxu0 %v3855_v11  ;;  %2948 = vmatpush.bf16.msrb.mxu1 %v3856_v15 }
 0x5a5   :  { %2961 = vmatpush.bf16.msrb.mxu2 %v3857_v25  ;;  %2974 = vmatpush.bf16.msrb.mxu3 %v3858_v9 }
 0x5a7   :  { %2936 = vmatmul.bf16.vlgmr.msrb.gmra.mxu0 %v2764_v54  ;;  %2949 = vmatmul.bf16.vlgmr.msrb.gmra.mxu1 %v2765_v0 }
 0x5a8   :  { %2962 = vmatmul.bf16.vlgmr.msrb.gmra.mxu2 %v2766_v26  ;;  %2975 = vmatmul.bf16.vlgmr.msrb.gmra.mxu3 %v2767_v7 }
 0x5e3   :  { %v2781_v59 = vpop.f32.mrf.mxu0  ;;  %v2794_v57 = vpop.f32.mrf.mxu1 }
 0x5e4   :  { %v2782_v44 = vadd.f32 %v3658_v23, %v2781_v59 }
 0x5e6   :  { %v2795_v33 = vadd.f32 %v2794_v57, %v2782_v44 }
 0x5ea   :  { %v2807_v12 = vpop.f32.mrf.mxu2  ;;  %v2820_v27 = vpop.f32.mrf.mxu3 }
 0x5eb   :  { %v2783_v38 = vpop.f32.mrf.mxu0  ;;  %v2796_v21 = vpop.f32.mrf.mxu1  ;;  %v2808_v34 = vadd.f32 %v2807_v12, %v2795_v33 }
 0x5ed   :  { %v2821_v55 = vadd.f32 %v2820_v27, %v2808_v34 }
 0x5f2   :  { %v2809_v42 = vpop.f32.mrf.mxu2  ;;  %v2822_v47 = vpop.f32.mrf.mxu3 }
 0x5f3   :  { %v2833_v40 = vpop.f32.mrf.mxu0  ;;  %v2846_v5 = vpop.f32.mrf.mxu1 }
 0x5f4   :  { %v2834_v37 = vadd.f32 %v2833_v40, %v2821_v55 }
 0x5f6   :  { %v2847_v63 = vadd.f32 %v2846_v5, %v2834_v37 }
 0x5fa   :  { %v2859_v52 = vpop.f32.mrf.mxu2  ;;  %v2872_v28 = vpop.f32.mrf.mxu3 }
 0x5fb   :  { %v2835_v6 = vpop.f32.mrf.mxu0  ;;  %v2848_v18 = vpop.f32.mrf.mxu1  ;;  %v2860_v41 = vadd.f32 %v2859_v52, %v2847_v63 }
 0x5fd   :  { %v2873_v31 = vadd.f32 %v2872_v28, %v2860_v41 }
 0x602   :  { %v2861_v48 = vpop.f32.mrf.mxu2  ;;  %v2874_v17 = vpop.f32.mrf.mxu3 }
 0x604   :  { %v2885_v24 = vpop.f32.mrf.mxu0  ;;  %v2898_v45 = vpop.f32.mrf.mxu1 }
 0x605   :  { %v2886_v58 = vadd.f32 %v2885_v24, %v2873_v31 }
 0x607   :  { %v2899_v46 = vadd.f32 %v2898_v45, %v2886_v58 }
 0x60c   :  { %v2887_v35 = vpop.f32.mrf.mxu0  ;;  %v2900_v19 = vpop.f32.mrf.mxu1 }
 0x60d   :  { %v2911_v56 = vpop.f32.mrf.mxu2  ;;  %v2924_v2 = vpop.f32.mrf.mxu3 }
 0x60e   :  { %v2912_v22 = vadd.f32 %v2911_v56, %v2899_v46 }
 0x610   :  { %v2925_v20 = vadd.f32 %v2924_v2, %v2912_v22 }
 0x615   :  { %v2913_v62 = vpop.f32.mrf.mxu2  ;;  %v2926_v51 = vpop.f32.mrf.mxu3 }
 0x624   :  { %v2937_v29 = vpop.f32.mrf.mxu0  ;;  %v2950_v8 = vpop.f32.mrf.mxu1 }
 0x625   :  { %v2938_v4 = vadd.f32 %v2937_v29, %v2925_v20 }
 0x627   :  { %v2951_v1 = vadd.f32 %v2950_v8, %v2938_v4 }
 0x62b   :  { %v2963_v60 = vpop.f32.mrf.mxu2  ;;  %v2976_v10 = vpop.f32.mrf.mxu3 }
 0x62c   :  { %v2964_v36 = vadd.f32 %v2963_v60, %v2951_v1  ;;  %v2939_v43 = vpop.f32.mrf.mxu0  ;;  %v2952_v16 = vpop.f32.mrf.mxu1 }
 0x62e   :  { %v2977_v49 = vadd.f32 %v2976_v10, %v2964_v36 }
 0x630   :  { %2980 = vst [vmem:[%s6110_s7] sm:$0x3] %v2977_v49 }
 0x633   :  { %v2965_v3 = vpop.f32.mrf.mxu2  ;;  %v2978_v39 = vpop.f32.mrf.mxu3 }

</bundles_post_ra>
